<compile_context>
chip_gen: v5e
topology: v5e:2x2
jax: 0.10.0
libtpu: 0.0.40
codegen_flags: <defaults>
</compile_context>

<pallas_src>
import jax
import jax.numpy as jnp
import numpy as np
from jax import lax
from jax.experimental import pallas as pl
from jax.experimental.pallas import tpu as pltpu

EPS = 1e-5
LANE = 128


def _round_up(x, m):
    return (x + m - 1) // m * m


def _vmem_capacity_bytes():
    try:
        return int(pltpu.get_tpu_info().vmem_capacity_bytes)
    except Exception:
        return 64 * 1024 * 1024  # conservative default (v7x per-TC VMEM)


def _vmem_limit_bytes(vmem_cap):
    return min(int(0.8 * vmem_cap), 96 * 1024 * 1024)


def _estimate_step_vmem(nb, h, w, c, cp):
    """Rough per-grid-step VMEM bytes for batch block nb."""
    m = nb * h * w
    io_tile = m * c * 4                       # one f32 (nb,H,W,C) tile
    buffers = 2 * 2 * io_tile                 # in + out, double-buffered
    tmp = (3 * io_tile                        # x/h + rolled taps (f32, C wide)
           + nb * (h + 2) * w * 3 * cp * 2    # winp (bf16, 3*Cp wide, H+2 rows)
           + 2 * m * cp * 4)                  # acc / y / z (f32, Cp wide)
    weights = 2 * (3 * 3 * cp * cp * 2 + cp * cp * 2 + 4 * cp * 4)
    return buffers + tmp + weights


def _pick_batch_block(n, h, w, c, cp, vmem_cap):
    """Largest divisor of n whose working set fits VMEM, keeping >= 2 grid
    steps so both v7x TensorCores get work."""
    budget = int(0.6 * vmem_cap)
    best = 1
    for nb in range(1, n + 1):
        if n % nb:
            continue
        if nb > 1 and (n // nb) < 2:
            continue
        if _estimate_step_vmem(nb, h, w, c, cp) <= budget:
            best = nb
    return best


def resblock_kernel(x_ref, w1_ref, w2_ref, sb_ref, o_ref):
    """One grid step.

    x_ref / o_ref: (NB, H, W, C)  f32 VMEM tiles (C = model channels, unpadded)
    w1_ref: (3, 3*Cp, Cp) bf16    3x3 conv weights, (kw, Cin) folded into K
    w2_ref: (Cp, Cp)      bf16    1x1 conv weights
    sb_ref: (4, Cp)       f32     rows = [scale1, bias1, scale2, bias2]
    """
    NB, H, W, C = x_ref.shape
    Cp = w2_ref.shape[0]
    M = NB * H * W

    x = x_ref[...]                                   # (NB, H, W, C) f32
    h = jnp.maximum(x, 0.0)                          # ReLU

    # ---- x-1 / x+1 taps: sublane roll on the flat (M, C) view + edge mask ----
    # (avoids the sublane-misaligned W-axis pad+slice relayouts)
    if W % 8 == 0:
        hf = h.reshape(M, C)
        col = lax.broadcasted_iota(jnp.int32, (M, C), 0) % W
        left = jnp.where(col != 0, pltpu.roll(hf, 1, 0), 0.0)
        right = jnp.where(col != W - 1, pltpu.roll(hf, M - 1, 0), 0.0)
        left = left.reshape(NB, H, W, C)
        right = right.reshape(NB, H, W, C)
    else:
        # Fallback (misaligned slices) for W not a multiple of 8.
        zw = jnp.zeros((NB, H, 1, C), jnp.float32)
        hp = jnp.concatenate([zw, h, zw], axis=2)
        left, right = hp[:, :, 0:W], hp[:, :, 2:W + 2]

    def widen(a):
        """f32 (NB,H,W,C) -> bf16 (NB,H,W,Cp): cast + zero-extend channels."""
        a = a.astype(jnp.bfloat16)
        if Cp != C:
            a = jnp.concatenate(
                [a, jnp.zeros((NB, H, W, Cp - C), jnp.bfloat16)], axis=-1)
        return a

    # K axis layout = [x-1 block | x block | x+1 block], each Cp wide  -> 3*Cp
    win = jnp.concatenate([widen(left), widen(h), widen(right)], axis=-1)
    zrow = jnp.zeros((NB, 1, W, 3 * Cp), jnp.bfloat16)
    winp = jnp.concatenate([zrow, win, zrow], axis=1)  # (NB, H+2, W, 3*Cp) bf16

    # ---- 3x3 conv: 3 matmuls with K = 3*Cp; acc initialized by the dy=0 tap.
    # (window build is hoisted, so the per-dy operand is a cheap aligned slice;
    #  the 3-tap loop stays unrolled without the live-range blowup.)
    acc = jnp.dot(winp[:, 0:H].reshape(M, 3 * Cp), w1_ref[0],
                  preferred_element_type=jnp.float32)
    for dy in range(1, 3):
        acc = acc + jnp.dot(winp[:, dy:dy + H].reshape(M, 3 * Cp), w1_ref[dy],
                            preferred_element_type=jnp.float32)

    s1 = sb_ref[0:1, :]
    b1 = sb_ref[1:2, :]
    s2 = sb_ref[2:3, :]
    b2 = sb_ref[3:4, :]

    # conv bias + BatchNorm #1 (folded), ReLU      (f32 elementwise path)
    y = jnp.maximum(acc * s1 + b1, 0.0)

    # Conv2d 1x1 (channel matmul), then conv bias + BatchNorm #2 (folded)
    z = jnp.dot(y.astype(jnp.bfloat16), w2_ref[...],
                preferred_element_type=jnp.float32)
    z = z * s2 + b2
    z = z.reshape(NB, H, W, Cp)
    if Cp != C:
        z = z[..., :C]

    # residual add (exact f32), write only the C real channels back to HBM
    o_ref[...] = x + z


def resblock_forward(x_nhwc, folded):
    """x_nhwc: (N, H, W, C) float32, NHWC end-to-end. Returns (N, H, W, C)."""
    w1r, w2, sb = folded
    N, H, W, C = x_nhwc.shape
    Cp = w2.shape[0]
    x = x_nhwc.astype(jnp.float32)

    vmem_cap = _vmem_capacity_bytes()
    NB = _pick_batch_block(N, H, W, C, Cp, vmem_cap)

    out = pl.pallas_call(
        resblock_kernel,
        out_shape=jax.ShapeDtypeStruct((N, H, W, C), jnp.float32),
        grid_spec=pltpu.PrefetchScalarGridSpec(
            num_scalar_prefetch=0,
            grid=(N // NB,),
            in_specs=[
                pl.BlockSpec((NB, H, W, C), lambda n: (n, 0, 0, 0)),   # x
                pl.BlockSpec((3, 3 * Cp, Cp), lambda n: (0, 0, 0)),    # w1r
                pl.BlockSpec((Cp, Cp), lambda n: (0, 0)),              # w2
                pl.BlockSpec((4, Cp), lambda n: (0, 0)),               # sb
            ],
            out_specs=pl.BlockSpec((NB, H, W, C), lambda n: (n, 0, 0, 0)),
        ),
        compiler_params=pltpu.CompilerParams(
            dimension_semantics=("parallel",),
            vmem_limit_bytes=_vmem_limit_bytes(vmem_cap)),
    )(x, w1r, w2, sb)
    return out


def init_raw_params(key, dim):
    """Deterministic synthetic parameters (shapes from the module __init__)."""
    ks = jax.random.split(key, 12)
    p = {}
    # Conv2d(dim, dim, 3): weight stored as (kh, kw, Cin, Cout) = HWIO
    p["w1"] = 0.1 * jax.random.normal(ks[0], (3, 3, dim, dim), jnp.float32)
    p["cb1"] = 0.1 * jax.random.normal(ks[1], (dim,), jnp.float32)
    # BatchNorm2d(dim) #1
    p["g1"] = 1.0 + 0.1 * jax.random.normal(ks[2], (dim,), jnp.float32)
    p["beta1"] = 0.1 * jax.random.normal(ks[3], (dim,), jnp.float32)
    p["rm1"] = 0.1 * jax.random.normal(ks[4], (dim,), jnp.float32)
    p["rv1"] = 0.5 + jnp.abs(jax.random.normal(ks[5], (dim,), jnp.float32))
    # Conv2d(dim, dim, 1): weight as (Cin, Cout)
    p["w2"] = 0.1 * jax.random.normal(ks[6], (dim, dim), jnp.float32)
    p["cb2"] = 0.1 * jax.random.normal(ks[7], (dim,), jnp.float32)
    # BatchNorm2d(dim) #2
    p["g2"] = 1.0 + 0.1 * jax.random.normal(ks[8], (dim,), jnp.float32)
    p["beta2"] = 0.1 * jax.random.normal(ks[9], (dim,), jnp.float32)
    p["rm2"] = 0.1 * jax.random.normal(ks[10], (dim,), jnp.float32)
    p["rv2"] = 0.5 + jnp.abs(jax.random.normal(ks[11], (dim,), jnp.float32))
    return p


def fold_params(p):
    """Fold conv bias + eval-mode BN into per-channel scale/shift, pad weights
    to a lane-dense channel width Cp (Cp ideally a multiple of 256 on v6e/v7x
    to fill the 256-wide MXU output), reshape the 3x3 weights so (kw, Cin)
    lives on the K axis, and cast matmul weights to bf16."""
    s1 = p["g1"] / jnp.sqrt(p["rv1"] + EPS)
    b1 = (p["cb1"] - p["rm1"]) * s1 + p["beta1"]
    s2 = p["g2"] / jnp.sqrt(p["rv2"] + EPS)
    b2 = (p["cb2"] - p["rm2"]) * s2 + p["beta2"]

    C = s1.shape[0]
    Cp = max(LANE, _round_up(C, LANE))
    pc = Cp - C

    # (3, 3, Cp, Cp) -> (3, 3*Cp, Cp): K axis = [kw0 | kw1 | kw2] x Cin blocks.
    w1p = jnp.pad(p["w1"], ((0, 0), (0, 0), (0, pc), (0, pc)))
    w1r = w1p.reshape(3, 3 * Cp, Cp).astype(jnp.bfloat16)

    w2p = jnp.pad(p["w2"], ((0, pc), (0, pc))).astype(jnp.bfloat16)

    # Padded channels get scale=0, bias=0 (their block output is exactly 0).
    pad1 = lambda v: jnp.pad(v, ((0, pc),))
    sb = jnp.stack([pad1(s1), pad1(b1), pad1(s2), pad1(b2)], axis=0)  # (4, Cp)
    return w1r, w2p, sb.astype(jnp.float32)


def resblock_ref(x_nhwc, p):
    """Pure-JAX NHWC reference (same eval-mode BN semantics)."""
    x = x_nhwc
    h = jax.nn.relu(x)
    y = jax.lax.conv_general_dilated(
        h, p["w1"], window_strides=(1, 1), padding="SAME",
        dimension_numbers=("NHWC", "HWIO", "NHWC")) + p["cb1"]
    y = (y - p["rm1"]) / jnp.sqrt(p["rv1"] + EPS) * p["g1"] + p["beta1"]
    y = jax.nn.relu(y)
    z = jnp.einsum("nhwc,cd->nhwd", y, p["w2"]) + p["cb2"]
    z = (z - p["rm2"]) / jnp.sqrt(p["rv2"] + EPS) * p["g2"] + p["beta2"]
    return x + z


if __name__ == "__main__":
    # NHWC end-to-end (no NCHW<->NHWC relayout passes around the kernel).
    N, H, W, C = 2, 16, 16, 4
    key = jax.random.PRNGKey(0)
    kx, kp = jax.random.split(key)
    x = jax.random.normal(kx, (N, H, W, C), jnp.float32)

    raw = init_raw_params(kp, C)
    folded = fold_params(raw)

    out = jax.block_until_ready(resblock_forward(x, folded))
    ref = jax.block_until_ready(resblock_ref(x, raw))

    # bf16 matmul operands -> loosened tolerance vs. the f32 reference.
    np.testing.assert_allclose(np.asarray(out), np.asarray(ref),
                               rtol=2e-2, atol=2e-2)
    print("KERNEL_OK")
</pallas_src>

<mosaic_0001>
module attributes {stable_mosaic.version = 11 : i64} {
  func.func @resblock_kernel(%arg0: i32, %arg1: memref<1x16x16x4xf32, #tpu.memory_space<vmem>>, %arg2: memref<3x384x128xbf16, #tpu.memory_space<vmem>>, %arg3: memref<128x128xbf16, #tpu.memory_space<vmem>>, %arg4: memref<4x128xf32, #tpu.memory_space<vmem>>, %arg5: memref<1x16x16x4xf32, #tpu.memory_space<vmem>>) attributes {dimension_semantics = [#tpu.dimension_semantics<parallel>], iteration_bounds = array<i64: 2>, scalar_prefetch = 0 : i64, scratch_operands = 0 : i64, tpu.core_type = #tpu.core_type<tc>, window_params = [{transform_indices = @transform_0, window_bounds = array<i64: 1, 16, 16, 4>}, {pipeline_mode = #tpu.pipeline_mode<synchronous>, transform_indices = @transform_1, window_bounds = array<i64: 3, 384, 128>}, {pipeline_mode = #tpu.pipeline_mode<synchronous>, transform_indices = @transform_2, window_bounds = array<i64: 128, 128>}, {pipeline_mode = #tpu.pipeline_mode<synchronous>, transform_indices = @transform_3, window_bounds = array<i64: 4, 128>}, {transform_indices = @transform_4, window_bounds = array<i64: 1, 16, 16, 4>}]} {
    %c0 = arith.constant 0 : index
    %c0_0 = arith.constant 0 : index
    %c0_1 = arith.constant 0 : index
    %c0_2 = arith.constant 0 : index
    %0 = vector.load %arg1[%c0, %c0_0, %c0_1, %c0_2] : memref<1x16x16x4xf32, #tpu.memory_space<vmem>>, vector<1x16x16x4xf32>
    %cst = arith.constant 0.000000e+00 : f32
    %1 = vector.broadcast %cst : f32 to vector<1x16x16x4xf32>
    %2 = arith.maximumf %0, %1 : vector<1x16x16x4xf32>
    %3 = vector.shape_cast %2 : vector<1x16x16x4xf32> to vector<256x4xf32>
    %4 = tpu.iota {dimensions = array<i32: 0>} : vector<256x4xi32>
    %c16_i32 = arith.constant 16 : i32
    %c0_i32 = arith.constant 0 : i32
    %5 = arith.cmpi eq, %c16_i32, %c0_i32 : i32
    %c1_i32 = arith.constant 1 : i32
    %6 = arith.select %5, %c1_i32, %c16_i32 : i32
    %7 = vector.broadcast %6 : i32 to vector<256x4xi32>
    %8 = arith.remsi %4, %7 : vector<256x4xi32>
    %c0_i32_3 = arith.constant 0 : i32
    %9 = vector.broadcast %c0_i32_3 : i32 to vector<256x4xi32>
    %10 = arith.cmpi ne, %8, %9 : vector<256x4xi32>
    %c0_i32_4 = arith.constant 0 : i32
    %11 = vector.broadcast %c0_i32_4 : i32 to vector<256x4xi32>
    %12 = arith.cmpi slt, %8, %11 : vector<256x4xi32>
    %c0_i32_5 = arith.constant 0 : i32
    %13 = arith.cmpi slt, %6, %c0_i32_5 : i32
    %14 = vector.broadcast %13 : i1 to vector<256x4xi1>
    %15 = vector.broadcast %14 : vector<256x4xi1> to vector<256x4xi1>
    %16 = arith.xori %12, %15 : vector<256x4xi1>
    %17 = arith.andi %16, %10 : vector<256x4xi1>
    %18 = vector.broadcast %6 : i32 to vector<256x4xi32>
    %19 = arith.addi %8, %18 : vector<256x4xi32>
    %20 = arith.select %17, %19, %8 : vector<256x4xi1>, vector<256x4xi32>
    %c0_i32_6 = arith.constant 0 : i32
    %21 = vector.broadcast %c0_i32_6 : i32 to vector<256x4xi32>
    %22 = arith.cmpi ne, %20, %21 : vector<256x4xi32>
    %c1_i32_7 = arith.constant 1 : i32
    %23 = tpu.dynamic_rotate %3 by %c1_i32_7 dim 0 : vector<256x4xf32>, i32 -> vector<256x4xf32>
    %cst_8 = arith.constant 0.000000e+00 : f32
    %24 = vector.broadcast %cst_8 : f32 to vector<256x4xf32>
    %25 = arith.select %22, %23, %24 : vector<256x4xi1>, vector<256x4xf32>
    %c15_i32 = arith.constant 15 : i32
    %26 = vector.broadcast %c15_i32 : i32 to vector<256x4xi32>
    %27 = arith.cmpi ne, %20, %26 : vector<256x4xi32>
    %c255_i32 = arith.constant 255 : i32
    %28 = tpu.dynamic_rotate %3 by %c255_i32 dim 0 : vector<256x4xf32>, i32 -> vector<256x4xf32>
    %cst_9 = arith.constant 0.000000e+00 : f32
    %29 = vector.broadcast %cst_9 : f32 to vector<256x4xf32>
    %30 = arith.select %27, %28, %29 : vector<256x4xi1>, vector<256x4xf32>
    %31 = vector.shape_cast %25 : vector<256x4xf32> to vector<1x16x16x4xf32>
    %32 = vector.shape_cast %30 : vector<256x4xf32> to vector<1x16x16x4xf32>
    %33 = arith.truncf %31 : vector<1x16x16x4xf32> to vector<1x16x16x4xbf16>
    %cst_10 = arith.constant 0.000000e+00 : bf16
    %34 = vector.broadcast %cst_10 : bf16 to vector<1x16x16x124xbf16>
    %35 = tpu.concatenate %33, %34 in 3 : vector<1x16x16x4xbf16>, vector<1x16x16x124xbf16> -> vector<1x16x16x128xbf16>
    %36 = arith.truncf %2 : vector<1x16x16x4xf32> to vector<1x16x16x4xbf16>
    %cst_11 = arith.constant 0.000000e+00 : bf16
    %37 = vector.broadcast %cst_11 : bf16 to vector<1x16x16x124xbf16>
    %38 = tpu.concatenate %36, %37 in 3 : vector<1x16x16x4xbf16>, vector<1x16x16x124xbf16> -> vector<1x16x16x128xbf16>
    %39 = arith.truncf %32 : vector<1x16x16x4xf32> to vector<1x16x16x4xbf16>
    %cst_12 = arith.constant 0.000000e+00 : bf16
    %40 = vector.broadcast %cst_12 : bf16 to vector<1x16x16x124xbf16>
    %41 = tpu.concatenate %39, %40 in 3 : vector<1x16x16x4xbf16>, vector<1x16x16x124xbf16> -> vector<1x16x16x128xbf16>
    %42 = tpu.concatenate %35, %38, %41 in 3 : vector<1x16x16x128xbf16>, vector<1x16x16x128xbf16>, vector<1x16x16x128xbf16> -> vector<1x16x16x384xbf16>
    %cst_13 = arith.constant 0.000000e+00 : bf16
    %43 = vector.broadcast %cst_13 : bf16 to vector<1x1x16x384xbf16>
    %44 = tpu.concatenate %43, %42, %43 in 1 : vector<1x1x16x384xbf16>, vector<1x16x16x384xbf16>, vector<1x1x16x384xbf16> -> vector<1x18x16x384xbf16>
    %45 = vector.extract_strided_slice %44 {offsets = [0, 0, 0, 0], sizes = [1, 16, 16, 384], strides = [1, 1, 1, 1]} : vector<1x18x16x384xbf16> to vector<1x16x16x384xbf16>
    %46 = vector.shape_cast %45 : vector<1x16x16x384xbf16> to vector<256x384xbf16>
    %c0_14 = arith.constant 0 : index
    %c0_15 = arith.constant 0 : index
    %c0_16 = arith.constant 0 : index
    %47 = vector.load %arg2[%c0_14, %c0_15, %c0_16] : memref<3x384x128xbf16, #tpu.memory_space<vmem>>, vector<1x384x128xbf16>
    %48 = vector.shape_cast %47 : vector<1x384x128xbf16> to vector<384x128xbf16>
    %cst_17 = arith.constant dense<0.000000e+00> : vector<256x128xf32>
    %49 = tpu.matmul %46, %48, %cst_17 {dimension_numbers = #tpu.dot_dimension_numbers<[1], [0], [0], [1], [0, 0, 1, 1], [], []>} : vector<256x384xbf16>, vector<384x128xbf16>, vector<256x128xf32> -> vector<256x128xf32>
    %50 = vector.extract_strided_slice %44 {offsets = [0, 1, 0, 0], sizes = [1, 16, 16, 384], strides = [1, 1, 1, 1]} : vector<1x18x16x384xbf16> to vector<1x16x16x384xbf16>
    %51 = vector.shape_cast %50 : vector<1x16x16x384xbf16> to vector<256x384xbf16>
    %c1 = arith.constant 1 : index
    %c0_18 = arith.constant 0 : index
    %c0_19 = arith.constant 0 : index
    %52 = vector.load %arg2[%c1, %c0_18, %c0_19] : memref<3x384x128xbf16, #tpu.memory_space<vmem>>, vector<1x384x128xbf16>
    %53 = vector.shape_cast %52 : vector<1x384x128xbf16> to vector<384x128xbf16>
    %cst_20 = arith.constant dense<0.000000e+00> : vector<256x128xf32>
    %54 = tpu.matmul %51, %53, %cst_20 {dimension_numbers = #tpu.dot_dimension_numbers<[1], [0], [0], [1], [0, 0, 1, 1], [], []>} : vector<256x384xbf16>, vector<384x128xbf16>, vector<256x128xf32> -> vector<256x128xf32>
    %55 = arith.addf %49, %54 : vector<256x128xf32>
    %56 = vector.extract_strided_slice %44 {offsets = [0, 2, 0, 0], sizes = [1, 16, 16, 384], strides = [1, 1, 1, 1]} : vector<1x18x16x384xbf16> to vector<1x16x16x384xbf16>
    %57 = vector.shape_cast %56 : vector<1x16x16x384xbf16> to vector<256x384xbf16>
    %c2 = arith.constant 2 : index
    %c0_21 = arith.constant 0 : index
    %c0_22 = arith.constant 0 : index
    %58 = vector.load %arg2[%c2, %c0_21, %c0_22] : memref<3x384x128xbf16, #tpu.memory_space<vmem>>, vector<1x384x128xbf16>
    %59 = vector.shape_cast %58 : vector<1x384x128xbf16> to vector<384x128xbf16>
    %cst_23 = arith.constant dense<0.000000e+00> : vector<256x128xf32>
    %60 = tpu.matmul %57, %59, %cst_23 {dimension_numbers = #tpu.dot_dimension_numbers<[1], [0], [0], [1], [0, 0, 1, 1], [], []>} : vector<256x384xbf16>, vector<384x128xbf16>, vector<256x128xf32> -> vector<256x128xf32>
    %61 = arith.addf %55, %60 : vector<256x128xf32>
    %c0_24 = arith.constant 0 : index
    %c0_25 = arith.constant 0 : index
    %62 = vector.load %arg4[%c0_24, %c0_25] : memref<4x128xf32, #tpu.memory_space<vmem>>, vector<1x128xf32>
    %c1_26 = arith.constant 1 : index
    %c0_27 = arith.constant 0 : index
    %63 = vector.load %arg4[%c1_26, %c0_27] : memref<4x128xf32, #tpu.memory_space<vmem>>, vector<1x128xf32>
    %c2_28 = arith.constant 2 : index
    %c0_29 = arith.constant 0 : index
    %64 = vector.load %arg4[%c2_28, %c0_29] : memref<4x128xf32, #tpu.memory_space<vmem>>, vector<1x128xf32>
    %c3 = arith.constant 3 : index
    %c0_30 = arith.constant 0 : index
    %65 = vector.load %arg4[%c3, %c0_30] : memref<4x128xf32, #tpu.memory_space<vmem>>, vector<1x128xf32>
    %66 = vector.broadcast %62 : vector<1x128xf32> to vector<256x128xf32>
    %67 = arith.mulf %61, %66 : vector<256x128xf32>
    %68 = vector.broadcast %63 : vector<1x128xf32> to vector<256x128xf32>
    %69 = arith.addf %67, %68 : vector<256x128xf32>
    %cst_31 = arith.constant 0.000000e+00 : f32
    %70 = vector.broadcast %cst_31 : f32 to vector<256x128xf32>
    %71 = arith.maximumf %69, %70 : vector<256x128xf32>
    %72 = arith.truncf %71 : vector<256x128xf32> to vector<256x128xbf16>
    %c0_32 = arith.constant 0 : index
    %c0_33 = arith.constant 0 : index
    %73 = vector.load %arg3[%c0_32, %c0_33] : memref<128x128xbf16, #tpu.memory_space<vmem>>, vector<128x128xbf16>
    %cst_34 = arith.constant dense<0.000000e+00> : vector<256x128xf32>
    %74 = tpu.matmul %72, %73, %cst_34 {dimension_numbers = #tpu.dot_dimension_numbers<[1], [0], [0], [1], [0, 0, 1, 1], [], []>} : vector<256x128xbf16>, vector<128x128xbf16>, vector<256x128xf32> -> vector<256x128xf32>
    %75 = vector.broadcast %64 : vector<1x128xf32> to vector<256x128xf32>
    %76 = arith.mulf %74, %75 : vector<256x128xf32>
    %77 = vector.broadcast %65 : vector<1x128xf32> to vector<256x128xf32>
    %78 = arith.addf %76, %77 : vector<256x128xf32>
    %79 = vector.shape_cast %78 : vector<256x128xf32> to vector<1x16x16x128xf32>
    %80 = vector.extract_strided_slice %79 {offsets = [0, 0, 0, 0], sizes = [1, 16, 16, 4], strides = [1, 1, 1, 1]} : vector<1x16x16x128xf32> to vector<1x16x16x4xf32>
    %81 = arith.addf %0, %80 : vector<1x16x16x4xf32>
    %c0_35 = arith.constant 0 : index
    %c0_36 = arith.constant 0 : index
    %c0_37 = arith.constant 0 : index
    %c0_38 = arith.constant 0 : index
    %82 = vector.load %arg5[%c0_35, %c0_36, %c0_37, %c0_38] : memref<1x16x16x4xf32, #tpu.memory_space<vmem>>, vector<1x16x16x4xf32>
    tpu.vector_store %arg5[%c0_35, %c0_36, %c0_37, %c0_38], %81 {strides = array<i32>} : memref<1x16x16x4xf32, #tpu.memory_space<vmem>>, vector<1x16x16x4xf32>,
    return
  }
  func.func @transform_0(%arg0: i32) -> (i32, i32, i32, i32) {
    %c0_i32 = arith.constant 0 : i32
    %c0_i32_0 = arith.constant 0 : i32
    %c0_i32_1 = arith.constant 0 : i32
    %c0_i32_2 = arith.constant 0 : i32
    return %arg0, %c0_i32, %c0_i32_0, %c0_i32_1 : i32, i32, i32, i32
  }
  func.func @transform_1(%arg0: i32) -> (i32, i32, i32) {
    %c0_i32 = arith.constant 0 : i32
    %c0_i32_0 = arith.constant 0 : i32
    %c0_i32_1 = arith.constant 0 : i32
    %c0_i32_2 = arith.constant 0 : i32
    return %c0_i32, %c0_i32_0, %c0_i32_1 : i32, i32, i32
  }
  func.func @transform_2(%arg0: i32) -> (i32, i32) {
    %c0_i32 = arith.constant 0 : i32
    %c0_i32_0 = arith.constant 0 : i32
    %c0_i32_1 = arith.constant 0 : i32
    return %c0_i32, %c0_i32_0 : i32, i32
  }
  func.func @transform_3(%arg0: i32) -> (i32, i32) {
    %c0_i32 = arith.constant 0 : i32
    %c0_i32_0 = arith.constant 0 : i32
    %c0_i32_1 = arith.constant 0 : i32
    return %c0_i32, %c0_i32_0 : i32, i32
  }
  func.func @transform_4(%arg0: i32) -> (i32, i32, i32, i32) {
    %c0_i32 = arith.constant 0 : i32
    %c0_i32_0 = arith.constant 0 : i32
    %c0_i32_1 = arith.constant 0 : i32
    %c0_i32_2 = arith.constant 0 : i32
    return %arg0, %c0_i32, %c0_i32_0, %c0_i32_1 : i32, i32, i32, i32
  }
}

</mosaic_0001>

<bundles_post_ra>
// kernel: tpu_custom_call.1
= control target key start
LH: loop header
LB: loop body
LE: loop exit
PB: predicated region body
PF: predicated region fallthrough
CT: control target
= control target key end

     0   :  { %9 = vsyncpa [#allocation3], 0  ;;  %s4104_s15 = smov 0   ;;  %s5629_s0 = inlined_call_operand.vmem [shape: f32[2,16,16,4], index: 0, kind: input, shape index: {}]   ;;  %s5630_s1 = inlined_call_operand.vmem [shape: bf16[3,384,128], index: 1, kind: input, shape index: {}]   ;;  %s5631_s2 = inlined_call_operand.vmem [shape: bf16[128,128], index: 2, kind: input, shape index: {}]   ;;  %s5632_s3 = inlined_call_operand.hbm [shape: f32[4,128], index: 3, kind: input, shape index: {}]   ;;  %s5633_s4 = inlined_call_operand.vmem [shape: f32[2,16,16,4], index: 4, kind: output, shape index: {}]  }
   0x1 LB: > { %s3314_s16 = sadd.s32 4294967295, %s4075_s15   ;;  %p3316_p0 = scmp.ge.s32.totalorder %s4075_s15, 1  ;;  %s4075_s15 = sphi %s4104_s15, %s15_s15  }
   0x2   : > { %p135_p1 = scmp.lt.s32.totalorder %s4075_s15, 3  ;;  %s153_s19 = sshll.u32 %s5632_s3, 4  ;;  %s154_s19 = int_to_ptr.hbm [resolvable:$true] %s153_s19 }
   0x3   : > { %p3987_p3 = scmp.eq.s32.totalorder %s3314_s16, 0  ;;  %s4077_s20 = smov [#allocation2]  }
   0x4   : > { %p136_p2 = pnand %p3316_p0, %p135_p1  ;;  %s155_s21 = sshll.u32 %s4077_s20, 4  ;;  %s156_s21 = int_to_ptr.vmem [resolvable:$true] %s155_s21 }
   0x6   : > { %p3983_p4 = pneg %p136_p2  ;;  %176 = sbr.rel (%p136_p2) target bundleno = 966 (0x3c6), region = 36 }
   0x8   : > { %p3984_p5 = pnand %p3987_p3, %p3983_p4 }
   0xa   : > { %3986 = dma.hbm_to_vmem [thread:$0]  (!%p3984_p5), %s154_s19, 64, %s156_s21, [#allocation3]  }
   0xb   : > { %4070 = dma.done.wait (%p3987_p3), [#allocation3], 64  }
   0xc   : > { %4072 = vsyncadd (%p3987_p3), [#allocation3], 4294967232  ;;  %p203_p6 = scmp.lt.s32.totalorder %s3314_s16, 1  ;;  %v278_v0 = vlaneseq  ;;  %v3914_v1 = vld [vmem:[%s5630_s1 + $0xf8] sm:$0xff]  ;;  %v3913_v4 = vld [vmem:[%s5630_s1 + $0xf0] sm:$0xff]  ;;  %vm1065_vm3 = vcmask 31744  }
   0xd   : > { %v3922_v2 = vld [vmem:[%s5630_s1 + $0x138] sm:$0xff]  ;;  %1676 = vmatpush.bf16.msra.mxu0 %v3914_v1  ;;  %3963 = vmatpush.bf16.msra.mxu2 %v3914_v1  ;;  %v3921_v5 = vld [vmem:[%s5630_s1 + $0x130] sm:$0xff]  ;;  %v3912_v6 = vld [vmem:[%s5630_s1 + $0xe8] sm:$0xff] }
   0xe   : > { %s5808_s16 = smov (!%p203_p6, %s3314_s16), 1  ;;  %v4124_v3 = vshrl.u32 %v278_v0, 7  ;;  %1765 = vmatpush.bf16.msra.mxu1 %v3922_v2  ;;  %3971 = vmatpush.bf16.msra.mxu3 %v3922_v2  ;;  %v3920_v14 = vld [vmem:[%s5630_s1 + $0x128] sm:$0xff]  ;;  %v3911_v19 = vld [vmem:[%s5630_s1 + $0xe0] sm:$0xff]  ;;  %v3910_v30 = vld [vmem:[%s5630_s1 + $0xd8] sm:$0xff] }
   0xf   : > { %s3881_s22 = sshll.u32 %s5808_s16, 8  ;;  %v3919_v20 = vld [vmem:[%s5630_s1 + $0x120] sm:$0xff]  ;;  %v3918_v32 = vld [vmem:[%s5630_s1 + $0x118] sm:$0xff]  ;;  %v3909_v36 = vld [vmem:[%s5630_s1 + $0xd0] sm:$0xff] }
  0x10   : > { %s4134_s5 = scalar_lea.vmem %s5629_s0, %s3881_s22  ;;  %v295_v9 = vadd.s32 128, %v4124_v3  ;;  %v315_v22 = vand.u32 15, %v4124_v3  ;;  %vm759_vm0 = vcmp.lt.s32.totalorder %v4124_v3, 1  ;;  %v3917_v40 = vld [vmem:[%s5630_s1 + $0x110] sm:$0xff]  ;;  %v281_v45 = vadd.s32 16, %v4124_v3  ;;  %v3908_v50 = vld [vmem:[%s5630_s1 + $0xc8] sm:$0xff]  ;;  %s5418_s8 = scalar_lea.vmem %s5633_s4, %s3881_s22 }
  0x11   : > { %v214_v7 = vld [vmem:[%s4134_s5] sm:$0xff]  ;;  %v215_v8 = vld [vmem:[%s4134_s5 + $0x8] sm:$0xff]  ;;  %1677 = vmatpush.bf16.msra.mxu0 %v3913_v4  ;;  %3964 = vmatpush.bf16.msra.mxu2 %v3913_v4  ;;  %v245_v10 = vld [vmem:[%s4134_s5 + $0xf8] sm:$0xff]  ;;  %v297_v58 = vadd.s32 144, %v4124_v3 }
  0x12   : > { %v4146_v11 = vmax.f32 %v214_v7, 0.0  ;;  %v229_v12 = vld [vmem:[%s4134_s5 + $0x78] sm:$0xff]  ;;  %v230_v13 = vld [vmem:[%s4134_s5 + $0x80] sm:$0xff]  ;;  %1766 = vmatpush.bf16.msra.mxu1 %v3921_v5  ;;  %3972 = vmatpush.bf16.msra.mxu3 %v3921_v5  ;;  %v4153_v15 = vmax.f32 %v245_v10, 0.0  ;;  %v231_v16 = vld [vmem:[%s4134_s5 + $0x88] sm:$0xff]  ;;  %v4166_v21 = vmax.f32 %v215_v8, 0.0 }
  0x13   : > { %v4156_v17 = vmax.f32 %v229_v12, 0.0  ;;  %v4158_v18 = vmax.f32 %v230_v13, 0.0  ;;  %v427_v24 = vand.u32 15, %v295_v9  ;;  %v4171_v26 = vmax.f32 %v231_v16, 0.0  ;;  %v216_v41 = vld [vmem:[%s4134_s5 + $0x10] sm:$0xff]  ;;  %v217_v53 = vld [vmem:[%s4134_s5 + $0x18] sm:$0xff] }
  0x14   : > { %v727_v23 = vrot.slane %v4146_v11, 7  ;;  %v5634_v25 = vrot.slane %v4153_v15, 7  ;;  %v728_v29 = vrot.slane %v4166_v21, 7  ;;  %vm695_vm1 = vcmp.ne.s32.totalorder %v315_v22, 0  ;;  %v232_v46 = vld [vmem:[%s4134_s5 + $0x90] sm:$0xff]  ;;  %v3916_v55 = vld [vmem:[%s5630_s1 + $0x108] sm:$0xff] }
  0x15   : > { %1678 = vmatpush.bf16.msra.mxu0 %v3912_v6  ;;  %3965 = vmatpush.bf16.msra.mxu2 %v3912_v6  ;;  %v5635_v27 = vrot.slane %v4156_v17, 7  ;;  %v743_v28 = vrot.slane %v4158_v18, 7  ;;  %v744_v31 = vrot.slane %v4171_v26, 7  ;;  %vm711_vm2 = vcmp.ne.s32.totalorder %v427_v24, 0  ;;  %v233_v56 = vld [vmem:[%s4134_s5 + $0x98] sm:$0xff]  ;;  %v3907_v4 = vld [vmem:[%s5630_s1 + $0xc0] sm:$0xff] }
  0x16   : > { %1767 = vmatpush.bf16.msra.mxu1 %v3920_v14  ;;  %3973 = vmatpush.bf16.msra.mxu3 %v3920_v14  ;;  %v791_v33 = vsel %vm759_vm0, %v5634_v25, %v727_v23  ;;  %v790_v35 = vsel %vm759_vm0, %v727_v23, %v728_v29  ;;  %v1115_v43 = vpack.c.bf16 %v4146_v11, %v4146_v11  ;;  %v4221_v54 = vmax.f32 %v216_v41, 0.0  ;;  %v3915_v9 = vld [vmem:[%s5630_s1 + $0x100] sm:$0xff]  ;;  %v3930_v13 = vld [vmem:[%s5630_s1 + $0x178] sm:$0xff] }
  0x17   : > { %v775_v34 = vsel %vm759_vm0, %v5635_v27, %v743_v28  ;;  %v792_v37 = vsel %vm695_vm1, %v791_v33, 0.0  ;;  %v774_v38 = vsel %vm759_vm0, %v743_v28, %v744_v31  ;;  %v954_v42 = vpack.c.bf16 %v790_v35, %v790_v35  ;;  %v3890_v14 = vld [vmem:[%s5630_s1 + $0x38] sm:$0xff]  ;;  %v3889_v33 = vld [vmem:[%s5630_s1 + $0x30] sm:$0xff] }
  0x18   : > { %v808_v39 = vsel %vm711_vm2, %v775_v34, 0.0  ;;  %v1116_v44 = vpack.c.bf16 %v4166_v21, %v4166_v21  ;;  %v953_v47 = vpack.c.bf16 %v792_v37, %v792_v37  ;;  %v970_v49 = vpack.c.bf16 %v774_v38, %v774_v38  ;;  %v3897_v38 = vld [vmem:[%s5630_s1 + $0x70] sm:$0xff] }
  0x19   : > { %1679 = vmatpush.bf16.msra.mxu0 %v3911_v19  ;;  %3966 = vmatpush.bf16.msra.mxu2 %v3911_v19  ;;  %v969_v48 = vpack.c.bf16 %v808_v39, %v808_v39  ;;  %v1131_v51 = vpack.c.bf16 %v4158_v18, %v4158_v18  ;;  %v1132_v52 = vpack.c.bf16 %v4171_v26, %v4171_v26  ;;  %v4227_v57 = vmax.f32 %v232_v46, 0.0  ;;  %v218_v39 = vld [vmem:[%s4134_s5 + $0x20] sm:$0xff] }
  0x1a   : > { %1768 = vmatpush.bf16.msra.mxu1 %v3919_v20  ;;  %3974 = vmatpush.bf16.msra.mxu3 %v3919_v20  ;;  %v1018_v59 = vunpack.c.l.b16 %v954_v42  ;;  %v1179_v60 = vunpack.c.l.b16 %v1115_v43  ;;  %v1180_v61 = vunpack.c.l.b16 %v1116_v44  ;;  %v329_v62 = vand.u32 15, %v281_v45  ;;  %v234_v43 = vld [vmem:[%s4134_s5 + $0xa0] sm:$0xff]  ;;  %v3928_v44 = vld [vmem:[%s5630_s1 + $0x168] sm:$0xff] }
  0x1b   : > { %v1017_v63 = vunpack.c.l.b16 %v953_v47  ;;  %v1033_v0 = vunpack.c.l.b16 %v969_v48  ;;  %v1034_v1 = vunpack.c.l.b16 %v970_v49  ;;  %v4230_v2 = vmax.f32 %v217_v53, 0.0  ;;  %v3888_v45 = vld [vmem:[%s5630_s1 + $0x28] sm:$0xff] }
  0x1c   : > { %v1195_v5 = vunpack.c.l.b16 %v1131_v51  ;;  %v1196_v6 = vunpack.c.l.b16 %v1132_v52  ;;  %v729_v7 = vrot.slane %v4221_v54, 7  ;;  %v4236_v8 = vmax.f32 %v233_v56, 0.0  ;;  %v235_v53 = vld [vmem:[%s4134_s5 + $0xa8] sm:$0xff] }
  0x1d   : > { %1680 = vmatpush.bf16.msra.mxu0 %v3910_v30  ;;  %3967 = vmatpush.bf16.msra.mxu2 %v3910_v30  ;;  %v441_v10 = vand.u32 15, %v297_v58  ;;  %v745_v12 = vrot.slane %v4227_v57, 7  ;;  %v4248_v16 = vpack.c.b16 %v1018_v59, %v1017_v63  ;;  %v4250_v19 = vpack.c.b16 %v1034_v1, %v1033_v0  ;;  %v3898_v30 = vld [vmem:[%s5630_s1 + $0x78] sm:$0xff]  ;;  %v3896_v58 = vld [vmem:[%s5630_s1 + $0x68] sm:$0xff] }
  0x1e   : > { %1769 = vmatpush.bf16.msra.mxu1 %v3918_v32  ;;  %3975 = vmatpush.bf16.msra.mxu3 %v3918_v32  ;;  %v4252_v20 = vpack.c.b16 %v1180_v61, %v1179_v60  ;;  %v730_v22 = vrot.slane %v4230_v2, 7  ;;  %v4255_v23 = vpack.c.b16 %v1196_v6, %v1195_v5  ;;  %vm697_vm4 = vcmp.ne.s32.totalorder %v329_v62, 0 }
  0x1f   : > { %5685 = vst [vmem:[#allocation5_spill] sm:$0xff] %v4250_v19  ;;  %v789_v24 = vsel %vm759_vm0, %v728_v29, %v729_v7  ;;  %v746_v28 = vrot.slane %v4236_v8, 7  ;;  %vm713_vm5 = vcmp.ne.s32.totalorder %v441_v10, 0  ;;  %v773_v32 = vsel %vm759_vm0, %v744_v31, %v745_v12  ;;  %v3929_v29 = vld [vmem:[%s5630_s1 + $0x170] sm:$0xff] }
  0x20   : > { %5686 = vst [vmem:[#allocation6_spill] sm:$0xff] %v4255_v23  ;;  %v788_v31 = vsel %vm759_vm0, %v729_v7, %v730_v22  ;;  %v794_v34 = vsel %vm697_vm4, %v789_v24, 0.0  ;;  %v1117_v37 = vpack.c.bf16 %v4221_v54, %v4221_v54  ;;  %v1118_v42 = vpack.c.bf16 %v4230_v2, %v4230_v2 }
  0x21   : > { %1681 = vmatpush.bf16.msra.mxu0 %v3909_v36  ;;  %3968 = vmatpush.bf16.msra.mxu2 %v3909_v36  ;;  %v772_v35 = vsel %vm759_vm0, %v745_v12, %v746_v28  ;;  %v810_v36 = vsel %vm713_vm5, %v773_v32, 0.0  ;;  %v956_v41 = vpack.c.bf16 %v788_v31, %v788_v31  ;;  %v1133_v48 = vpack.c.bf16 %v4227_v57, %v4227_v57 }
  0x22   : > { %1770 = vmatpush.bf16.msra.mxu1 %v3917_v40  ;;  %3976 = vmatpush.bf16.msra.mxu3 %v3917_v40  ;;  %v955_v40 = vpack.c.bf16 %v794_v34, %v794_v34  ;;  %v971_v46 = vpack.c.bf16 %v810_v36, %v810_v36  ;;  %v972_v47 = vpack.c.bf16 %v772_v35, %v772_v35  ;;  %v4311_v51 = vmax.f32 %v218_v39, 0.0  ;;  %v3927_v36 = vld [vmem:[%s5630_s1 + $0x160] sm:$0xff] }
  0x23   : > { %v1134_v49 = vpack.c.bf16 %v4236_v8, %v4236_v8  ;;  %v283_v52 = vadd.s32 32, %v4124_v3  ;;  %v299_v56 = vadd.s32 160, %v4124_v3  ;;  %v1020_v60 = vunpack.c.l.b16 %v956_v41 }
  0x24   : > { %v1019_v59 = vunpack.c.l.b16 %v955_v40  ;;  %v1181_v61 = vunpack.c.l.b16 %v1117_v37  ;;  %v1182_v62 = vunpack.c.l.b16 %v1118_v42  ;;  %v1035_v63 = vunpack.c.l.b16 %v971_v46  ;;  %v3887_v37 = vld [vmem:[%s5630_s1 + $0x20] sm:$0xff]  ;;  %v220_v40 = vld [vmem:[%s4134_s5 + $0x30] sm:$0xff] }
  0x25   : > { %1682 = vmatpush.bf16.msra.mxu0 %v3908_v50  ;;  %3969 = vmatpush.bf16.msra.mxu2 %v3908_v50  ;;  %v219_v50 = vld [vmem:[%s4134_s5 + $0x28] sm:$0xff]  ;;  %v1036_v0 = vunpack.c.l.b16 %v972_v47  ;;  %v1197_v1 = vunpack.c.l.b16 %v1133_v48  ;;  %v1198_v5 = vunpack.c.l.b16 %v1134_v49  ;;  %v343_v6 = vand.u32 15, %v283_v52  ;;  %v221_v49 = vld [vmem:[%s4134_s5 + $0x38] sm:$0xff] }
  0x26   : > { %1771 = vmatpush.bf16.msra.mxu1 %v3916_v55  ;;  %3977 = vmatpush.bf16.msra.mxu3 %v3916_v55  ;;  %v4315_v55 = vmax.f32 %v234_v43, 0.0  ;;  %v731_v7 = vrot.slane %v4311_v51, 7  ;;  %v455_v10 = vand.u32 15, %v299_v56  ;;  %v4331_v24 = vpack.c.b16 %v1182_v62, %v1181_v61 }
  0x27   : > { %v4334_v32 = vpack.c.b16 %v1198_v5, %v1197_v1  ;;  %vm699_vm6 = vcmp.ne.s32.totalorder %v343_v6, 0  ;;  %v1119_v39 = vpack.c.bf16 %v4311_v51, %v4311_v51  ;;  %v285_v52 = vadd.s32 48, %v4124_v3 }
  0x28   : > { %v747_v12 = vrot.slane %v4315_v55, 7  ;;  %vm715_vm7 = vcmp.ne.s32.totalorder %v455_v10, 0  ;;  %v1135_v47 = vpack.c.bf16 %v4315_v55, %v4315_v55  ;;  %v4384_v1 = vmax.f32 %v221_v49, 0.0  ;;  %v238_v49 = vld [vmem:[%s4134_s5 + $0xc0] sm:$0xff] }
  0x29   : > { %1683 = vmatpush.bf16.msra.mxu0 %v3907_v4  ;;  %3970 = vmatpush.bf16.msra.mxu2 %v3907_v4  ;;  %v4321_v4 = vmax.f32 %v219_v50, 0.0  ;;  %5688 = vst [vmem:[#allocation8_spill] sm:$0xff] %v4334_v32  ;;  %v4377_v50 = vmax.f32 %v220_v40, 0.0  ;;  %v1183_v61 = vunpack.c.l.b16 %v1119_v39  ;;  %v357_v10 = vand.u32 15, %v285_v52 }
  0x2a   : > { %1772 = vmatpush.bf16.msra.mxu1 %v3915_v9  ;;  %3978 = vmatpush.bf16.msra.mxu3 %v3915_v9  ;;  %v4324_v9 = vmax.f32 %v235_v53, 0.0  ;;  %v771_v31 = vsel %vm759_vm0, %v746_v28, %v747_v12  ;;  %v237_v53 = vld [vmem:[%s4134_s5 + $0xb8] sm:$0xff]  ;;  %v1199_v6 = vunpack.c.l.b16 %v1135_v47 }
  0x2b   : > { %v812_v35 = vsel %vm715_vm7, %v771_v31, 0.0  ;;  %v1120_v43 = vpack.c.bf16 %v4321_v4, %v4321_v4  ;;  %v4386_v5 = vmax.f32 %v237_v53, 0.0  ;;  %vm701_vm8 = vcmp.ne.s32.totalorder %v357_v10, 0 }
  0x2c   : > { %3469 = vmatmul.msk.bf16.vlgmr.msra.gmra.mxu0 %vm1065_vm3, %v4248_v16  ;;  %3477 = vmatmul.msk.bf16.vlgmr.msra.gmra.mxu2 %vm1065_vm3, %v4250_v19  ;;  %v1136_v48 = vpack.c.bf16 %v4324_v9, %v4324_v9  ;;  %v1121_v53 = vpack.c.bf16 %v4377_v50, %v4377_v50 }
  0x2d   : > { %1854 = vmatpush.bf16.msrb.mxu2 %v3930_v13  ;;  %3485 = vmatmul.msk.bf16.vlgmr.msra.gmra.mxu1 %vm1065_vm3, %v4252_v20  ;;  %v4327_v13 = vpack.c.b16 %v1020_v60, %v1019_v59  ;;  %v1184_v62 = vunpack.c.l.b16 %v1120_v43  ;;  %5690 = vst [vmem:[#allocation10_spill] sm:$0xff] %v4386_v5  ;;  %v3886_v43 = vld [vmem:[%s5630_s1 + $0x18] sm:$0xff] }
  0x2e   : > { %2087 = vmatpush.bf16.msrb.mxu3 %v3890_v14  ;;  %2176 = vmatpush.bf16.msrb.mxu0 %v3898_v30  ;;  %v4329_v14 = vpack.c.b16 %v1036_v0, %v1035_v63  ;;  %v732_v30 = vrot.slane %v4321_v4, 7 }
  0x2f   : > { %3493 = vmatmul.msk.bf16.vlgmr.msra.gmra.mxu3 %vm1065_vm3, %v4255_v23 }
  0x30   : > { %5687 = vst [vmem:[#allocation7_spill] sm:$0xff] %v4329_v14  ;;  %v786_v34 = vsel %vm759_vm0, %v731_v7, %v732_v30 }
  0x31   : > { %1855 = vmatpush.bf16.msrb.mxu2 %v3929_v29  ;;  %v787_v29 = vsel %vm759_vm0, %v730_v22, %v731_v7  ;;  %v958_v42 = vpack.c.bf16 %v786_v34, %v786_v34  ;;  %v1200_v7 = vunpack.c.l.b16 %v1136_v48 }
  0x32   : > { %2088 = vmatpush.bf16.msrb.mxu3 %v3889_v33  ;;  %2177 = vmatpush.bf16.msrb.mxu0 %v3897_v38  ;;  %v748_v33 = vrot.slane %v4324_v9, 7  ;;  %v796_v22 = vsel %vm699_vm6, %v787_v29, 0.0  ;;  %v3895_v38 = vld [vmem:[%s5630_s1 + $0x60] sm:$0xff] }
  0x33   : > { %v957_v41 = vpack.c.bf16 %v796_v22, %v796_v22  ;;  %v1022_v60 = vunpack.c.l.b16 %v958_v42 }
  0x34   : > { %v770_v28 = vsel %vm759_vm0, %v747_v12, %v748_v33  ;;  %v733_v12 = vrot.slane %v4377_v50, 7 }
  0x35   : > { %1856 = vmatpush.bf16.msrb.mxu2 %v3928_v44  ;;  %v236_v44 = vld [vmem:[%s4134_s5 + $0xb0] sm:$0xff]  ;;  %v974_v46 = vpack.c.bf16 %v770_v28, %v770_v28  ;;  %v1021_v59 = vunpack.c.l.b16 %v957_v41  ;;  %v734_v28 = vrot.slane %v4384_v1, 7 }
  0x36   : > { %2089 = vmatpush.bf16.msrb.mxu3 %v3888_v45  ;;  %2178 = vmatpush.bf16.msrb.mxu0 %v3896_v58  ;;  %v973_v45 = vpack.c.bf16 %v812_v35, %v812_v35  ;;  %v4381_v56 = vmax.f32 %v236_v44, 0.0  ;;  %v301_v58 = vadd.s32 176, %v4124_v3  ;;  %v750_v35 = vrot.slane %v4386_v5, 7  ;;  %v3894_v44 = vld [vmem:[%s5630_s1 + $0x58] sm:$0xff] }
  0x37   : > { %v1038_v0 = vunpack.c.l.b16 %v974_v46  ;;  %v4390_v34 = vpack.c.b16 %v1022_v60, %v1021_v59  ;;  %v784_v40 = vsel %vm759_vm0, %v733_v12, %v734_v28  ;;  %v223_v59 = vld [vmem:[%s4134_s5 + $0x48] sm:$0xff] }
  0x38   : > { %5689 = vst [vmem:[#allocation9_spill] sm:$0xff] %v4381_v56  ;;  %v1037_v63 = vunpack.c.l.b16 %v973_v45  ;;  %v469_v29 = vand.u32 15, %v301_v58  ;;  %v749_v31 = vrot.slane %v4381_v56, 7  ;;  %v222_v45 = vld [vmem:[%s4134_s5 + $0x40] sm:$0xff]  ;;  %v960_v47 = vpack.c.bf16 %v784_v40, %v784_v40 }
  0x39   : > { %1857 = vmatpush.bf16.msrb.mxu2 %v3927_v36  ;;  %v4396_v36 = vpack.c.b16 %v1184_v62, %v1183_v61  ;;  %v1122_v58 = vpack.c.bf16 %v4384_v1, %v4384_v1  ;;  %v1137_v60 = vpack.c.bf16 %v4381_v56, %v4381_v56  ;;  %v1138_v61 = vpack.c.bf16 %v4386_v5, %v4386_v5 }
  0x3a   : > { %2090 = vmatpush.bf16.msrb.mxu3 %v3887_v37  ;;  %2179 = vmatpush.bf16.msrb.mxu0 %v3895_v38  ;;  %v4392_v22 = vpack.c.b16 %v1038_v0, %v1037_v63  ;;  %v4398_v37 = vpack.c.b16 %v1200_v7, %v1199_v6  ;;  %v785_v38 = vsel %vm759_vm0, %v732_v30, %v733_v12  ;;  %vm717_vm9 = vcmp.ne.s32.totalorder %v469_v29, 0  ;;  %v239_v0 = vld [vmem:[%s4134_s5 + $0xc8] sm:$0xff] }
  0x3b   : > { %v769_v39 = vsel %vm759_vm0, %v748_v33, %v749_v31  ;;  %v798_v41 = vsel %vm701_vm8, %v785_v38, 0.0  ;;  %v768_v42 = vsel %vm759_vm0, %v749_v31, %v750_v35  ;;  %v3926_v33 = vld [vmem:[%s5630_s1 + $0x158] sm:$0xff]  ;;  %v4436_v62 = vmax.f32 %v222_v45, 0.0 }
  0x3c   : > { %3470 = vmatmul.msk.bf16.gmra.mxu0 %vm1065_vm3, %v4327_v13  ;;  %3478 = vmatmul.msk.bf16.gmra.mxu2 %vm1065_vm3, %v4329_v14  ;;  %5691 = vst [vmem:[#allocation11_spill] sm:$0xff] %v4392_v22  ;;  %v814_v30 = vsel %vm717_vm9, %v769_v39, 0.0  ;;  %v959_v46 = vpack.c.bf16 %v798_v41, %v798_v41  ;;  %v976_v48 = vpack.c.bf16 %v768_v42, %v768_v42  ;;  %v287_v63 = vadd.s32 64, %v4124_v3 }
  0x3d   : > { %3486 = vmatmul.msk.bf16.gmra.mxu1 %vm1065_vm3, %v4331_v24  ;;  %5692 = vst [vmem:[#allocation12_spill] sm:$0xff] %v4398_v37  ;;  %1858 = vmatpush.bf16.msrb.mxu2 %v3926_v33  ;;  %v975_v52 = vpack.c.bf16 %v814_v30, %v814_v30  ;;  %v4440_v6 = vmax.f32 %v238_v49, 0.0  ;;  %v303_v7 = vadd.s32 192, %v4124_v3  ;;  %v1024_v12 = vunpack.c.l.b16 %v960_v47 }
  0x3e   : > { %2091 = vmatpush.bf16.msrb.mxu3 %v3886_v43  ;;  %2180 = vmatpush.bf16.msrb.mxu0 %v3894_v44  ;;  %v1023_v10 = vunpack.c.l.b16 %v959_v46  ;;  %v1040_v29 = vunpack.c.l.b16 %v976_v48  ;;  %v4443_v31 = vmax.f32 %v223_v59, 0.0  ;;  %v1185_v39 = vunpack.c.l.b16 %v1121_v53 }
  0x3f   : > { %3494 = vmatmul.msk.bf16.gmra.mxu3 %vm1065_vm3, %v4334_v32  ;;  %5693 = vst [vmem:[#allocation13_spill] sm:$0xff] %v4440_v6  ;;  %v1039_v38 = vunpack.c.l.b16 %v975_v52  ;;  %v1186_v40 = vunpack.c.l.b16 %v1122_v58  ;;  %v4445_v41 = vmax.f32 %v239_v0, 0.0  ;;  %v1201_v42 = vunpack.c.l.b16 %v1137_v60  ;;  %v3885_v0 = vld [vmem:[%s5630_s1 + $0x10] sm:$0xff] }
  0x40   : > { %v1202_v30 = vunpack.c.l.b16 %v1138_v61  ;;  %v371_v33 = vand.u32 15, %v287_v63  ;;  %v735_v43 = vrot.slane %v4436_v62, 7  ;;  %v483_v44 = vand.u32 15, %v303_v7  ;;  %v3893_v7 = vld [vmem:[%s5630_s1 + $0x50] sm:$0xff] }
  0x41   : > { %5694 = vst [vmem:[#allocation14_spill] sm:$0xff] %v4445_v41  ;;  %v751_v45 = vrot.slane %v4440_v6, 7  ;;  %v736_v49 = vrot.slane %v4443_v31, 7  ;;  %v4450_v46 = vpack.c.b16 %v1024_v12, %v1023_v10  ;;  %v4452_v47 = vpack.c.b16 %v1040_v29, %v1039_v38  ;;  %v224_v12 = vld [vmem:[%s4134_s5 + $0x50] sm:$0xff] }
  0x42   : > { %v752_v48 = vrot.slane %v4445_v41, 7  ;;  %v4455_v52 = vpack.c.b16 %v1186_v40, %v1185_v39  ;;  %v4457_v53 = vpack.c.b16 %v1202_v30, %v1201_v42  ;;  %vm703_vm10 = vcmp.ne.s32.totalorder %v371_v33, 0  ;;  %v240_v40 = vld [vmem:[%s4134_s5 + $0xd0] sm:$0xff]  ;;  %2092 = vmatpush.bf16.msrb.mxu3 %v3885_v0  ;;  %2181 = vmatpush.bf16.msrb.mxu0 %v3893_v7 }
  0x43   : > { %5695 = vst [vmem:[#allocation15_spill] sm:$0xff] %v4452_v47  ;;  %v783_v58 = vsel %vm759_vm0, %v734_v28, %v735_v43  ;;  %vm719_vm11 = vcmp.ne.s32.totalorder %v483_v44, 0  ;;  %v767_v59 = vsel %vm759_vm0, %v750_v35, %v751_v45  ;;  %v782_v60 = vsel %vm759_vm0, %v735_v43, %v736_v49  ;;  %v3925_v35 = vld [vmem:[%s5630_s1 + $0x150] sm:$0xff]  ;;  %v225_v44 = vld [vmem:[%s4134_s5 + $0x58] sm:$0xff] }
  0x44   : > { %5696 = vst [vmem:[#allocation16_spill] sm:$0xff] %v4457_v53  ;;  %v800_v61 = vsel %vm703_vm10, %v783_v58, 0.0  ;;  %v766_v63 = vsel %vm759_vm0, %v751_v45, %v752_v48  ;;  %v816_v28 = vsel %vm719_vm11, %v767_v59, 0.0  ;;  %v962_v10 = vpack.c.bf16 %v782_v60, %v782_v60  ;;  %1859 = vmatpush.bf16.msrb.mxu2 %v3925_v35  ;;  %v241_v59 = vld [vmem:[%s4134_s5 + $0xd8] sm:$0xff] }
  0x45   : > { %v961_v29 = vpack.c.bf16 %v800_v61, %v800_v61  ;;  %v978_v38 = vpack.c.bf16 %v766_v63, %v766_v63  ;;  %v1123_v39 = vpack.c.bf16 %v4436_v62, %v4436_v62  ;;  %v977_v42 = vpack.c.bf16 %v816_v28, %v816_v28 }
  0x46   : > { %v1124_v30 = vpack.c.bf16 %v4443_v31, %v4443_v31  ;;  %v1139_v33 = vpack.c.bf16 %v4440_v6, %v4440_v6  ;;  %v1140_v43 = vpack.c.bf16 %v4445_v41, %v4445_v41  ;;  %v4495_v45 = vmax.f32 %v224_v12, 0.0 }
  0x47   : > { %v289_v58 = vadd.s32 80, %v4124_v3  ;;  %v4499_v60 = vmax.f32 %v240_v40, 0.0  ;;  %v305_v61 = vadd.s32 208, %v4124_v3  ;;  %v1025_v63 = vunpack.c.l.b16 %v961_v29 }
  0x48   : > { %v1026_v28 = vunpack.c.l.b16 %v962_v10  ;;  %v1042_v35 = vunpack.c.l.b16 %v978_v38  ;;  %v1187_v0 = vunpack.c.l.b16 %v1123_v39  ;;  %v1041_v7 = vunpack.c.l.b16 %v977_v42 }
  0x49   : > { %5697 = vst [vmem:[#allocation17_spill] sm:$0xff] %v4499_v60  ;;  %v1188_v25 = vunpack.c.l.b16 %v1124_v30  ;;  %v4502_v27 = vmax.f32 %v225_v44, 0.0  ;;  %v1204_v12 = vunpack.c.l.b16 %v1140_v43  ;;  %v497_v41 = vand.u32 15, %v305_v61  ;;  %v3906_v43 = vld [vmem:[%s5630_s1 + $0xb8] sm:$0xff]  ;;  %v226_v61 = vld [vmem:[%s4134_s5 + $0x60] sm:$0xff] }
  0x4a   : > { %v753_v40 = vrot.slane %v4499_v60, 7  ;;  %v4508_v14 = vpack.c.b16 %v1026_v28, %v1025_v63  ;;  %v4510_v29 = vpack.c.b16 %v1042_v35, %v1041_v7  ;;  %v242_v63 = vld [vmem:[%s4134_s5 + $0xe0] sm:$0xff]  ;;  %v1125_v35 = vpack.c.bf16 %v4495_v45, %v4495_v45  ;;  %2265 = vmatpush.bf16.msrb.mxu1 %v3906_v43 }
  0x4b   : > { %v738_v10 = vrot.slane %v4502_v27, 7  ;;  %v4514_v39 = vpack.c.b16 %v1188_v25, %v1187_v0  ;;  %vm721_vm13 = vcmp.ne.s32.totalorder %v497_v41, 0  ;;  %v1126_v0 = vpack.c.bf16 %v4502_v27, %v4502_v27 }
  0x4c   : > { %3471 = vmatmul.msk.bf16.gmra.mxu0 %vm1065_vm3, %v4390_v34  ;;  %3479 = vmatmul.msk.bf16.gmra.mxu2 %vm1065_vm3, %v4392_v22  ;;  %v385_v22 = vand.u32 15, %v289_v58  ;;  %5699 = vst [vmem:[#allocation19_spill] sm:$0xff] %v4510_v29  ;;  %v1141_v7 = vpack.c.bf16 %v4499_v60, %v4499_v60  ;;  %v1189_v43 = vunpack.c.l.b16 %v1125_v35 }
  0x4d   : > { %3487 = vmatmul.msk.bf16.gmra.mxu1 %vm1065_vm3, %v4396_v36  ;;  %5700 = vst [vmem:[#allocation20_spill] sm:$0xff] %v4514_v39 }
  0x4e   : > { %vm705_vm12 = vcmp.ne.s32.totalorder %v385_v22, 0 }
  0x4f   : > { %3495 = vmatmul.msk.bf16.gmra.mxu3 %vm1065_vm3, %v4398_v37  ;;  %v737_v37 = vrot.slane %v4495_v45, 7 }
  0x51   : > { %v781_v30 = vsel %vm759_vm0, %v736_v49, %v737_v37  ;;  %v780_v25 = vsel %vm759_vm0, %v737_v37, %v738_v10  ;;  %v3924_v49 = vld [vmem:[%s5630_s1 + $0x148] sm:$0xff] }
  0x52   : > { %v3884_v37 = vld [vmem:[%s5630_s1 + $0x8] sm:$0xff]  ;;  %v964_v58 = vpack.c.bf16 %v780_v25, %v780_v25  ;;  %1860 = vmatpush.bf16.msrb.mxu2 %v3924_v49 }
  0x53   : > { %2093 = vmatpush.bf16.msrb.mxu3 %v3884_v37  ;;  %v243_v25 = vld [vmem:[%s4134_s5 + $0xe8] sm:$0xff] }
  0x54   : > { %v1028_v49 = vunpack.c.l.b16 %v964_v58  ;;  %v4568_v32 = vmax.f32 %v243_v25, 0.0  ;;  %v3904_v25 = vld [vmem:[%s5630_s1 + $0xa8] sm:$0xff] }
  0x56   : > { %5703 = vst [vmem:[#allocation23_spill] sm:$0xff] %v4568_v32  ;;  %v756_v35 = vrot.slane %v4568_v32, 7 }
  0x5c   : > { %3472 = vmatmul.msk.bf16.gmra.mxu0 %vm1065_vm3, %v4450_v46  ;;  %3480 = vmatmul.msk.bf16.gmra.mxu2 %vm1065_vm3, %v4452_v47  ;;  %v4504_v47 = vmax.f32 %v241_v59, 0.0 }
  0x5d   : > { %3488 = vmatmul.msk.bf16.gmra.mxu1 %vm1065_vm3, %v4455_v52 }
  0x5e   : > { %5698 = vst [vmem:[#allocation18_spill] sm:$0xff] %v4504_v47  ;;  %v5647_v38 = vrot.slane %v4504_v47, 7 }
  0x5f   : > { %3496 = vmatmul.msk.bf16.gmra.mxu3 %vm1065_vm3, %v4457_v53  ;;  %v1203_v53 = vunpack.c.l.b16 %v1139_v33  ;;  %v765_v33 = vsel %vm759_vm0, %v752_v48, %v753_v40  ;;  %v3892_v48 = vld [vmem:[%s5630_s1 + $0x48] sm:$0xff] }
  0x60   : > { %v764_v22 = vsel %vm759_vm0, %v753_v40, %v5647_v38  ;;  %v818_v41 = vsel %vm721_vm13, %v765_v33, 0.0  ;;  %2182 = vmatpush.bf16.msrb.mxu0 %v3892_v48  ;;  %v227_v40 = vld [vmem:[%s4134_s5 + $0x68] sm:$0xff]  ;;  %v291_v33 = vadd.s32 96, %v4124_v3  ;;  %v1190_v38 = vunpack.c.l.b16 %v1126_v0 }
  0x61   : > { %v4516_v42 = vpack.c.b16 %v1204_v12, %v1203_v53  ;;  %v802_v53 = vsel %vm705_vm12, %v781_v30, 0.0  ;;  %v980_v59 = vpack.c.bf16 %v764_v22, %v764_v22  ;;  %v979_v28 = vpack.c.bf16 %v818_v41, %v818_v41 }
  0x62   : > { %v963_v44 = vpack.c.bf16 %v802_v53, %v802_v53  ;;  %v1142_v12 = vpack.c.bf16 %v4504_v47, %v4504_v47  ;;  %v4559_v30 = vmax.f32 %v226_v61, 0.0  ;;  %v4563_v53 = vmax.f32 %v242_v63, 0.0 }
  0x63   : > { %5701 = vst [vmem:[#allocation21_spill] sm:$0xff] %v4516_v42  ;;  %v307_v22 = vadd.s32 224, %v4124_v3  ;;  %v1043_v37 = vunpack.c.l.b16 %v979_v28  ;;  %v1044_v48 = vunpack.c.l.b16 %v980_v59  ;;  %v4566_v60 = vmax.f32 %v227_v40, 0.0  ;;  %v3923_v40 = vld [vmem:[%s5630_s1 + $0x140] sm:$0xff] }
  0x64   : > { %5702 = vst [vmem:[#allocation22_spill] sm:$0xff] %v4563_v53  ;;  %v1027_v41 = vunpack.c.l.b16 %v963_v44  ;;  %v399_v61 = vand.u32 15, %v291_v33  ;;  %v739_v6 = vrot.slane %v4559_v30, 7  ;;  %v755_v63 = vrot.slane %v4563_v53, 7  ;;  %v3883_v33 = vld [vmem:[%s5630_s1] sm:$0xff]  ;;  %1861 = vmatpush.bf16.msrb.mxu2 %v3923_v40 }
  0x65   : > { %v511_v5 = vand.u32 15, %v307_v22  ;;  %v4574_v44 = vpack.c.b16 %v1044_v48, %v1043_v37  ;;  %v4576_v58 = vpack.c.b16 %v1190_v38, %v1189_v43  ;;  %v740_v28 = vrot.slane %v4566_v60, 7  ;;  %v228_v22 = vld [vmem:[%s4134_s5 + $0x70] sm:$0xff]  ;;  %2094 = vmatpush.bf16.msrb.mxu3 %v3883_v33 }
  0x66   : > { %v4572_v19 = vpack.c.b16 %v1028_v49, %v1027_v41  ;;  %vm707_vm14 = vcmp.ne.s32.totalorder %v399_v61, 0  ;;  %v779_v0 = vsel %vm759_vm0, %v738_v10, %v739_v6  ;;  %v762_v38 = vsel %vm759_vm0, %v755_v63, %v756_v35  ;;  %v244_v41 = vld [vmem:[%s4134_s5 + $0xf0] sm:$0xff] }
  0x67   : > { %5704 = vst [vmem:[#allocation24_spill] sm:$0xff] %v4574_v44  ;;  %vm723_vm15 = vcmp.ne.s32.totalorder %v511_v5, 0  ;;  %v778_v5 = vsel %vm759_vm0, %v739_v6, %v740_v28  ;;  %v804_v10 = vsel %vm707_vm14, %v779_v0, 0.0  ;;  %v3891_v6 = vld [vmem:[%s5630_s1 + $0x40] sm:$0xff]  ;;  %v982_v43 = vpack.c.bf16 %v762_v38, %v762_v38 }
  0x68   : > { %v965_v49 = vpack.c.bf16 %v804_v10, %v804_v10  ;;  %v966_v37 = vpack.c.bf16 %v778_v5, %v778_v5  ;;  %2183 = vmatpush.bf16.msrb.mxu0 %v3891_v6  ;;  %v1127_v61 = vpack.c.bf16 %v4559_v30, %v4559_v30  ;;  %v1143_v0 = vpack.c.bf16 %v4563_v53, %v4563_v53  ;;  %v3903_v38 = vld [vmem:[%s5630_s1 + $0xa0] sm:$0xff] }
  0x69   : > { %v4628_v5 = vmax.f32 %v244_v41, 0.0  ;;  %v309_v10 = vadd.s32 240, %v4124_v3  ;;  %v1046_v6 = vunpack.c.l.b16 %v982_v43 }
  0x6a   : > { %v1030_v40 = vunpack.c.l.b16 %v966_v37 }
  0x6b   : > { %v525_v41 = vand.u32 15, %v309_v10  ;;  %v757_v23 = vrot.slane %v4628_v5, 7 }
  0x6c   : > { %3473 = vmatmul.msk.bf16.gmra.mxu0 %vm1065_vm3, %v4508_v14  ;;  %3481 = vmatmul.msk.bf16.gmra.mxu2 %vm1065_vm3, %v4510_v29  ;;  %v1205_v29 = vunpack.c.l.b16 %v1141_v7  ;;  %v5706_v7 = vrot.slane %v4504_v47, 7 }
  0x6d   : > { %3489 = vmatmul.msk.bf16.gmra.mxu1 %vm1065_vm3, %v4514_v39  ;;  %vm725_vm2 = vcmp.ne.s32.totalorder %v525_v41, 0  ;;  %v3954_v41 = vld [vmem:[%s5630_s1 + $0x238] sm:$0xff] }
  0x6e   : > { %2725 = vmatpush.bf16.msra.mxu0 %v3954_v41 }
  0x6f   : > { %3497 = vmatmul.msk.bf16.gmra.mxu3 %vm1065_vm3, %v4516_v42  ;;  %v1206_v42 = vunpack.c.l.b16 %v1142_v12  ;;  %v763_v12 = vsel %vm759_vm0, %v5706_v7, %v755_v63  ;;  %v1128_v63 = vpack.c.bf16 %v4566_v60, %v4566_v60  ;;  %v1144_v7 = vpack.c.bf16 %v4568_v32, %v4568_v32 }
  0x70   : > { %v1207_v32 = vunpack.c.l.b16 %v1143_v0  ;;  %v3938_v0 = vld [vmem:[%s5630_s1 + $0x1b8] sm:$0xff] }
  0x71   : > { %v4578_v59 = vpack.c.b16 %v1206_v42, %v1205_v29  ;;  %v3905_v29 = vld [vmem:[%s5630_s1 + $0xb0] sm:$0xff]  ;;  %v820_v42 = vsel %vm723_vm15, %v763_v12, 0.0  ;;  %v4625_v12 = vmax.f32 %v228_v22, 0.0  ;;  %v1208_v22 = vunpack.c.l.b16 %v1144_v7  ;;  %v3946_v7 = vld [vmem:[%s5630_s1 + $0x1f8] sm:$0xff]  ;;  %2547 = vmatpush.bf16.msra.mxu2 %v3938_v0 }
  0x72   : > { %2266 = vmatpush.bf16.msrb.mxu1 %v3905_v29  ;;  %v981_v48 = vpack.c.bf16 %v820_v42, %v820_v42  ;;  %v293_v29 = vadd.s32 112, %v4124_v3  ;;  %v1029_v42 = vunpack.c.l.b16 %v965_v49  ;;  %v3902_v49 = vld [vmem:[%s5630_s1 + $0x98] sm:$0xff]  ;;  %2636 = vmatpush.bf16.msra.mxu3 %v3946_v7  ;;  %v857_v0 = vrot.slane %v4166_v21, 1 }
  0x73   : > { %5705 = vst [vmem:[#allocation25_spill] sm:$0xff] %v4578_v59  ;;  %v741_v47 = vrot.slane %v4625_v12, 7  ;;  %v858_v7 = vrot.slane %v4221_v54, 1 }
  0x74   : > { %v1045_v33 = vunpack.c.l.b16 %v981_v48  ;;  %v413_v53 = vand.u32 15, %v293_v29  ;;  %v4645_v48 = vpack.c.b16 %v1208_v22, %v1207_v32  ;;  %v3901_v32 = vld [vmem:[%s5630_s1 + $0x90] sm:$0xff]  ;;  %v280_v22 = vadd.s32 8, %v4124_v3 }
  0x75   : > { %v777_v43 = vsel %vm759_vm0, %v740_v28, %v741_v47  ;;  %v5711_v28 = vrot.slane %v4153_v15, 7 }
  0x76   : > { %2267 = vmatpush.bf16.msrb.mxu1 %v3904_v25  ;;  %v4636_v25 = vpack.c.b16 %v1030_v40, %v1029_v42  ;;  %v4638_v56 = vpack.c.b16 %v1046_v6, %v1045_v33  ;;  %vm709_vm1 = vcmp.ne.s32.totalorder %v413_v53, 0  ;;  %v5710_v53 = vrot.slane %v4156_v17, 7 }
  0x77   : > { %v1129_v42 = vpack.c.bf16 %v4625_v12, %v4625_v12  ;;  %v1130_v40 = vpack.c.bf16 %v4156_v17, %v4156_v17  ;;  %v1145_v33 = vpack.c.bf16 %v4628_v5, %v4628_v5  ;;  %v1146_v6 = vpack.c.bf16 %v4153_v15, %v4153_v15 }
  0x78   : > { %5707 = vst [vmem:[#allocation26_spill] sm:$0xff] %v4636_v25 }
  0x79   : > { %5708 = vst [vmem:[#allocation27_spill] sm:$0xff] %v4638_v56 }
  0x7a   : > { %2268 = vmatpush.bf16.msrb.mxu1 %v3903_v38 }
  0x7c   : > { %3474 = vmatmul.msk.bf16.gmra.mxu0 %vm1065_vm3, %v4572_v19  ;;  %3482 = vmatmul.msk.bf16.gmra.mxu2 %vm1065_vm3, %v4574_v44  ;;  %v1191_v44 = vunpack.c.l.b16 %v1127_v61  ;;  %v761_v61 = vsel %vm759_vm0, %v756_v35, %v757_v23  ;;  %v760_v35 = vsel %vm759_vm0, %v757_v23, %v5711_v28  ;;  %v3900_v23 = vld [vmem:[%s5630_s1 + $0x88] sm:$0xff]  ;;  %v1209_v28 = vunpack.c.l.b16 %v1145_v33 }
  0x7d   : > { %3490 = vmatmul.msk.bf16.gmra.mxu1 %vm1065_vm3, %v4576_v58  ;;  %v984_v38 = vpack.c.bf16 %v760_v35, %v760_v35  ;;  %v1210_v35 = vunpack.c.l.b16 %v1146_v6  ;;  %v282_v33 = vadd.s32 24, %v4124_v3 }
  0x7e   : > { %2269 = vmatpush.bf16.msrb.mxu1 %v3902_v49  ;;  %v3899_v49 = vld [vmem:[%s5630_s1 + $0x80] sm:$0xff] }
  0x7f   : > { %3498 = vmatmul.msk.bf16.gmra.mxu3 %vm1065_vm3, %v4578_v59  ;;  %v1192_v59 = vunpack.c.l.b16 %v1128_v63  ;;  %v822_v63 = vsel %vm725_vm2, %v761_v61, 0.0  ;;  %v336_v41 = vand.u32 15, %v282_v33 }
  0x80   : > { %v983_v10 = vpack.c.bf16 %v822_v63, %v822_v63  ;;  %v322_v63 = vand.u32 15, %v280_v22 }
  0x81   : > { %v4643_v37 = vpack.c.b16 %v1192_v59, %v1191_v44  ;;  %v776_v44 = vsel %vm759_vm0, %v741_v47, %v5710_v53  ;;  %v806_v59 = vsel %vm709_vm1, %v777_v43, 0.0  ;;  %v1048_v53 = vunpack.c.l.b16 %v984_v38 }
  0x82   : > { %2270 = vmatpush.bf16.msrb.mxu1 %v3901_v32  ;;  %v967_v29 = vpack.c.bf16 %v806_v59, %v806_v59  ;;  %v968_v47 = vpack.c.bf16 %v776_v44, %v776_v44  ;;  %v1047_v32 = vunpack.c.l.b16 %v983_v10  ;;  %v1193_v44 = vunpack.c.l.b16 %v1129_v42 }
  0x83   : > { %5709 = vst [vmem:[#allocation28_spill] sm:$0xff] %v4643_v37  ;;  %v1194_v59 = vunpack.c.l.b16 %v1130_v40  ;;  %vm888_vm0 = vcmp.lt.s32.totalorder %v4124_v3, 7  ;;  %v5673_v10 = vrot.slane %v4146_v11, 1  ;;  %vm825_vm4 = vcmp.ne.s32.totalorder %v322_v63, 15  ;;  %v3945_v63 = vld [vmem:[%s5630_s1 + $0x1f0] sm:$0xff] }
  0x84   : > { %v1031_v43 = vunpack.c.l.b16 %v967_v29  ;;  %v1032_v61 = vunpack.c.l.b16 %v968_v47  ;;  %v4703_v47 = vpack.c.b16 %v1210_v35, %v1209_v28  ;;  %v918_v38 = vsel %vm888_vm0, %v857_v0, %v858_v7  ;;  %v3937_v35 = vld [vmem:[%s5630_s1 + $0x1b0] sm:$0xff]  ;;  %2637 = vmatpush.bf16.msra.mxu3 %v3945_v63 }
  0x85   : > { %v4701_v29 = vpack.c.b16 %v1194_v59, %v1193_v44  ;;  %v919_v21 = vsel %vm888_vm0, %v5673_v10, %v857_v0  ;;  %v922_v54 = vsel %vm825_vm4, %v918_v38, 0.0  ;;  %vm827_vm5 = vcmp.ne.s32.totalorder %v336_v41, 15  ;;  %2548 = vmatpush.bf16.msra.mxu2 %v3937_v35 }
  0x86   : > { %2271 = vmatpush.bf16.msrb.mxu1 %v3900_v23  ;;  %v4697_v23 = vpack.c.b16 %v1032_v61, %v1031_v43  ;;  %5715 = vst [vmem:[#allocation32_spill] sm:$0xff] %v4703_v47  ;;  %v1275_v42 = vpack.c.bf16 %v919_v21, %v919_v21  ;;  %v1276_v40 = vpack.c.bf16 %v922_v54, %v922_v54  ;;  %v860_v43 = vrot.slane %v4311_v51, 1 }
  0x87   : > { %5714 = vst [vmem:[#allocation31_spill] sm:$0xff] %v4701_v29  ;;  %v5671_v28 = vmov 0  }
  0x88   : > { %5712 = vst [vmem:[#allocation29_spill] sm:$0xff] %v4697_v23  ;;  %v1339_v6 = vunpack.c.l.b16 %v1275_v42  ;;  %v1340_v22 = vunpack.c.l.b16 %v1276_v40 }
  0x8a   : > { %2272 = vmatpush.bf16.msrb.mxu1 %v3899_v49  ;;  %v859_v49 = vrot.slane %v4230_v2, 1  ;;  %v1371_v61 = vpack.c.b16 %v1340_v22, %v1339_v6  ;;  %v3953_v22 = vld [vmem:[%s5630_s1 + $0x230] sm:$0xff] }
  0x8b   : > { %2726 = vmatpush.bf16.msra.mxu0 %v3953_v22 }
  0x8c   : > { %3475 = vmatmul.msk.bf16.gmra.mxu0 %vm1065_vm3, %v4636_v25  ;;  %3483 = vmatmul.msk.bf16.gmra.mxu2 %vm1065_vm3, %v4638_v56  ;;  %v4699_v56 = vpack.c.b16 %v1048_v53, %v1047_v32  ;;  %v916_v44 = vsel %vm888_vm0, %v859_v49, %v860_v43  ;;  %v917_v2 = vsel %vm888_vm0, %v858_v7, %v859_v49  ;;  %v284_v7 = vadd.s32 40, %v4124_v3 }
  0x8d   : > { %3491 = vmatmul.msk.bf16.gmra.mxu1 %vm1065_vm3, %v4643_v37  ;;  %v924_v51 = vsel %vm827_vm5, %v916_v44, 0.0  ;;  %v1277_v21 = vpack.c.bf16 %v917_v2, %v917_v2  ;;  %v862_v44 = vrot.slane %v4377_v50, 1 }
  0x8e   : > { %5713 = vst [vmem:[#allocation30_spill] sm:$0xff] %v4699_v56  ;;  %v1278_v54 = vpack.c.bf16 %v924_v51, %v924_v51 }
  0x8f   : > { %3499 = vmatmul.msk.bf16.gmra.mxu3 %vm1065_vm3, %v4645_v48  ;;  %v1341_v41 = vunpack.c.l.b16 %v1277_v21 }
  0x90   : > { %v1342_v49 = vunpack.c.l.b16 %v1278_v54 }
  0x92   : > { %v4749_v35 = vpack.c.b16 %v1342_v49, %v1341_v41 }
  0x9c   : > { %3476 = vmatmul.msk.bf16.gmra.mxu0 %vm1065_vm3, %v4697_v23  ;;  %3484 = vmatmul.msk.bf16.gmra.mxu2 %vm1065_vm3, %v4699_v56 }
  0x9d   : > { %3492 = vmatmul.msk.bf16.gmra.mxu1 %vm1065_vm3, %v4701_v29 }
  0x9f   : > { %3500 = vmatmul.msk.bf16.gmra.mxu3 %vm1065_vm3, %v4703_v47 }
  0xa9   : > { %v1685_v32 = vpop.f32.mrf.mxu0 }
  0xaa   : > { %v1774_v53 = vpop.f32.mrf.mxu1 }
  0xab   : > { %v4725_v59 = vadd.f32 %v1774_v53, %v1685_v32  ;;  %v350_v32 = vand.u32 15, %v284_v7  ;;  %v861_v53 = vrot.slane %v4321_v4, 1 }
  0xac   : > { %3501 = vmatmul.msk.bf16.vlgmr.msrb.gmra.mxu2 %vm1065_vm3, %v1371_v61  ;;  %2184 = vmatmul.bf16.vlgmr.msrb.gmra.mxu0 %v5671_v28 }
  0xad   : > { %2273 = vmatmul.bf16.vlgmr.msrb.gmra.mxu1 %v5671_v28  ;;  %vm829_vm6 = vcmp.ne.s32.totalorder %v350_v32, 15  ;;  %v915_v4 = vsel %vm888_vm0, %v860_v43, %v861_v53  ;;  %v864_v43 = vrot.slane %v4436_v62, 1 }
  0xae   : > { %v1279_v7 = vpack.c.bf16 %v915_v4, %v915_v4 }
  0xaf   : > { %2095 = vmatmul.bf16.vlgmr.msrb.gmra.mxu3 %v5671_v28  ;;  %v1725_v0 = vpop.f32.mrf.mxu2 }
  0xb1   : > { %v1687_v40 = vpop.f32.mrf.mxu0 }
  0xb2   : > { %v1814_v38 = vpop.f32.mrf.mxu3  ;;  %v1776_v33 = vpop.f32.mrf.mxu1 }
  0xb3   : > { %v4739_v42 = vadd.f32 %v1814_v38, %v1725_v0  ;;  %v4742_v6 = vadd.f32 %v1776_v33, %v1687_v40  ;;  %v914_v40 = vsel %vm888_vm0, %v861_v53, %v862_v44 }
  0xb4   : > { %v926_v50 = vsel %vm829_vm6, %v914_v40, 0.0 }
  0xb5   : > { %v1280_v22 = vpack.c.bf16 %v926_v50, %v926_v50 }
  0xb7   : > { %v1727_v2 = vpop.f32.mrf.mxu2 }
  0xb9   : > { %v1690_v0 = vpop.f32.mrf.mxu0 }
  0xba   : > { %v1816_v51 = vpop.f32.mrf.mxu3  ;;  %v1779_v38 = vpop.f32.mrf.mxu1 }
  0xbb   : > { %v4751_v63 = vadd.f32 %v1816_v51, %v1727_v2  ;;  %v4755_v21 = vadd.f32 %v1779_v38, %v1690_v0  ;;  %v286_v2 = vadd.s32 56, %v4124_v3  ;;  %v1343_v51 = vunpack.c.l.b16 %v1279_v7  ;;  %v3936_v7 = vld [vmem:[%s5630_s1 + $0x1a8] sm:$0xff] }
  0xbc   : > { %3502 = vmatmul.msk.bf16.gmra.mxu2 %vm1065_vm3, %v4749_v35  ;;  %3628 = vmatmul.msk.bf16.gmra.mxu0 %vm1065_vm3, %v4252_v20 }
  0xbd   : > { %3643 = vmatmul.msk.bf16.gmra.mxu1 %vm1065_vm3, %v1371_v61  ;;  %v364_v0 = vand.u32 15, %v286_v2  ;;  %v863_v61 = vrot.slane %v4384_v1, 1  ;;  %2549 = vmatpush.bf16.msra.mxu2 %v3936_v7 }
  0xbf   : > { %3613 = vmatmul.msk.bf16.gmra.mxu3 %vm1065_vm3, %v4248_v16  ;;  %v1730_v54 = vpop.f32.mrf.mxu2  ;;  %v1344_v16 = vunpack.c.l.b16 %v1280_v22  ;;  %vm831_vm7 = vcmp.ne.s32.totalorder %v364_v0, 15  ;;  %v913_v1 = vsel %vm888_vm0, %v862_v44, %v863_v61  ;;  %v3944_v22 = vld [vmem:[%s5630_s1 + $0x1e8] sm:$0xff]  ;;  %v288_v44 = vadd.s32 72, %v4124_v3 }
  0xc0   : > { %2638 = vmatpush.bf16.msra.mxu3 %v3944_v22  ;;  %v865_v22 = vrot.slane %v4443_v31, 1 }
  0xc1   : > { %v1692_v49 = vpop.f32.mrf.mxu0  ;;  %v4773_v40 = vpack.c.b16 %v1344_v16, %v1343_v51  ;;  %v1281_v51 = vpack.c.bf16 %v913_v1, %v913_v1  ;;  %v378_v7 = vand.u32 15, %v288_v44  ;;  %v866_v1 = vrot.slane %v4495_v45, 1 }
  0xc2   : > { %v1819_v33 = vpop.f32.mrf.mxu3  ;;  %v1781_v32 = vpop.f32.mrf.mxu1  ;;  %v911_v31 = vsel %vm888_vm0, %v864_v43, %v865_v22 }
  0xc3   : > { %v4766_v41 = vadd.f32 %v1819_v33, %v1730_v54  ;;  %v4769_v20 = vadd.f32 %v1781_v32, %v1692_v49  ;;  %v912_v33 = vsel %vm888_vm0, %v863_v61, %v864_v43  ;;  %vm833_vm8 = vcmp.ne.s32.totalorder %v378_v7, 15 }
  0xc4   : > { %v928_v62 = vsel %vm831_vm7, %v912_v33, 0.0  ;;  %v910_v10 = vsel %vm888_vm0, %v865_v22, %v866_v1  ;;  %v868_v43 = vrot.slane %v4559_v30, 1  ;;  %v3935_v30 = vld [vmem:[%s5630_s1 + $0x1a0] sm:$0xff] }
  0xc5   : > { %v1282_v16 = vpack.c.bf16 %v928_v62, %v928_v62  ;;  %v930_v45 = vsel %vm833_vm8, %v910_v10, 0.0  ;;  %2550 = vmatpush.bf16.msra.mxu2 %v3935_v30 }
  0xc7   : > { %v1732_v53 = vpop.f32.mrf.mxu2  ;;  %v1346_v33 = vunpack.c.l.b16 %v1282_v16 }
  0xc9   : > { %v1695_v50 = vpop.f32.mrf.mxu0 }
  0xca   : > { %v1821_v38 = vpop.f32.mrf.mxu3  ;;  %v1784_v54 = vpop.f32.mrf.mxu1 }
  0xcb   : > { %v4775_v4 = vadd.f32 %v1821_v38, %v1732_v53  ;;  %v4779_v49 = vadd.f32 %v1784_v54, %v1695_v50  ;;  %v3952_v50 = vld [vmem:[%s5630_s1 + $0x228] sm:$0xff]  ;;  %v1345_v54 = vunpack.c.l.b16 %v1281_v51 }
  0xcc   : > { %3503 = vmatmul.msk.bf16.gmra.mxu2 %vm1065_vm3, %v4773_v40  ;;  %3629 = vmatmul.msk.bf16.gmra.mxu0 %vm1065_vm3, %v4331_v24 }
  0xcd   : > { %3644 = vmatmul.msk.bf16.gmra.mxu1 %vm1065_vm3, %v4749_v35  ;;  %2727 = vmatpush.bf16.msra.mxu0 %v3952_v50  ;;  %v1283_v50 = vpack.c.bf16 %v911_v31, %v911_v31 }
  0xcf   : > { %3614 = vmatmul.msk.bf16.gmra.mxu3 %vm1065_vm3, %v4327_v13  ;;  %v1735_v32 = vpop.f32.mrf.mxu2 }
  0xd1   : > { %v1697_v53 = vpop.f32.mrf.mxu0 }
  0xd2   : > { %v1824_v2 = vpop.f32.mrf.mxu3  ;;  %v1786_v38 = vpop.f32.mrf.mxu1 }
  0xd3   : > { %v4797_v0 = vadd.f32 %v1824_v2, %v1735_v32  ;;  %v4800_v61 = vadd.f32 %v1786_v38, %v1697_v53  ;;  %v4807_v2 = vpack.c.b16 %v1346_v33, %v1345_v54  ;;  %v1284_v54 = vpack.c.bf16 %v930_v45, %v930_v45 }
  0xd5   : > { %5716 = vst [vmem:[#allocation33_spill] sm:$0xff] %v4797_v0  ;;  %v1348_v47 = vunpack.c.l.b16 %v1284_v54 }
  0xd7   : > { %v1737_v62 = vpop.f32.mrf.mxu2 }
  0xd9   : > { %v1700_v53 = vpop.f32.mrf.mxu0 }
  0xda   : > { %v1826_v32 = vpop.f32.mrf.mxu3  ;;  %v1789_v38 = vpop.f32.mrf.mxu1 }
  0xdb   : > { %v4809_v28 = vadd.f32 %v1826_v32, %v1737_v62  ;;  %v4813_v51 = vadd.f32 %v1789_v38, %v1700_v53  ;;  %v290_v32 = vadd.s32 88, %v4124_v3  ;;  %v1347_v38 = vunpack.c.l.b16 %v1283_v50 }
  0xdc   : > { %3504 = vmatmul.msk.bf16.gmra.mxu2 %vm1065_vm3, %v4807_v2  ;;  %3630 = vmatmul.msk.bf16.gmra.mxu0 %vm1065_vm3, %v4396_v36 }
  0xdd   : > { %5717 = vst [vmem:[#allocation34_spill] sm:$0xff] %v4809_v28  ;;  %3645 = vmatmul.msk.bf16.gmra.mxu1 %vm1065_vm3, %v4773_v40  ;;  %v392_v56 = vand.u32 15, %v290_v32  ;;  %v867_v28 = vrot.slane %v4502_v27, 1  ;;  %v4832_v0 = vpack.c.b16 %v1348_v47, %v1347_v38  ;;  %v3943_v47 = vld [vmem:[%s5630_s1 + $0x1e0] sm:$0xff] }
  0xde   : > { %2639 = vmatpush.bf16.msra.mxu3 %v3943_v47  ;;  %v869_v47 = vrot.slane %v4566_v60, 1 }
  0xdf   : > { %3615 = vmatmul.msk.bf16.gmra.mxu3 %vm1065_vm3, %v4390_v34  ;;  %v1740_v16 = vpop.f32.mrf.mxu2  ;;  %5719 = vst [vmem:[#allocation36_spill] sm:$0xff] %v4832_v0  ;;  %vm835_vm9 = vcmp.ne.s32.totalorder %v392_v56, 15  ;;  %v909_v27 = vsel %vm888_vm0, %v866_v1, %v867_v28 }
  0xe0   : > { %v907_v60 = vsel %vm888_vm0, %v868_v43, %v869_v47 }
  0xe1   : > { %v1702_v7 = vpop.f32.mrf.mxu0 }
  0xe2   : > { %v1829_v44 = vpop.f32.mrf.mxu3  ;;  %v1791_v62 = vpop.f32.mrf.mxu1 }
  0xe3   : > { %v4825_v33 = vadd.f32 %v1829_v44, %v1740_v16  ;;  %v4828_v53 = vadd.f32 %v1791_v62, %v1702_v7  ;;  %v908_v44 = vsel %vm888_vm0, %v867_v28, %v868_v43  ;;  %v1285_v62 = vpack.c.bf16 %v909_v27, %v909_v27 }
  0xe4   : > { %v932_v56 = vsel %vm835_vm9, %v908_v44, 0.0  ;;  %v292_v28 = vadd.s32 104, %v4124_v3  ;;  %v870_v27 = vrot.slane %v4625_v12, 1  ;;  %v872_v43 = vrot.slane %v4158_v18, 1 }
  0xe5   : > { %5718 = vst [vmem:[#allocation35_spill] sm:$0xff] %v4825_v33  ;;  %v1286_v32 = vpack.c.bf16 %v932_v56, %v932_v56 }
  0xe6   : > { %v406_v30 = vand.u32 15, %v292_v28 }
  0xe7   : > { %v1742_v10 = vpop.f32.mrf.mxu2  ;;  %v1350_v44 = vunpack.c.l.b16 %v1286_v32 }
  0xe8   : > { %vm837_vm10 = vcmp.ne.s32.totalorder %v406_v30, 15 }
  0xe9   : > { %v1705_v45 = vpop.f32.mrf.mxu0 }
  0xea   : > { %v1831_v22 = vpop.f32.mrf.mxu3  ;;  %v1794_v16 = vpop.f32.mrf.mxu1 }
  0xeb   : > { %v4834_v31 = vadd.f32 %v1831_v22, %v1742_v10  ;;  %v4838_v7 = vadd.f32 %v1794_v16, %v1705_v45  ;;  %v3951_v45 = vld [vmem:[%s5630_s1 + $0x220] sm:$0xff]  ;;  %v1349_v16 = vunpack.c.l.b16 %v1285_v62 }
  0xec   : > { %3505 = vmatmul.msk.bf16.gmra.mxu2 %vm1065_vm3, %v4832_v0  ;;  %3631 = vmatmul.msk.bf16.gmra.mxu0 %vm1065_vm3, %v4455_v52 }
  0xed   : > { %5720 = vst [vmem:[#allocation37_spill] sm:$0xff] %v4834_v31  ;;  %3646 = vmatmul.msk.bf16.gmra.mxu1 %vm1065_vm3, %v4807_v2  ;;  %2728 = vmatpush.bf16.msra.mxu0 %v3951_v45  ;;  %v906_v31 = vsel %vm888_vm0, %v869_v47, %v870_v27  ;;  %v1287_v45 = vpack.c.bf16 %v907_v60, %v907_v60 }
  0xee   : > { %v934_v12 = vsel %vm837_vm10, %v906_v31, 0.0 }
  0xef   : > { %3616 = vmatmul.msk.bf16.gmra.mxu3 %vm1065_vm3, %v4450_v46  ;;  %v1745_v50 = vpop.f32.mrf.mxu2 }
  0xf1   : > { %v1707_v10 = vpop.f32.mrf.mxu0 }
  0xf2   : > { %v1834_v54 = vpop.f32.mrf.mxu3  ;;  %v1796_v22 = vpop.f32.mrf.mxu1 }
  0xf3   : > { %v4856_v38 = vadd.f32 %v1834_v54, %v1745_v50  ;;  %v4859_v1 = vadd.f32 %v1796_v22, %v1707_v10  ;;  %v4866_v54 = vpack.c.b16 %v1350_v44, %v1349_v16  ;;  %v1288_v16 = vpack.c.bf16 %v934_v12, %v934_v12 }
  0xf5   : > { %5721 = vst [vmem:[#allocation38_spill] sm:$0xff] %v4856_v38 }
  0xf7   : > { %v1747_v56 = vpop.f32.mrf.mxu2 }
  0xf9   : > { %v1710_v10 = vpop.f32.mrf.mxu0 }
  0xfa   : > { %v1836_v50 = vpop.f32.mrf.mxu3  ;;  %v1799_v22 = vpop.f32.mrf.mxu1 }
  0xfb   : > { %v4868_v38 = vadd.f32 %v1836_v50, %v1747_v56  ;;  %v4872_v62 = vadd.f32 %v1799_v22, %v1710_v10  ;;  %v294_v50 = vadd.s32 120, %v4124_v3  ;;  %v1351_v22 = vunpack.c.l.b16 %v1287_v45 }
  0xfc   : > { %3506 = vmatmul.msk.bf16.gmra.mxu2 %vm1065_vm3, %v4866_v54  ;;  %3632 = vmatmul.msk.bf16.gmra.mxu0 %vm1065_vm3, %v4514_v39  ;;  %v871_v39 = vrot.slane %v4156_v17, 1 }
  0xfd   : > { %5722 = vst [vmem:[#allocation39_spill] sm:$0xff] %v4868_v38  ;;  %3647 = vmatmul.msk.bf16.gmra.mxu1 %vm1065_vm3, %v4832_v0  ;;  %v1352_v38 = vunpack.c.l.b16 %v1288_v16  ;;  %v420_v33 = vand.u32 15, %v294_v50 }
  0xfe   : > { %v905_v17 = vsel %vm888_vm0, %v870_v27, %v871_v39  ;;  %v3950_v27 = vld [vmem:[%s5630_s1 + $0x218] sm:$0xff] }
  0xff   : > { %3617 = vmatmul.msk.bf16.gmra.mxu3 %vm1065_vm3, %v4508_v14  ;;  %v1750_v32 = vpop.f32.mrf.mxu2  ;;  %v4891_v0 = vpack.c.b16 %v1352_v38, %v1351_v22  ;;  %vm839_vm11 = vcmp.ne.s32.totalorder %v420_v33, 15  ;;  %v3934_v33 = vld [vmem:[%s5630_s1 + $0x198] sm:$0xff]  ;;  %2729 = vmatpush.bf16.msra.mxu0 %v3950_v27 }
 0x100   : > { %v3942_v38 = vld [vmem:[%s5630_s1 + $0x1d8] sm:$0xff]  ;;  %2551 = vmatpush.bf16.msra.mxu2 %v3934_v33 }
 0x101   : > { %v1712_v30 = vpop.f32.mrf.mxu0  ;;  %5724 = vst [vmem:[#allocation41_spill] sm:$0xff] %v4891_v0  ;;  %2640 = vmatpush.bf16.msra.mxu3 %v3942_v38  ;;  %v873_v38 = vrot.slane %v4171_v26, 1 }
 0x102   : > { %v1839_v28 = vpop.f32.mrf.mxu3  ;;  %v1801_v56 = vpop.f32.mrf.mxu1 }
 0x103   : > { %v4884_v44 = vadd.f32 %v1839_v28, %v1750_v32  ;;  %v4887_v10 = vadd.f32 %v1801_v56, %v1712_v30  ;;  %v904_v28 = vsel %vm888_vm0, %v871_v39, %v872_v43  ;;  %v1289_v56 = vpack.c.bf16 %v905_v17, %v905_v17 }
 0x104   : > { %v936_v18 = vsel %vm839_vm11, %v904_v28, 0.0  ;;  %v296_v39 = vadd.s32 136, %v4124_v3  ;;  %v874_v17 = vrot.slane %v4227_v57, 1  ;;  %v903_v26 = vsel %vm888_vm0, %v872_v43, %v873_v38 }
 0x105   : > { %5723 = vst [vmem:[#allocation40_spill] sm:$0xff] %v4884_v44  ;;  %v1290_v50 = vpack.c.bf16 %v936_v18, %v936_v18  ;;  %v876_v43 = vrot.slane %v4315_v55, 1 }
 0x106   : > { %v434_v33 = vand.u32 15, %v296_v39 }
 0x107   : > { %v1752_v31 = vpop.f32.mrf.mxu2  ;;  %v1354_v28 = vunpack.c.l.b16 %v1290_v50 }
 0x108   : > { %vm841_vm12 = vcmp.ne.s32.totalorder %v434_v33, 15 }
 0x109   : > { %v1715_v12 = vpop.f32.mrf.mxu0 }
 0x10a   : > { %v1841_v47 = vpop.f32.mrf.mxu3  ;;  %v1804_v32 = vpop.f32.mrf.mxu1 }
 0x10b   : > { %v4893_v60 = vadd.f32 %v1841_v47, %v1752_v31  ;;  %v4897_v30 = vadd.f32 %v1804_v32, %v1715_v12  ;;  %v1353_v32 = vunpack.c.l.b16 %v1289_v56 }
 0x10c   : > { %3507 = vmatmul.msk.bf16.gmra.mxu2 %vm1065_vm3, %v4891_v0  ;;  %3633 = vmatmul.msk.bf16.gmra.mxu0 %vm1065_vm3, %v4576_v58 }
 0x10d   : > { %5725 = vst [vmem:[#allocation42_spill] sm:$0xff] %v4893_v60  ;;  %3648 = vmatmul.msk.bf16.gmra.mxu1 %vm1065_vm3, %v4866_v54 }
 0x10f   : > { %3618 = vmatmul.msk.bf16.gmra.mxu3 %vm1065_vm3, %v4572_v19  ;;  %v1755_v45 = vpop.f32.mrf.mxu2 }
 0x111   : > { %v1717_v31 = vpop.f32.mrf.mxu0 }
 0x112   : > { %v1844_v16 = vpop.f32.mrf.mxu3  ;;  %v1806_v47 = vpop.f32.mrf.mxu1 }
 0x113   : > { %v4915_v22 = vadd.f32 %v1844_v16, %v1755_v45  ;;  %v4921_v12 = vadd.f32 %v1806_v47, %v1717_v31  ;;  %v4925_v16 = vpack.c.b16 %v1354_v28, %v1353_v32  ;;  %v902_v31 = vsel %vm888_vm0, %v873_v38, %v874_v17  ;;  %v3962_v38 = vld [vmem:[%s5631_s2 + $0x38] sm:$0xff] }
 0x114   : > { %v938_v57 = vsel %vm841_vm12, %v902_v31, 0.0  ;;  %v298_v28 = vadd.s32 152, %v4124_v3  ;;  %3028 = vmatpush.bf16.msra.mxu1 %v3962_v38 }
 0x115   : > { %5726 = vst [vmem:[#allocation43_spill] sm:$0xff] %v4915_v22 }
 0x116   : > { %5727 = vst [vmem:[#allocation44_spill] sm:$0xff] %v4925_v16 }
 0x117   : > { %v1757_v18 = vpop.f32.mrf.mxu2 }
 0x119   : > { %v1720_v60 = vpop.f32.mrf.mxu0 }
 0x11a   : > { %v1846_v45 = vpop.f32.mrf.mxu3  ;;  %v1809_v44 = vpop.f32.mrf.mxu1 }
 0x11b   : > { %v4927_v22 = vadd.f32 %v1846_v45, %v1757_v18  ;;  %v4931_v56 = vadd.f32 %v1809_v44, %v1720_v60  ;;  %v1291_v44 = vpack.c.bf16 %v903_v26, %v903_v26  ;;  %v1292_v60 = vpack.c.bf16 %v938_v57, %v938_v57 }
 0x11c   : > { %3508 = vmatmul.msk.bf16.gmra.mxu2 %vm1065_vm3, %v4925_v16  ;;  %3634 = vmatmul.msk.bf16.gmra.mxu0 %vm1065_vm3, %v4643_v37  ;;  %v875_v37 = vrot.slane %v4236_v8, 1 }
 0x11d   : > { %5728 = vst [vmem:[#allocation45_spill] sm:$0xff] %v4927_v22  ;;  %3649 = vmatmul.msk.bf16.gmra.mxu1 %vm1065_vm3, %v4891_v0  ;;  %v1355_v18 = vunpack.c.l.b16 %v1291_v44  ;;  %v1356_v45 = vunpack.c.l.b16 %v1292_v60  ;;  %v448_v22 = vand.u32 15, %v298_v28  ;;  %v3941_v60 = vld [vmem:[%s5630_s1 + $0x1d0] sm:$0xff] }
 0x11e   : > { %v900_v44 = vsel %vm888_vm0, %v875_v37, %v876_v43  ;;  %v901_v8 = vsel %vm888_vm0, %v874_v17, %v875_v37  ;;  %2641 = vmatpush.bf16.msra.mxu3 %v3941_v60  ;;  %v300_v17 = vadd.s32 168, %v4124_v3 }
 0x11f   : > { %3619 = vmatmul.msk.bf16.gmra.mxu3 %vm1065_vm3, %v4636_v25  ;;  %v1760_v50 = vpop.f32.mrf.mxu2  ;;  %v4953_v57 = vpack.c.b16 %v1356_v45, %v1355_v18  ;;  %vm843_vm13 = vcmp.ne.s32.totalorder %v448_v22, 15  ;;  %v3933_v22 = vld [vmem:[%s5630_s1 + $0x190] sm:$0xff]  ;;  %v1293_v45 = vpack.c.bf16 %v901_v8, %v901_v8  ;;  %v5732_v8 = vld [vmem:[#allocation9_spill] sm:$0xff] }
 0x120   : > { %v940_v55 = vsel %vm843_vm13, %v900_v44, 0.0  ;;  %2552 = vmatpush.bf16.msra.mxu2 %v3933_v22  ;;  %v3949_v44 = vld [vmem:[%s5630_s1 + $0x210] sm:$0xff]  ;;  %v462_v60 = vand.u32 15, %v300_v17 }
 0x121   : > { %v1722_v27 = vpop.f32.mrf.mxu0  ;;  %v1294_v38 = vpack.c.bf16 %v940_v55, %v940_v55  ;;  %2730 = vmatpush.bf16.msra.mxu0 %v3949_v44  ;;  %v878_v55 = vrot.slane %v5732_v8, 1  ;;  %v302_v8 = vadd.s32 184, %v4124_v3 }
 0x122   : > { %v1849_v47 = vpop.f32.mrf.mxu3  ;;  %v1811_v32 = vpop.f32.mrf.mxu1  ;;  %vm845_vm14 = vcmp.ne.s32.totalorder %v462_v60, 15 }
 0x123   : > { %v4943_v39 = vadd.f32 %v1849_v47, %v1760_v50  ;;  %v4946_v33 = vadd.f32 %v1811_v32, %v1722_v27 }
 0x125   : > { %5729 = vst [vmem:[#allocation46_spill] sm:$0xff] %v4943_v39  ;;  %v1357_v39 = vunpack.c.l.b16 %v1293_v45 }
 0x127   : > { %v1762_v31 = vpop.f32.mrf.mxu2 }
 0x129   : > { %v2185_v47 = vpop.f32.mrf.mxu0 }
 0x12a   : > { %v1851_v26 = vpop.f32.mrf.mxu3  ;;  %v2274_v27 = vpop.f32.mrf.mxu1 }
 0x12b   : > { %v4955_v50 = vadd.f32 %v1851_v26, %v1762_v31 }
 0x12c   : > { %3509 = vmatmul.msk.bf16.gmra.mxu2 %vm1065_vm3, %v4953_v57  ;;  %3635 = vmatmul.msk.bf16.gmra.mxu0 %vm1065_vm3, %v4701_v29  ;;  %v1358_v29 = vunpack.c.l.b16 %v1294_v38 }
 0x12d   : > { %5730 = vst [vmem:[#allocation47_spill] sm:$0xff] %v4955_v50  ;;  %3650 = vmatmul.msk.bf16.gmra.mxu1 %vm1065_vm3, %v4925_v16 }
 0x12e   : > { %v4985_v16 = vpack.c.b16 %v1358_v29, %v1357_v39 }
 0x12f   : > { %3620 = vmatmul.msk.bf16.gmra.mxu3 %vm1065_vm3, %v4697_v23  ;;  %v1863_v32 = vpop.f32.mrf.mxu2 }
 0x130   : > { %v1864_v28 = vadd.f32 %v1863_v32, %v4725_v59  ;;  %v877_v59 = vrot.slane %v4324_v9, 1  ;;  %5733 = vst [vmem:[#allocation9_spill] sm:$0xff] %v4985_v16 }
 0x131   : > { %v2187_v31 = vpop.f32.mrf.mxu0 }
 0x132   : > { %v2096_v18 = vpop.f32.mrf.mxu3  ;;  %v2276_v37 = vpop.f32.mrf.mxu1  ;;  %v899_v29 = vsel %vm888_vm0, %v876_v43, %v877_v59  ;;  %v476_v43 = vand.u32 15, %v302_v8  ;;  %v5741_v8 = vld [vmem:[#allocation7_spill] sm:$0xff] }
 0x133   : > { %v2097_v26 = vadd.f32 %v2096_v18, %v1864_v28  ;;  %v1295_v17 = vpack.c.bf16 %v899_v29, %v899_v29 }
 0x134   : > { %vm847_vm15 = vcmp.ne.s32.totalorder %v476_v43, 15 }
 0x135   : > { %v2186_v50 = vadd.f32 %v2185_v47, %v2097_v26  ;;  %v898_v47 = vsel %vm888_vm0, %v877_v59, %v878_v55  ;;  %v5738_v59 = vld [vmem:[#allocation10_spill] sm:$0xff] }
 0x137   : > { %v4980_v22 = vadd.f32 %v2274_v27, %v2186_v50  ;;  %v1865_v32 = vpop.f32.mrf.mxu2  ;;  %v5734_v50 = vld [vmem:[#allocation6_spill] sm:$0xff]  ;;  %v5735_v27 = vld [vmem:[#allocation5_spill] sm:$0xff] }
 0x138   : > { %v1866_v28 = vadd.f32 %v1865_v32, %v4742_v6  ;;  %v942_v6 = vsel %vm845_vm14, %v898_v47, 0.0  ;;  %v5739_v47 = vld [vmem:[#allocation13_spill] sm:$0xff] }
 0x139   : > { %5731 = vst [vmem:[#allocation48_spill] sm:$0xff] %v4980_v22  ;;  %v2190_v23 = vpop.f32.mrf.mxu0  ;;  %v1296_v44 = vpack.c.bf16 %v942_v6, %v942_v6 }
 0x13a   : > { %v2098_v18 = vpop.f32.mrf.mxu3  ;;  %v2279_v25 = vpop.f32.mrf.mxu1 }
 0x13b   : > { %v2099_v0 = vadd.f32 %v2098_v18, %v1866_v28  ;;  %v1359_v28 = vunpack.c.l.b16 %v1295_v17  ;;  %v1360_v18 = vunpack.c.l.b16 %v1296_v44  ;;  %v5740_v44 = vld [vmem:[#allocation8_spill] sm:$0xff] }
 0x13c   : > { %3510 = vmatmul.msk.bf16.gmra.mxu2 %vm1065_vm3, %v4985_v16  ;;  %3636 = vmatmul.msk.bf16.gmra.mxu0 %vm1065_vm3, %v5734_v50 }
 0x13d   : > { %v2188_v9 = vadd.f32 %v2187_v31, %v2099_v0  ;;  %3651 = vmatmul.msk.bf16.gmra.mxu1 %vm1065_vm3, %v4953_v57 }
 0x13f   : > { %3621 = vmatmul.msk.bf16.gmra.mxu3 %vm1065_vm3, %v5735_v27  ;;  %v4999_v39 = vadd.f32 %v2276_v37, %v2188_v9  ;;  %v1868_v45 = vpop.f32.mrf.mxu2  ;;  %v879_v37 = vrot.slane %v5738_v59, 1  ;;  %v880_v9 = vrot.slane %v5739_v47, 1 }
 0x140   : > { %v1869_v38 = vadd.f32 %v1868_v45, %v4755_v21  ;;  %v3961_v21 = vld [vmem:[%s5631_s2 + $0x30] sm:$0xff] }
 0x141   : > { %5736 = vst [vmem:[#allocation6_spill] sm:$0xff] %v4999_v39  ;;  %v2192_v60 = vpop.f32.mrf.mxu0  ;;  %3029 = vmatpush.bf16.msra.mxu1 %v3961_v21  ;;  %v896_v17 = vsel %vm888_vm0, %v879_v37, %v880_v9 }
 0x142   : > { %v2101_v26 = vpop.f32.mrf.mxu3  ;;  %v2281_v31 = vpop.f32.mrf.mxu1 }
 0x143   : > { %v2102_v0 = vadd.f32 %v2101_v26, %v1869_v38  ;;  %v5011_v38 = vpack.c.b16 %v1360_v18, %v1359_v28  ;;  %v3932_v28 = vld [vmem:[%s5630_s1 + $0x188] sm:$0xff] }
 0x144   : > { %v3940_v18 = vld [vmem:[%s5630_s1 + $0x1c8] sm:$0xff]  ;;  %2553 = vmatpush.bf16.msra.mxu2 %v3932_v28 }
 0x145   : > { %v2191_v32 = vadd.f32 %v2190_v23, %v2102_v0  ;;  %2642 = vmatpush.bf16.msra.mxu3 %v3940_v18 }
 0x147   : > { %v5003_v22 = vadd.f32 %v2279_v25, %v2191_v32  ;;  %v1870_v29 = vpop.f32.mrf.mxu2  ;;  %v944_v32 = vsel %vm847_vm15, %v896_v17, 0.0 }
 0x148   : > { %v1871_v6 = vadd.f32 %v1870_v29, %v4769_v20  ;;  %v897_v20 = vsel %vm888_vm0, %v878_v55, %v879_v37  ;;  %v1298_v29 = vpack.c.bf16 %v944_v32, %v944_v32 }
 0x149   : > { %5737 = vst [vmem:[#allocation5_spill] sm:$0xff] %v5003_v22  ;;  %v2195_v23 = vpop.f32.mrf.mxu0  ;;  %v1297_v21 = vpack.c.bf16 %v897_v20, %v897_v20  ;;  %v5745_v20 = vld [vmem:[#allocation17_spill] sm:$0xff] }
 0x14a   : > { %v2103_v45 = vpop.f32.mrf.mxu3  ;;  %v2284_v25 = vpop.f32.mrf.mxu1  ;;  %v882_v32 = vrot.slane %v5745_v20, 1 }
 0x14b   : > { %v2104_v26 = vadd.f32 %v2103_v45, %v1871_v6  ;;  %v304_v45 = vadd.s32 200, %v4124_v3 }
 0x14c   : > { %3511 = vmatmul.msk.bf16.gmra.mxu2 %vm1065_vm3, %v5011_v38  ;;  %3637 = vmatmul.msk.bf16.gmra.mxu0 %vm1065_vm3, %v5740_v44 }
 0x14d   : > { %v2193_v0 = vadd.f32 %v2192_v60, %v2104_v26  ;;  %3652 = vmatmul.msk.bf16.gmra.mxu1 %vm1065_vm3, %v4985_v16  ;;  %v3948_v26 = vld [vmem:[%s5630_s1 + $0x208] sm:$0xff]  ;;  %v490_v18 = vand.u32 15, %v304_v45 }
 0x14e   : > { %2731 = vmatpush.bf16.msra.mxu0 %v3948_v26 }
 0x14f   : > { %3622 = vmatmul.msk.bf16.gmra.mxu3 %vm1065_vm3, %v5741_v8  ;;  %v5031_v43 = vadd.f32 %v2281_v31, %v2193_v0  ;;  %v1873_v60 = vpop.f32.mrf.mxu2  ;;  %v1361_v31 = vunpack.c.l.b16 %v1297_v21  ;;  %v1362_v0 = vunpack.c.l.b16 %v1298_v29  ;;  %vm849_vm1 = vcmp.ne.s32.totalorder %v490_v18, 15  ;;  %v5747_v29 = vld [vmem:[#allocation11_spill] sm:$0xff] }
 0x150   : > { %v1874_v59 = vadd.f32 %v1873_v60, %v4779_v49  ;;  %v5744_v49 = vld [vmem:[#allocation14_spill] sm:$0xff] }
 0x151   : > { %5742 = vst [vmem:[#allocation10_spill] sm:$0xff] %v5031_v43  ;;  %v2197_v55 = vpop.f32.mrf.mxu0  ;;  %v881_v60 = vrot.slane %v5744_v49, 1  ;;  %v5043_v22 = vpack.c.b16 %v1362_v0, %v1361_v31  ;;  %v306_v49 = vadd.s32 216, %v4124_v3 }
 0x152   : > { %v2106_v47 = vpop.f32.mrf.mxu3  ;;  %v2286_v6 = vpop.f32.mrf.mxu1 }
 0x153   : > { %v2107_v37 = vadd.f32 %v2106_v47, %v1874_v59 }
 0x155   : > { %v2196_v17 = vadd.f32 %v2195_v23, %v2107_v37  ;;  %v894_v23 = vsel %vm888_vm0, %v881_v60, %v882_v32 }
 0x157   : > { %v5038_v28 = vadd.f32 %v2284_v25, %v2196_v17  ;;  %v1875_v43 = vpop.f32.mrf.mxu2  ;;  %v5746_v25 = vld [vmem:[#allocation12_spill] sm:$0xff] }
 0x158   : > { %v1876_v59 = vadd.f32 %v1875_v43, %v4800_v61  ;;  %v895_v61 = vsel %vm888_vm0, %v880_v9, %v881_v60  ;;  %v946_v43 = vsel %vm849_vm1, %v894_v23, 0.0  ;;  %v504_v9 = vand.u32 15, %v306_v49  ;;  %v5750_v60 = vld [vmem:[#allocation18_spill] sm:$0xff]  ;;  %v5753_v49 = vld [vmem:[#allocation15_spill] sm:$0xff] }
 0x159   : > { %5743 = vst [vmem:[#allocation13_spill] sm:$0xff] %v5038_v28  ;;  %v2200_v39 = vpop.f32.mrf.mxu0  ;;  %v1299_v31 = vpack.c.bf16 %v895_v61, %v895_v61  ;;  %v1300_v0 = vpack.c.bf16 %v946_v43, %v946_v43  ;;  %v5751_v23 = vld [vmem:[#allocation22_spill] sm:$0xff] }
 0x15a   : > { %v2108_v47 = vpop.f32.mrf.mxu3  ;;  %v2289_v16 = vpop.f32.mrf.mxu1  ;;  %vm851_vm2 = vcmp.ne.s32.totalorder %v504_v9, 15 }
 0x15b   : > { %v2109_v44 = vadd.f32 %v2108_v47, %v1876_v59  ;;  %v1363_v59 = vunpack.c.l.b16 %v1299_v31  ;;  %v1364_v47 = vunpack.c.l.b16 %v1300_v0  ;;  %v5752_v0 = vld [vmem:[#allocation16_spill] sm:$0xff] }
 0x15c   : > { %3512 = vmatmul.msk.bf16.gmra.mxu2 %vm1065_vm3, %v5043_v22  ;;  %3638 = vmatmul.msk.bf16.gmra.mxu0 %vm1065_vm3, %v5746_v25 }
 0x15d   : > { %v2198_v21 = vadd.f32 %v2197_v55, %v2109_v44  ;;  %3653 = vmatmul.msk.bf16.gmra.mxu1 %vm1065_vm3, %v5011_v38 }
 0x15f   : > { %3623 = vmatmul.msk.bf16.gmra.mxu3 %vm1065_vm3, %v5747_v29  ;;  %v5057_v37 = vadd.f32 %v2286_v6, %v2198_v21  ;;  %v1878_v45 = vpop.f32.mrf.mxu2  ;;  %v883_v6 = vrot.slane %v5750_v60, 1  ;;  %v884_v21 = vrot.slane %v5751_v23, 1 }
 0x160   : > { %v1879_v26 = vadd.f32 %v1878_v45, %v4813_v51  ;;  %v3960_v51 = vld [vmem:[%s5631_s2 + $0x28] sm:$0xff] }
 0x161   : > { %5748 = vst [vmem:[#allocation7_spill] sm:$0xff] %v5057_v37  ;;  %v2202_v18 = vpop.f32.mrf.mxu0  ;;  %3030 = vmatpush.bf16.msra.mxu1 %v3960_v51  ;;  %v892_v31 = vsel %vm888_vm0, %v883_v6, %v884_v21 }
 0x162   : > { %v2111_v17 = vpop.f32.mrf.mxu3  ;;  %v2291_v55 = vpop.f32.mrf.mxu1 }
 0x163   : > { %v2112_v44 = vadd.f32 %v2111_v17, %v1879_v26  ;;  %v5069_v26 = vpack.c.b16 %v1364_v47, %v1363_v59  ;;  %v3931_v59 = vld [vmem:[%s5630_s1 + $0x180] sm:$0xff] }
 0x164   : > { %v3939_v47 = vld [vmem:[%s5630_s1 + $0x1c0] sm:$0xff]  ;;  %2554 = vmatpush.bf16.msra.mxu2 %v3931_v59 }
 0x165   : > { %v2201_v20 = vadd.f32 %v2200_v39, %v2112_v44  ;;  %2643 = vmatpush.bf16.msra.mxu3 %v3939_v47  ;;  %v5756_v47 = vld [vmem:[#allocation23_spill] sm:$0xff] }
 0x167   : > { %v5061_v28 = vadd.f32 %v2289_v16, %v2201_v20  ;;  %v1880_v61 = vpop.f32.mrf.mxu2  ;;  %v948_v20 = vsel %vm851_vm2, %v892_v31, 0.0 }
 0x168   : > { %v1881_v43 = vadd.f32 %v1880_v61, %v4828_v53  ;;  %v893_v53 = vsel %vm888_vm0, %v882_v32, %v883_v6  ;;  %v1302_v61 = vpack.c.bf16 %v948_v20, %v948_v20  ;;  %v886_v20 = vrot.slane %v4628_v5, 1 }
 0x169   : > { %5749 = vst [vmem:[#allocation14_spill] sm:$0xff] %v5061_v28  ;;  %v2205_v39 = vpop.f32.mrf.mxu0  ;;  %v1301_v51 = vpack.c.bf16 %v893_v53, %v893_v53  ;;  %v885_v53 = vrot.slane %v5756_v47, 1 }
 0x16a   : > { %v2113_v45 = vpop.f32.mrf.mxu3  ;;  %v2294_v16 = vpop.f32.mrf.mxu1 }
 0x16b   : > { %v2114_v17 = vadd.f32 %v2113_v45, %v1881_v43  ;;  %v308_v45 = vadd.s32 232, %v4124_v3  ;;  %v1365_v31 = vunpack.c.l.b16 %v1301_v51  ;;  %v5759_v51 = vld [vmem:[#allocation19_spill] sm:$0xff] }
 0x16c   : > { %3513 = vmatmul.msk.bf16.gmra.mxu2 %vm1065_vm3, %v5069_v26  ;;  %3639 = vmatmul.msk.bf16.gmra.mxu0 %vm1065_vm3, %v5752_v0 }
 0x16d   : > { %v2203_v44 = vadd.f32 %v2202_v18, %v2114_v17  ;;  %3654 = vmatmul.msk.bf16.gmra.mxu1 %vm1065_vm3, %v5043_v22  ;;  %v3947_v17 = vld [vmem:[%s5630_s1 + $0x200] sm:$0xff] }
 0x16e   : > { %2732 = vmatpush.bf16.msra.mxu0 %v3947_v17 }
 0x16f   : > { %3624 = vmatmul.msk.bf16.gmra.mxu3 %vm1065_vm3, %v5753_v49  ;;  %v5089_v9 = vadd.f32 %v2291_v55, %v2203_v44  ;;  %v1883_v18 = vpop.f32.mrf.mxu2  ;;  %v1366_v44 = vunpack.c.l.b16 %v1302_v61 }
 0x170   : > { %v1884_v60 = vadd.f32 %v1883_v18, %v4838_v7  ;;  %v518_v7 = vand.u32 15, %v308_v45 }
 0x171   : > { %5754 = vst [vmem:[#allocation17_spill] sm:$0xff] %v5089_v9  ;;  %v2207_v32 = vpop.f32.mrf.mxu0 }
 0x172   : > { %v2116_v23 = vpop.f32.mrf.mxu3  ;;  %v5092_v43 = vpop.f32.mrf.mxu1  ;;  %vm853_vm4 = vcmp.ne.s32.totalorder %v518_v7, 15 }
 0x173   : > { %v2117_v6 = vadd.f32 %v2116_v23, %v1884_v60  ;;  %5755 = vst [vmem:[#allocation12_spill] sm:$0xff] %v5092_v43  ;;  %v5103_v43 = vpack.c.b16 %v1366_v44, %v1365_v31 }
 0x175   : > { %v2206_v55 = vadd.f32 %v2205_v39, %v2117_v6  ;;  %v890_v39 = vsel %vm888_vm0, %v885_v53, %v886_v20 }
 0x176   : > { %v950_v61 = vsel %vm853_vm4, %v890_v39, 0.0 }
 0x177   : > { %v5098_v59 = vadd.f32 %v2294_v16, %v2206_v55  ;;  %v1885_v18 = vpop.f32.mrf.mxu2  ;;  %v5757_v16 = vld [vmem:[#allocation21_spill] sm:$0xff]  ;;  %v1304_v31 = vpack.c.bf16 %v950_v61, %v950_v61 }
 0x178   : > { %v1886_v60 = vadd.f32 %v1885_v18, %v4859_v1  ;;  %v891_v1 = vsel %vm888_vm0, %v884_v21, %v885_v53  ;;  %v887_v21 = vrot.slane %v4153_v15, 1 }
 0x179   : > { %v2210_v9 = vpop.f32.mrf.mxu0  ;;  %v1303_v55 = vpack.c.bf16 %v891_v1, %v891_v1 }
 0x17a   : > { %v2118_v23 = vpop.f32.mrf.mxu3  ;;  %v2299_v37 = vpop.f32.mrf.mxu1 }
 0x17b   : > { %v2119_v28 = vadd.f32 %v2118_v23, %v1886_v60  ;;  %v1367_v18 = vunpack.c.l.b16 %v1303_v55  ;;  %v1368_v60 = vunpack.c.l.b16 %v1304_v31  ;;  %v5762_v55 = vld [vmem:[#allocation24_spill] sm:$0xff] }
 0x17c   : > { %3514 = vmatmul.msk.bf16.gmra.mxu2 %vm1065_vm3, %v5103_v43  ;;  %3640 = vmatmul.msk.bf16.gmra.mxu0 %vm1065_vm3, %v5757_v16 }
 0x17d   : > { %v5111_v5 = vadd.f32 %v2207_v32, %v2119_v28  ;;  %3655 = vmatmul.msk.bf16.gmra.mxu1 %vm1065_vm3, %v5069_v26  ;;  %v310_v32 = vadd.s32 248, %v4124_v3  ;;  %v5130_v61 = vpack.c.b16 %v1368_v60, %v1367_v18 }
 0x17f   : > { %5758 = vst [vmem:[#allocation11_spill] sm:$0xff] %v5111_v5  ;;  %3625 = vmatmul.msk.bf16.gmra.mxu3 %vm1065_vm3, %v5759_v51  ;;  %v1888_v6 = vpop.f32.mrf.mxu2  ;;  %v532_v5 = vand.u32 15, %v310_v32 }
 0x180   : > { %v1889_v45 = vadd.f32 %v1888_v6, %v4872_v62  ;;  %v3959_v62 = vld [vmem:[%s5631_s2 + $0x20] sm:$0xff] }
 0x181   : > { %v2212_v44 = vpop.f32.mrf.mxu0  ;;  %3031 = vmatpush.bf16.msra.mxu1 %v3959_v62  ;;  %vm855_vm5 = vcmp.ne.s32.totalorder %v532_v5, 15 }
 0x182   : > { %v2121_v17 = vpop.f32.mrf.mxu3  ;;  %v5120_v28 = vpop.f32.mrf.mxu1 }
 0x183   : > { %v2122_v7 = vadd.f32 %v2121_v17, %v1889_v45  ;;  %v5761_v17 = vld [vmem:[#allocation25_spill] sm:$0xff] }
 0x185   : > { %v2211_v47 = vadd.f32 %v2210_v9, %v2122_v7 }
 0x187   : > { %v5123_v23 = vadd.f32 %v2299_v37, %v2211_v47  ;;  %v1890_v53 = vpop.f32.mrf.mxu2  ;;  %v5760_v37 = vrot.slane %v4146_v11, 1  ;;  %v889_v11 = vsel %vm888_vm0, %v886_v20, %v887_v21 }
 0x188   : > { %v1891_v39 = vadd.f32 %v1890_v53, %v4887_v10  ;;  %v1305_v47 = vpack.c.bf16 %v889_v11, %v889_v11  ;;  %v5763_v11 = vld [vmem:[#allocation27_spill] sm:$0xff] }
 0x189   : > { %v2215_v6 = vpop.f32.mrf.mxu0  ;;  %v920_v15 = vsel %vm888_vm0, %v887_v21, %v5760_v37 }
 0x18a   : > { %v2123_v1 = vpop.f32.mrf.mxu3  ;;  %v2304_v45 = vpop.f32.mrf.mxu1  ;;  %v952_v5 = vsel %vm855_vm5, %v920_v15, 0.0 }
 0x18b   : > { %v2124_v9 = vadd.f32 %v2123_v1, %v1891_v39  ;;  %v1306_v18 = vpack.c.bf16 %v952_v5, %v952_v5  ;;  %v1369_v39 = vunpack.c.l.b16 %v1305_v47 }
 0x18c   : > { %3515 = vmatmul.msk.bf16.gmra.mxu2 %vm1065_vm3, %v5130_v61  ;;  %3641 = vmatmul.msk.bf16.gmra.mxu0 %vm1065_vm3, %v5761_v17 }
 0x18d   : > { %v5140_v10 = vadd.f32 %v2212_v44, %v2124_v9  ;;  %3656 = vmatmul.msk.bf16.gmra.mxu1 %vm1065_vm3, %v5103_v43  ;;  %v1370_v1 = vunpack.c.l.b16 %v1306_v18 }
 0x18f   : > { %3626 = vmatmul.msk.bf16.gmra.mxu3 %vm1065_vm3, %v5762_v55  ;;  %v1893_v31 = vpop.f32.mrf.mxu2  ;;  %v5154_v21 = vpack.c.b16 %v1370_v1, %v1369_v39 }
 0x190   : > { %v1894_v7 = vadd.f32 %v1893_v31, %v4897_v30 }
 0x191   : > { %v2217_v60 = vpop.f32.mrf.mxu0 }
 0x192   : > { %v2126_v32 = vpop.f32.mrf.mxu3  ;;  %v5149_v44 = vpop.f32.mrf.mxu1 }
 0x193   : > { %v2127_v62 = vadd.f32 %v2126_v32, %v1894_v7 }
 0x195   : > { %v2216_v53 = vadd.f32 %v2215_v6, %v2127_v62 }
 0x197   : > { %v5151_v9 = vadd.f32 %v2304_v45, %v2216_v53  ;;  %v1895_v37 = vpop.f32.mrf.mxu2 }
 0x198   : > { %v1896_v3 = vadd.f32 %v1895_v37, %v4921_v12 }
 0x199   : > { %v2220_v15 = vpop.f32.mrf.mxu0 }
 0x19a   : > { %v2128_v20 = vpop.f32.mrf.mxu3  ;;  %v2309_v31 = vpop.f32.mrf.mxu1 }
 0x19b   : > { %v2129_v30 = vadd.f32 %v2128_v20, %v1896_v3 }
 0x19c   : > { %3516 = vmatmul.msk.bf16.gmra.mxu2 %vm1065_vm3, %v5154_v21  ;;  %3642 = vmatmul.msk.bf16.gmra.mxu0 %vm1065_vm3, %v4645_v48 }
 0x19d   : > { %v5160_v6 = vadd.f32 %v2217_v60, %v2129_v30  ;;  %3657 = vmatmul.msk.bf16.gmra.mxu1 %vm1065_vm3, %v5130_v61  ;;  %v3958_v60 = vld [vmem:[%s5631_s2 + $0x18] sm:$0xff] }
 0x19e   : > { %3032 = vmatpush.bf16.msra.mxu1 %v3958_v60 }
 0x19f   : > { %3627 = vmatmul.msk.bf16.gmra.mxu3 %vm1065_vm3, %v5763_v11  ;;  %v1898_v12 = vpop.f32.mrf.mxu2 }
 0x1a0   : > { %v1899_v45 = vadd.f32 %v1898_v12, %v4931_v56 }
 0x1a1   : > { %v2222_v7 = vpop.f32.mrf.mxu0 }
 0x1a2   : > { %v2131_v5 = vpop.f32.mrf.mxu3  ;;  %v5167_v47 = vpop.f32.mrf.mxu1 }
 0x1a3   : > { %v2132_v32 = vadd.f32 %v2131_v5, %v1899_v45 }
 0x1a5   : > { %v2221_v18 = vadd.f32 %v2220_v15, %v2132_v32 }
 0x1a7   : > { %v5169_v62 = vadd.f32 %v2309_v31, %v2221_v18  ;;  %v1900_v53 = vpop.f32.mrf.mxu2 }
 0x1a8   : > { %v1901_v39 = vadd.f32 %v1900_v53, %v4946_v33 }
 0x1a9   : > { %v2225_v37 = vpop.f32.mrf.mxu0 }
 0x1aa   : > { %v2133_v1 = vpop.f32.mrf.mxu3  ;;  %v2314_v56 = vpop.f32.mrf.mxu1 }
 0x1ab   : > { %v2134_v3 = vadd.f32 %v2133_v1, %v1901_v39 }
 0x1ac   : > { %3802 = vmatmul.msk.bf16.vlgmr.msra.gmra.mxu2 %vm1065_vm3, %v4327_v13  ;;  %3832 = vmatmul.msk.bf16.vlgmr.msra.gmra.mxu0 %vm1065_vm3, %v4749_v35 }
 0x1ad   : > { %v5179_v20 = vadd.f32 %v2222_v7, %v2134_v3 }
 0x1af   : > { %3817 = vmatmul.msk.bf16.vlgmr.msra.gmra.mxu3 %vm1065_vm3, %v4331_v24  ;;  %v1903_v15 = vpop.f32.mrf.mxu2 }
 0x1b0   : > { %v1904_v30 = vadd.f32 %v1903_v15, %v4739_v42 }
 0x1b1   : > { %v2227_v31 = vpop.f32.mrf.mxu0 }
 0x1b2   : > { %v2136_v33 = vpop.f32.mrf.mxu3  ;;  %v5184_v45 = vpop.f32.mrf.mxu1 }
 0x1b3   : > { %v2137_v12 = vadd.f32 %v2136_v33, %v1904_v30 }
 0x1b5   : > { %v2226_v5 = vadd.f32 %v2225_v37, %v2137_v12 }
 0x1b7   : > { %v5186_v32 = vadd.f32 %v2314_v56, %v2226_v5  ;;  %v1905_v13 = vpop.f32.mrf.mxu2 }
 0x1b8   : > { %v1906_v18 = vadd.f32 %v1905_v13, %v4751_v63  ;;  %v5764_v13 = vld [vmem:[#allocation33_spill] sm:$0xff] }
 0x1b9   : > { %v2230_v7 = vpop.f32.mrf.mxu0 }
 0x1ba   : > { %v2138_v35 = vpop.f32.mrf.mxu3  ;;  %v2319_v53 = vpop.f32.mrf.mxu1 }
 0x1bb   : > { %v2139_v60 = vadd.f32 %v2138_v35, %v1906_v18 }
 0x1bc   : > { %3803 = vmatmul.msk.bf16.gmra.mxu2 %vm1065_vm3, %v4390_v34  ;;  %3833 = vmatmul.msk.bf16.gmra.mxu0 %vm1065_vm3, %v4773_v40  ;;  %v3957_v34 = vld [vmem:[%s5631_s2 + $0x10] sm:$0xff] }
 0x1bd   : > { %v5193_v24 = vadd.f32 %v2227_v31, %v2139_v60  ;;  %3033 = vmatpush.bf16.msra.mxu1 %v3957_v34 }
 0x1bf   : > { %3818 = vmatmul.msk.bf16.gmra.mxu3 %vm1065_vm3, %v4396_v36  ;;  %v1908_v42 = vpop.f32.mrf.mxu2 }
 0x1c0   : > { %v1909_v39 = vadd.f32 %v1908_v42, %v4766_v41 }
 0x1c1   : > { %v2232_v63 = vpop.f32.mrf.mxu0 }
 0x1c2   : > { %v2141_v1 = vpop.f32.mrf.mxu3  ;;  %v5198_v3 = vpop.f32.mrf.mxu1 }
 0x1c3   : > { %v2142_v37 = vadd.f32 %v2141_v1, %v1909_v39  ;;  %v5765_v39 = vld [vmem:[#allocation34_spill] sm:$0xff] }
 0x1c5   : > { %v2231_v56 = vadd.f32 %v2230_v7, %v2142_v37 }
 0x1c7   : > { %v5200_v15 = vadd.f32 %v2319_v53, %v2231_v56  ;;  %v1910_v40 = vpop.f32.mrf.mxu2 }
 0x1c8   : > { %v1911_v30 = vadd.f32 %v1910_v40, %v4775_v4  ;;  %v5767_v40 = vld [vmem:[#allocation20_spill] sm:$0xff] }
 0x1c9   : > { %v2235_v36 = vpop.f32.mrf.mxu0 }
 0x1ca   : > { %v2143_v33 = vpop.f32.mrf.mxu3  ;;  %v2324_v41 = vpop.f32.mrf.mxu1 }
 0x1cb   : > { %v2144_v31 = vadd.f32 %v2143_v33, %v1911_v30  ;;  %v5768_v33 = vld [vmem:[#allocation35_spill] sm:$0xff] }
 0x1cc   : > { %3804 = vmatmul.msk.bf16.gmra.mxu2 %vm1065_vm3, %v4450_v46  ;;  %3834 = vmatmul.msk.bf16.gmra.mxu0 %vm1065_vm3, %v4807_v2 }
 0x1cd   : > { %v5210_v12 = vadd.f32 %v2232_v63, %v2144_v31 }
 0x1cf   : > { %3819 = vmatmul.msk.bf16.gmra.mxu3 %vm1065_vm3, %v4455_v52  ;;  %v1913_v5 = vpop.f32.mrf.mxu2  ;;  %v5766_v52 = vld [vmem:[#allocation36_spill] sm:$0xff] }
 0x1d0   : > { %v1914_v18 = vadd.f32 %v1913_v5, %v5764_v13 }
 0x1d1   : > { %v2237_v35 = vpop.f32.mrf.mxu0 }
 0x1d2   : > { %v2146_v4 = vpop.f32.mrf.mxu3  ;;  %v5215_v60 = vpop.f32.mrf.mxu1 }
 0x1d3   : > { %v2147_v7 = vadd.f32 %v2146_v4, %v1914_v18 }
 0x1d5   : > { %v2236_v53 = vadd.f32 %v2235_v36, %v2147_v7  ;;  %v5769_v7 = vld [vmem:[#allocation37_spill] sm:$0xff] }
 0x1d7   : > { %v5217_v42 = vadd.f32 %v2324_v41, %v2236_v53  ;;  %v1915_v46 = vpop.f32.mrf.mxu2 }
 0x1d8   : > { %v1916_v1 = vadd.f32 %v1915_v46, %v5765_v39 }
 0x1d9   : > { %v2240_v63 = vpop.f32.mrf.mxu0 }
 0x1da   : > { %v2148_v2 = vpop.f32.mrf.mxu3  ;;  %v2329_v56 = vpop.f32.mrf.mxu1 }
 0x1db   : > { %v2149_v37 = vadd.f32 %v2148_v2, %v1916_v1 }
 0x1dc   : > { %3805 = vmatmul.msk.bf16.gmra.mxu2 %vm1065_vm3, %v4508_v14  ;;  %3835 = vmatmul.msk.bf16.gmra.mxu0 %vm1065_vm3, %v5766_v52  ;;  %v3956_v14 = vld [vmem:[%s5631_s2 + $0x8] sm:$0xff] }
 0x1dd   : > { %v5224_v34 = vadd.f32 %v2237_v35, %v2149_v37  ;;  %3034 = vmatpush.bf16.msra.mxu1 %v3956_v14 }
 0x1df   : > { %3820 = vmatmul.msk.bf16.gmra.mxu3 %vm1065_vm3, %v5767_v40  ;;  %v1918_v30 = vpop.f32.mrf.mxu2 }
 0x1e0   : > { %v1919_v36 = vadd.f32 %v1918_v30, %v5768_v33 }
 0x1e1   : > { %v2242_v41 = vpop.f32.mrf.mxu0 }
 0x1e2   : > { %v2151_v31 = vpop.f32.mrf.mxu3  ;;  %v5229_v13 = vpop.f32.mrf.mxu1 }
 0x1e3   : > { %v2152_v5 = vadd.f32 %v2151_v31, %v1919_v36 }
 0x1e5   : > { %v2241_v18 = vadd.f32 %v2240_v63, %v2152_v5 }
 0x1e7   : > { %v5231_v4 = vadd.f32 %v2329_v56, %v2241_v18  ;;  %v1920_v35 = vpop.f32.mrf.mxu2  ;;  %v5770_v56 = vld [vmem:[#allocation38_spill] sm:$0xff]  ;;  %v5771_v18 = vld [vmem:[#allocation39_spill] sm:$0xff] }
 0x1e8   : > { %v1921_v53 = vadd.f32 %v1920_v35, %v5769_v7 }
 0x1e9   : > { %v2245_v39 = vpop.f32.mrf.mxu0 }
 0x1ea   : > { %v2153_v46 = vpop.f32.mrf.mxu3  ;;  %v2334_v2 = vpop.f32.mrf.mxu1 }
 0x1eb   : > { %v2154_v1 = vadd.f32 %v2153_v46, %v1921_v53  ;;  %v5772_v53 = vld [vmem:[#allocation26_spill] sm:$0xff] }
 0x1ec   : > { %3806 = vmatmul.msk.bf16.gmra.mxu2 %vm1065_vm3, %v4572_v19  ;;  %3836 = vmatmul.msk.bf16.gmra.mxu0 %vm1065_vm3, %v4866_v54 }
 0x1ed   : > { %v5241_v63 = vadd.f32 %v2242_v41, %v2154_v1  ;;  %v5774_v1 = vld [vmem:[#allocation28_spill] sm:$0xff] }
 0x1ef   : > { %3821 = vmatmul.msk.bf16.gmra.mxu3 %vm1065_vm3, %v4576_v58  ;;  %v1923_v37 = vpop.f32.mrf.mxu2  ;;  %v5773_v58 = vld [vmem:[#allocation41_spill] sm:$0xff] }
 0x1f0   : > { %v1924_v52 = vadd.f32 %v1923_v37, %v5770_v56 }
 0x1f1   : > { %v2247_v30 = vpop.f32.mrf.mxu0 }
 0x1f2   : > { %v2156_v40 = vpop.f32.mrf.mxu3  ;;  %v5246_v36 = vpop.f32.mrf.mxu1 }
 0x1f3   : > { %v2157_v33 = vadd.f32 %v2156_v40, %v1924_v52 }
 0x1f5   : > { %v2246_v31 = vadd.f32 %v2245_v39, %v2157_v33 }
 0x1f7   : > { %v5248_v5 = vadd.f32 %v2334_v2, %v2246_v31  ;;  %v1925_v19 = vpop.f32.mrf.mxu2  ;;  %v5775_v2 = vld [vmem:[#allocation40_spill] sm:$0xff] }
 0x1f8   : > { %v1926_v14 = vadd.f32 %v1925_v19, %v5771_v18  ;;  %v3955_v18 = vld [vmem:[%s5631_s2] sm:$0xff] }
 0x1f9   : > { %v2250_v41 = vpop.f32.mrf.mxu0  ;;  %3035 = vmatpush.bf16.msra.mxu1 %v3955_v18 }
 0x1fa   : > { %v2158_v54 = vpop.f32.mrf.mxu3  ;;  %v2339_v7 = vpop.f32.mrf.mxu1 }
 0x1fb   : > { %v2159_v35 = vadd.f32 %v2158_v54, %v1926_v14  ;;  %v5778_v14 = vld [vmem:[#allocation42_spill] sm:$0xff] }
 0x1fc   : > { %3807 = vmatmul.msk.bf16.gmra.mxu2 %vm1065_vm3, %v5772_v53  ;;  %3837 = vmatmul.msk.bf16.gmra.mxu0 %vm1065_vm3, %v5773_v58 }
 0x1fd   : > { %v5255_v46 = vadd.f32 %v2247_v30, %v2159_v35 }
 0x1ff   : > { %3822 = vmatmul.msk.bf16.gmra.mxu3 %vm1065_vm3, %v5774_v1  ;;  %v1928_v39 = vpop.f32.mrf.mxu2  ;;  %v5779_v1 = vld [vmem:[#allocation29_spill] sm:$0xff] }
 0x200   : > { %v1929_v37 = vadd.f32 %v1928_v39, %v5775_v2  ;;  %v5780_v39 = vld [vmem:[#allocation44_spill] sm:$0xff] }
 0x201   : > { %v2252_v52 = vpop.f32.mrf.mxu0 }
 0x202   : > { %v2161_v56 = vpop.f32.mrf.mxu3  ;;  %v5260_v31 = vpop.f32.mrf.mxu1 }
 0x203   : > { %v2162_v40 = vadd.f32 %v2161_v56, %v1929_v37  ;;  %5776 = vst [vmem:[#allocation18_spill] sm:$0xff] %v5260_v31  ;;  %v5782_v56 = vld [vmem:[#allocation43_spill] sm:$0xff] }
 0x205   : > { %v2251_v33 = vadd.f32 %v2250_v41, %v2162_v40 }
 0x207   : > { %v5262_v19 = vadd.f32 %v2339_v7, %v2251_v33  ;;  %v1930_v30 = vpop.f32.mrf.mxu2  ;;  %v5781_v7 = vld [vmem:[#allocation31_spill] sm:$0xff] }
 0x208   : > { %v1931_v54 = vadd.f32 %v1930_v30, %v5778_v14 }
 0x209   : > { %5777 = vst [vmem:[#allocation22_spill] sm:$0xff] %v5262_v19  ;;  %v2255_v53 = vpop.f32.mrf.mxu0 }
 0x20a   : > { %v2163_v35 = vpop.f32.mrf.mxu3  ;;  %v2344_v37 = vpop.f32.mrf.mxu1 }
 0x20b   : > { %v2164_v58 = vadd.f32 %v2163_v35, %v1931_v54 }
 0x20c   : > { %3808 = vmatmul.msk.bf16.gmra.mxu2 %vm1065_vm3, %v5779_v1  ;;  %3838 = vmatmul.msk.bf16.gmra.mxu0 %vm1065_vm3, %v5780_v39  ;;  %v5783_v1 = vld [vmem:[#allocation45_spill] sm:$0xff] }
 0x20d   : > { %v5272_v41 = vadd.f32 %v2252_v52, %v2164_v58 }
 0x20f   : > { %3823 = vmatmul.msk.bf16.gmra.mxu3 %vm1065_vm3, %v5781_v7  ;;  %v1933_v2 = vpop.f32.mrf.mxu2 }
 0x210   : > { %v1934_v40 = vadd.f32 %v1933_v2, %v5782_v56  ;;  %v5784_v2 = vld [vmem:[#allocation46_spill] sm:$0xff] }
 0x211   : > { %v2257_v30 = vpop.f32.mrf.mxu0 }
 0x212   : > { %v2166_v33 = vpop.f32.mrf.mxu3  ;;  %v5280_v52 = vpop.f32.mrf.mxu1 }
 0x213   : > { %v2167_v18 = vadd.f32 %v2166_v33, %v1934_v40 }
 0x215   : > { %v2256_v14 = vadd.f32 %v2255_v53, %v2167_v18 }
 0x217   : > { %v5277_v54 = vadd.f32 %v2344_v37, %v2256_v14  ;;  %v1935_v35 = vpop.f32.mrf.mxu2 }
 0x218   : > { %v1936_v31 = vadd.f32 %v1935_v35, %v5783_v1 }
 0x219   : > { %v2260_v39 = vpop.f32.mrf.mxu0 }
 0x21a   : > { %v2168_v19 = vpop.f32.mrf.mxu3  ;;  %v2349_v18 = vpop.f32.mrf.mxu1 }
 0x21b   : > { %v2169_v58 = vadd.f32 %v2168_v19, %v1936_v31 }
 0x21c   : > { %3809 = vmatmul.msk.bf16.gmra.mxu2 %vm1065_vm3, %v5735_v27  ;;  %3839 = vmatmul.msk.bf16.gmra.mxu0 %vm1065_vm3, %v4953_v57  ;;  %v5786_v27 = vld [vmem:[#allocation47_spill] sm:$0xff] }
 0x21d   : > { %v5286_v7 = vadd.f32 %v2257_v30, %v2169_v58 }
 0x21f   : > { %3824 = vmatmul.msk.bf16.gmra.mxu3 %vm1065_vm3, %v5734_v50  ;;  %v1938_v53 = vpop.f32.mrf.mxu2  ;;  %v5787_v50 = vld [vmem:[#allocation9_spill] sm:$0xff] }
 0x220   : > { %v1939_v37 = vadd.f32 %v1938_v53, %v5784_v2  ;;  %v5789_v53 = vld [vmem:[#allocation8_spill] sm:$0xff] }
 0x221   : > { %v2262_v40 = vpop.f32.mrf.mxu0 }
 0x222   : > { %v2171_v56 = vpop.f32.mrf.mxu3 }
 0x223   : > { %v2172_v33 = vadd.f32 %v2171_v56, %v1939_v37 }
 0x225   : > { %v2261_v14 = vadd.f32 %v2260_v39, %v2172_v33 }
 0x227   : > { %v5291_v31 = vadd.f32 %v2349_v18, %v2261_v14  ;;  %v1940_v19 = vpop.f32.mrf.mxu2  ;;  %v5790_v18 = vld [vmem:[#allocation48_spill] sm:$0xff] }
 0x228   : > { %v1941_v35 = vadd.f32 %v1940_v19, %v5786_v27  ;;  %v5303_v19 = vld [vmem:[#allocation2] ss:$0 sm:$0xff] }
 0x229   : > { %5785 = vst [vmem:[#allocation16_spill] sm:$0xff] %v5291_v31  ;;  %v2734_v57 = vpop.f32.mrf.mxu0 }
 0x22a   : > { %v2173_v1 = vpop.f32.mrf.mxu3 }
 0x22b   : > { %v2174_v30 = vadd.f32 %v2173_v1, %v1941_v35 }
 0x22c   : > { %3810 = vmatmul.msk.bf16.gmra.mxu2 %vm1065_vm3, %v5741_v8  ;;  %3840 = vmatmul.msk.bf16.gmra.mxu0 %vm1065_vm3, %v5787_v50 }
 0x22d   : > { %v5298_v58 = vadd.f32 %v2262_v40, %v2174_v30  ;;  %v5306_v40 = vld [vmem:[#allocation2 + $0x1] ss:$0 sm:$0xff] }
 0x22f   : > { %5788 = vst [vmem:[#allocation15_spill] sm:$0xff] %v5298_v58  ;;  %3825 = vmatmul.msk.bf16.gmra.mxu3 %vm1065_vm3, %v5789_v53  ;;  %v2556_v39 = vpop.f32.mrf.mxu2 }
 0x231   : > { %v2736_v56 = vpop.f32.mrf.mxu0 }
 0x232   : > { %v2645_v2 = vpop.f32.mrf.mxu3 }
 0x233   : > { %v2646_v37 = vadd.f32 %v2645_v2, %v2556_v39 }
 0x235   : > { %v2735_v33 = vadd.f32 %v2734_v57, %v2646_v37  ;;  %v5791_v57 = vld [vmem:[#allocation6_spill] sm:$0xff] }
 0x237   : > { %v2814_v14 = vadd.f32 %v2735_v33, %v5790_v18  ;;  %v2558_v27 = vpop.f32.mrf.mxu2 }
 0x239   : > { %v2739_v1 = vpop.f32.mrf.mxu0  ;;  %v2851_v50 = vmul.f32 %v5303_v19, %v2814_v14 }
 0x23a   : > { %v2647_v35 = vpop.f32.mrf.mxu3 }
 0x23b   : > { %v2648_v8 = vadd.f32 %v2647_v35, %v2558_v27  ;;  %v2884_v39 = vadd.f32 %v5306_v40, %v2851_v50 }
 0x23c   : > { %3811 = vmatmul.msk.bf16.gmra.mxu2 %vm1065_vm3, %v5747_v29  ;;  %3841 = vmatmul.msk.bf16.gmra.mxu0 %vm1065_vm3, %v5011_v38  ;;  %v5792_v38 = vld [vmem:[#allocation5_spill] sm:$0xff] }
 0x23d   : > { %v2737_v30 = vadd.f32 %v2736_v56, %v2648_v8  ;;  %v2916_v27 = vmax.f32 %v2884_v39, 0.0  ;;  %v5793_v39 = vld [vmem:[#allocation10_spill] sm:$0xff] }
 0x23f   : > { %v2815_v53 = vadd.f32 %v2737_v30, %v5791_v57  ;;  %3826 = vmatmul.msk.bf16.gmra.mxu3 %vm1065_vm3, %v5746_v25  ;;  %v2561_v37 = vpop.f32.mrf.mxu2 }
 0x241   : > { %v2852_v2 = vmul.f32 %v5303_v19, %v2815_v53  ;;  %v2741_v14 = vpop.f32.mrf.mxu0 }
 0x242   : > { %v2650_v33 = vpop.f32.mrf.mxu3 }
 0x243   : > { %v2885_v18 = vadd.f32 %v5306_v40, %v2852_v2  ;;  %v2651_v56 = vadd.f32 %v2650_v33, %v2561_v37 }
 0x245   : > { %v2917_v29 = vmax.f32 %v2885_v18, 0.0  ;;  %v2740_v35 = vadd.f32 %v2739_v1, %v2651_v56 }
 0x247   : > { %v2948_v8 = vpack.c.bf16 %v2917_v29, %v2916_v27  ;;  %v2816_v58 = vadd.f32 %v2740_v35, %v5792_v38  ;;  %v2563_v30 = vpop.f32.mrf.mxu2 }
 0x249   : > { %3036 = vmatmul.bf16.vlgmr.msra.gmra.mxu1 %v2948_v8  ;;  %v2744_v31 = vpop.f32.mrf.mxu0  ;;  %v2853_v50 = vmul.f32 %v5303_v19, %v2816_v58 }
 0x24a   : > { %v2652_v57 = vpop.f32.mrf.mxu3 }
 0x24b   : > { %v2653_v25 = vadd.f32 %v2652_v57, %v2563_v30  ;;  %v2886_v33 = vadd.f32 %v5306_v40, %v2853_v50 }
 0x24c   : > { %3812 = vmatmul.msk.bf16.gmra.mxu2 %vm1065_vm3, %v5753_v49  ;;  %3842 = vmatmul.msk.bf16.gmra.mxu0 %vm1065_vm3, %v5043_v22  ;;  %v5794_v22 = vld [vmem:[#allocation13_spill] sm:$0xff] }
 0x24d   : > { %v2742_v53 = vadd.f32 %v2741_v14, %v2653_v25  ;;  %v2918_v49 = vmax.f32 %v2886_v33, 0.0 }
 0x24f   : > { %v2817_v2 = vadd.f32 %v2742_v53, %v5793_v39  ;;  %3827 = vmatmul.msk.bf16.gmra.mxu3 %vm1065_vm3, %v5752_v0  ;;  %v2566_v37 = vpop.f32.mrf.mxu2 }
 0x251   : > { %v2854_v1 = vmul.f32 %v5303_v19, %v2817_v2  ;;  %v2746_v58 = vpop.f32.mrf.mxu0 }
 0x252   : > { %v2655_v18 = vpop.f32.mrf.mxu3 }
 0x253   : > { %v2656_v56 = vadd.f32 %v2655_v18, %v2566_v37  ;;  %v2887_v14 = vadd.f32 %v5306_v40, %v2854_v1 }
 0x255   : > { %v2745_v27 = vadd.f32 %v2744_v31, %v2656_v56  ;;  %v2919_v29 = vmax.f32 %v2887_v14, 0.0  ;;  %v5795_v31 = vld [vmem:[#allocation7_spill] sm:$0xff] }
 0x257   : > { %v2949_v35 = vpack.c.bf16 %v2919_v29, %v2918_v49  ;;  %v2818_v8 = vadd.f32 %v2745_v27, %v5794_v22  ;;  %v2568_v38 = vpop.f32.mrf.mxu2 }
 0x259   : > { %3041 = vmatmul.bf16.gmra.mxu1 %v2949_v35  ;;  %v2749_v57 = vpop.f32.mrf.mxu0  ;;  %v2855_v25 = vmul.f32 %v5303_v19, %v2818_v8 }
 0x25a   : > { %v2657_v30 = vpop.f32.mrf.mxu3 }
 0x25b   : > { %v2658_v0 = vadd.f32 %v2657_v30, %v2568_v38  ;;  %v2888_v1 = vadd.f32 %v5306_v40, %v2855_v25  ;;  %v5797_v30 = vld [vmem:[#allocation17_spill] sm:$0xff] }
 0x25c   : > { %3813 = vmatmul.msk.bf16.gmra.mxu2 %vm1065_vm3, %v5759_v51  ;;  %3843 = vmatmul.msk.bf16.gmra.mxu0 %vm1065_vm3, %v5069_v26  ;;  %v5796_v26 = vld [vmem:[#allocation14_spill] sm:$0xff] }
 0x25d   : > { %v2747_v53 = vadd.f32 %v2746_v58, %v2658_v0  ;;  %v2920_v51 = vmax.f32 %v2888_v1, 0.0 }
 0x25f   : > { %v2819_v50 = vadd.f32 %v2747_v53, %v5795_v31  ;;  %3828 = vmatmul.msk.bf16.gmra.mxu3 %vm1065_vm3, %v5757_v16  ;;  %v2571_v2 = vpop.f32.mrf.mxu2 }
 0x261   : > { %v2856_v39 = vmul.f32 %v5303_v19, %v2819_v50  ;;  %v2751_v18 = vpop.f32.mrf.mxu0 }
 0x262   : > { %v2660_v37 = vpop.f32.mrf.mxu3 }
 0x263   : > { %v2661_v33 = vadd.f32 %v2660_v37, %v2571_v2  ;;  %v2889_v56 = vadd.f32 %v5306_v40, %v2856_v39 }
 0x265   : > { %v2750_v58 = vadd.f32 %v2749_v57, %v2661_v33  ;;  %v2921_v14 = vmax.f32 %v2889_v56, 0.0 }
 0x267   : > { %v2950_v27 = vpack.c.bf16 %v2921_v14, %v2920_v51  ;;  %v2820_v49 = vadd.f32 %v2750_v58, %v5796_v26  ;;  %v2573_v29 = vpop.f32.mrf.mxu2  ;;  %v5798_v51 = vld [vmem:[#allocation11_spill] sm:$0xff]  ;;  %v5799_v14 = vld [vmem:[#allocation12_spill] sm:$0xff] }
 0x269   : > { %3046 = vmatmul.bf16.gmra.mxu1 %v2950_v27  ;;  %v2754_v22 = vpop.f32.mrf.mxu0  ;;  %v2857_v8 = vmul.f32 %v5303_v19, %v2820_v49  ;;  %v2297_v27 = vadd.f32 %v5799_v14, %v5798_v51 }
 0x26a   : > { %v2662_v35 = vpop.f32.mrf.mxu3 }
 0x26b   : > { %v2663_v16 = vadd.f32 %v2662_v35, %v2573_v29  ;;  %v2890_v53 = vadd.f32 %v5306_v40, %v2857_v8 }
 0x26c   : > { %3814 = vmatmul.msk.bf16.gmra.mxu2 %vm1065_vm3, %v5762_v55  ;;  %3844 = vmatmul.msk.bf16.gmra.mxu0 %vm1065_vm3, %v5103_v43 }
 0x26d   : > { %v2752_v38 = vadd.f32 %v2751_v18, %v2663_v16  ;;  %v2922_v55 = vmax.f32 %v2890_v53, 0.0 }
 0x26f   : > { %v2821_v0 = vadd.f32 %v2752_v38, %v5797_v30  ;;  %3829 = vmatmul.msk.bf16.gmra.mxu3 %vm1065_vm3, %v5761_v17  ;;  %v2576_v25 = vpop.f32.mrf.mxu2 }
 0x271   : > { %v2858_v57 = vmul.f32 %v5303_v19, %v2821_v0  ;;  %v2756_v39 = vpop.f32.mrf.mxu0 }
 0x272   : > { %v2665_v31 = vpop.f32.mrf.mxu3 }
 0x273   : > { %v2666_v50 = vadd.f32 %v2665_v31, %v2576_v25  ;;  %v2891_v2 = vadd.f32 %v5306_v40, %v2858_v57 }
 0x275   : > { %v2755_v1 = vadd.f32 %v2754_v22, %v2666_v50  ;;  %v2923_v37 = vmax.f32 %v2891_v2, 0.0 }
 0x277   : > { %v2951_v33 = vpack.c.bf16 %v2923_v37, %v2922_v55  ;;  %v2822_v43 = vadd.f32 %v2755_v1, %v5098_v59  ;;  %v2578_v18 = vpop.f32.mrf.mxu2  ;;  %v5800_v55 = vld [vmem:[#allocation30_spill] sm:$0xff] }
 0x279   : > { %3051 = vmatmul.bf16.gmra.mxu1 %v2951_v33  ;;  %v2759_v58 = vpop.f32.mrf.mxu0  ;;  %v2859_v26 = vmul.f32 %v5303_v19, %v2822_v43  ;;  %v5801_v33 = vld [vmem:[#allocation32_spill] sm:$0xff] }
 0x27a   : > { %v2667_v56 = vpop.f32.mrf.mxu3 }
 0x27b   : > { %v2668_v17 = vadd.f32 %v2667_v56, %v2578_v18  ;;  %v2892_v16 = vadd.f32 %v5306_v40, %v2859_v26 }
 0x27c   : > { %3815 = vmatmul.msk.bf16.gmra.mxu2 %vm1065_vm3, %v5763_v11  ;;  %3845 = vmatmul.msk.bf16.gmra.mxu0 %vm1065_vm3, %v5130_v61 }
 0x27d   : > { %v2757_v49 = vadd.f32 %v2756_v39, %v2668_v17  ;;  %v2924_v57 = vmax.f32 %v2892_v16, 0.0  ;;  %v2302_v39 = vadd.f32 %v5120_v28, %v5140_v10 }
 0x27f   : > { %v2823_v29 = vadd.f32 %v2757_v49, %v2297_v27  ;;  %3830 = vmatmul.msk.bf16.gmra.mxu3 %vm1065_vm3, %v4645_v48  ;;  %v2581_v35 = vpop.f32.mrf.mxu2 }
 0x281   : > { %v2860_v59 = vmul.f32 %v5303_v19, %v2823_v29  ;;  %v2761_v38 = vpop.f32.mrf.mxu0 }
 0x282   : > { %v2670_v22 = vpop.f32.mrf.mxu3 }
 0x283   : > { %v2671_v8 = vadd.f32 %v2670_v22, %v2581_v35  ;;  %v2893_v30 = vadd.f32 %v5306_v40, %v2860_v59  ;;  %v2307_v35 = vadd.f32 %v5149_v44, %v5160_v6 }
 0x285   : > { %v2760_v0 = vadd.f32 %v2759_v58, %v2671_v8  ;;  %v2925_v11 = vmax.f32 %v2893_v30, 0.0  ;;  %v5802_v8 = vmov 0  }
 0x287   : > { %v2952_v25 = vpack.c.bf16 %v2925_v11, %v2924_v57  ;;  %v2824_v61 = vadd.f32 %v2760_v0, %v5123_v23  ;;  %v2583_v53 = vpop.f32.mrf.mxu2 }
 0x289   : > { %3056 = vmatmul.bf16.gmra.mxu1 %v2952_v25  ;;  %v2764_v50 = vpop.f32.mrf.mxu0  ;;  %v2861_v2 = vmul.f32 %v5303_v19, %v2824_v61 }
 0x28a   : > { %v2672_v31 = vpop.f32.mrf.mxu3 }
 0x28b   : > { %v2673_v48 = vadd.f32 %v2672_v31, %v2583_v53  ;;  %v2894_v18 = vadd.f32 %v5306_v40, %v2861_v2 }
 0x28c   : > { %3816 = vmatmul.msk.bf16.gmra.mxu2 %vm1065_vm3, %v5800_v55  ;;  %3846 = vmatmul.msk.bf16.gmra.mxu0 %vm1065_vm3, %v5154_v21  ;;  %v2312_v55 = vadd.f32 %v5167_v47, %v5179_v20 }
 0x28d   : > { %v2762_v1 = vadd.f32 %v2761_v38, %v2673_v48  ;;  %v2926_v51 = vmax.f32 %v2894_v18, 0.0 }
 0x28f   : > { %v2825_v37 = vadd.f32 %v2762_v1, %v2302_v39  ;;  %3831 = vmatmul.msk.bf16.gmra.mxu3 %vm1065_vm3, %v5801_v33  ;;  %v2586_v43 = vpop.f32.mrf.mxu2 }
 0x291   : > { %v2862_v23 = vmul.f32 %v5303_v19, %v2825_v37  ;;  %v2766_v10 = vpop.f32.mrf.mxu0 }
 0x292   : > { %v2675_v56 = vpop.f32.mrf.mxu3 }
 0x293   : > { %v2676_v28 = vadd.f32 %v2675_v56, %v2586_v43  ;;  %v2895_v17 = vadd.f32 %v5306_v40, %v2862_v23 }
 0x295   : > { %v2765_v58 = vadd.f32 %v2764_v50, %v2676_v28  ;;  %v2927_v14 = vmax.f32 %v2895_v17, 0.0 }
 0x297   : > { %v2953_v27 = vpack.c.bf16 %v2927_v14, %v2926_v51  ;;  %v2826_v21 = vadd.f32 %v2765_v58, %v5151_v9  ;;  %v2588_v26 = vpop.f32.mrf.mxu2 }
 0x299   : > { %3061 = vmatmul.bf16.gmra.mxu1 %v2953_v27  ;;  %v2769_v59 = vpop.f32.mrf.mxu0  ;;  %v2863_v16 = vmul.f32 %v5303_v19, %v2826_v21 }
 0x29a   : > { %v2677_v49 = vpop.f32.mrf.mxu3 }
 0x29b   : > { %v2678_v29 = vadd.f32 %v2677_v49, %v2588_v26  ;;  %v2896_v0 = vadd.f32 %v5306_v40, %v2863_v16  ;;  %v5401_v16 = vpop.f32.mrf.mxu1 }
 0x29c   : > { %2630 = vmatmul.bf16.gmra.mxu2 %v5802_v8  ;;  %2808 = vmatmul.bf16.gmra.mxu0 %v5802_v8 }
 0x29d   : > { %v2767_v22 = vadd.f32 %v2766_v10, %v2678_v29  ;;  %v2928_v61 = vmax.f32 %v2896_v0, 0.0  ;;  %v2317_v29 = vadd.f32 %v5184_v45, %v5193_v24 }
 0x29f   : > { %v2827_v38 = vadd.f32 %v2767_v22, %v2307_v35  ;;  %2719 = vmatmul.bf16.gmra.mxu3 %v5802_v8  ;;  %v2591_v30 = vpop.f32.mrf.mxu2 }
 0x2a1   : > { %v2864_v9 = vmul.f32 %v5303_v19, %v2827_v38  ;;  %v2771_v25 = vpop.f32.mrf.mxu0 }
 0x2a2   : > { %v2680_v57 = vpop.f32.mrf.mxu3 }
 0x2a3   : > { %v2681_v11 = vadd.f32 %v2680_v57, %v2591_v30  ;;  %v2897_v44 = vadd.f32 %v5306_v40, %v2864_v9  ;;  %v5405_v57 = vld [vmem:[#allocation2 + $0x2] ss:$0 sm:$0xff] }
 0x2a5   : > { %v2770_v6 = vadd.f32 %v2769_v59, %v2681_v11  ;;  %v2929_v53 = vmax.f32 %v2897_v44, 0.0  ;;  %v5408_v11 = vld [vmem:[#allocation2 + $0x3] ss:$0 sm:$0xff] }
 0x2a7   : > { %v2954_v31 = vpack.c.bf16 %v2929_v53, %v2928_v61  ;;  %v2828_v48 = vadd.f32 %v2770_v6, %v5169_v62  ;;  %v2593_v50 = vpop.f32.mrf.mxu2 }
 0x2a9   : > { %3066 = vmatmul.bf16.gmra.mxu1 %v2954_v31  ;;  %v2774_v1 = vpop.f32.mrf.mxu0  ;;  %v2865_v37 = vmul.f32 %v5303_v19, %v2828_v48 }
 0x2aa   : > { %v2682_v39 = vpop.f32.mrf.mxu3 }
 0x2ab   : > { %v2683_v2 = vadd.f32 %v2682_v39, %v2593_v50  ;;  %v2898_v56 = vadd.f32 %v5306_v40, %v2865_v37 }
 0x2ad   : > { %v2772_v33 = vadd.f32 %v2771_v25, %v2683_v2  ;;  %v2930_v51 = vmax.f32 %v2898_v56, 0.0  ;;  %v4003_v2 = vld [vmem:[%s4134_s5] sm:$0xff] }
 0x2af   : > { %v2829_v23 = vadd.f32 %v2772_v33, %v2312_v55  ;;  %v2596_v18 = vpop.f32.mrf.mxu2 }
 0x2b1   : > { %v2866_v43 = vmul.f32 %v5303_v19, %v2829_v23  ;;  %v2776_v62 = vpop.f32.mrf.mxu0 }
 0x2b2   : > { %v2685_v28 = vpop.f32.mrf.mxu3 }
 0x2b3   : > { %v2686_v10 = vadd.f32 %v2685_v28, %v2596_v18  ;;  %v2899_v17 = vadd.f32 %v5306_v40, %v2866_v43 }
 0x2b5   : > { %v2775_v58 = vadd.f32 %v2774_v1, %v2686_v10  ;;  %v2931_v14 = vmax.f32 %v2899_v17, 0.0 }
 0x2b7   : > { %v2955_v27 = vpack.c.bf16 %v2931_v14, %v2930_v51  ;;  %v2830_v47 = vadd.f32 %v2775_v58, %v5186_v32  ;;  %v2598_v20 = vpop.f32.mrf.mxu2  ;;  %v4004_v51 = vld [vmem:[%s4134_s5 + $0x8] sm:$0xff] }
 0x2b9   : > { %3071 = vmatmul.bf16.gmra.mxu1 %v2955_v27  ;;  %v2779_v49 = vpop.f32.mrf.mxu0  ;;  %v2867_v59 = vmul.f32 %v5303_v19, %v2830_v47 }
 0x2ba   : > { %v2687_v21 = vpop.f32.mrf.mxu3 }
 0x2bb   : > { %v2688_v26 = vadd.f32 %v2687_v21, %v2598_v20  ;;  %v2900_v9 = vadd.f32 %v5306_v40, %v2867_v59 }
 0x2bd   : > { %v2777_v35 = vadd.f32 %v2776_v62, %v2688_v26  ;;  %v2932_v25 = vmax.f32 %v2900_v9, 0.0 }
 0x2bf   : > { %v2831_v22 = vadd.f32 %v2777_v35, %v2317_v29  ;;  %v2601_v38 = vpop.f32.mrf.mxu2 }
 0x2c1   : > { %v2868_v8 = vmul.f32 %v5303_v19, %v2831_v22  ;;  %v2781_v0 = vpop.f32.mrf.mxu0 }
 0x2c2   : > { %v2690_v32 = vpop.f32.mrf.mxu3 }
 0x2c3   : > { %v2691_v30 = vadd.f32 %v2690_v32, %v2601_v38  ;;  %v2901_v45 = vadd.f32 %v5306_v40, %v2868_v8  ;;  %v4005_v38 = vld [vmem:[%s4134_s5 + $0x10] sm:$0xff] }
 0x2c5   : > { %v2780_v24 = vadd.f32 %v2779_v49, %v2691_v30  ;;  %v2933_v44 = vmax.f32 %v2901_v45, 0.0 }
 0x2c6   : > { %v3037_v6 = vpop.f32.mrf.mxu1 }
 0x2c7   : > { %v3118_v61 = vmul.f32 %v5405_v57, %v3037_v6  ;;  %v2956_v53 = vpack.c.bf16 %v2933_v44, %v2932_v25  ;;  %v2832_v31 = vadd.f32 %v2780_v24, %v5200_v15  ;;  %v2603_v50 = vpop.f32.mrf.mxu2  ;;  %v2322_v15 = vadd.f32 %v5198_v3, %v5210_v12 }
 0x2c9   : > { %v3151_v48 = vadd.f32 %v5408_v11, %v3118_v61  ;;  %3076 = vmatmul.bf16.gmra.mxu1 %v2956_v53  ;;  %v2784_v37 = vpop.f32.mrf.mxu0  ;;  %v2869_v33 = vmul.f32 %v5303_v19, %v2832_v31 }
 0x2ca   : > { %v2692_v39 = vpop.f32.mrf.mxu3 }
 0x2cb   : > { %v3183_v1 = vadd.f32 %v4003_v2, %v3151_v48  ;;  %v2693_v55 = vadd.f32 %v2692_v39, %v2603_v50  ;;  %v2902_v17 = vadd.f32 %v5306_v40, %v2869_v33  ;;  %v4006_v50 = vld [vmem:[%s4134_s5 + $0x18] sm:$0xff] }
 0x2cd   : > { %3215 = vst.msk [vmem:[%s5418_s8] sm:$0xff] %vm1065_vm3, %v3183_v1  ;;  %v2782_v23 = vadd.f32 %v2781_v0, %v2693_v55  ;;  %v2934_v20 = vmax.f32 %v2902_v17, 0.0  ;;  %v2327_v0 = vadd.f32 %v5215_v60, %v5224_v34 }
 0x2ce   : > { %v3039_v43 = vpop.f32.mrf.mxu1 }
 0x2cf   : > { %v2833_v18 = vadd.f32 %v2782_v23, %v2322_v15  ;;  %v3119_v56 = vmul.f32 %v5405_v57, %v3039_v43  ;;  %v2606_v62 = vpop.f32.mrf.mxu2 }
 0x2d1   : > { %v2870_v28 = vmul.f32 %v5303_v19, %v2833_v18  ;;  %v3152_v10 = vadd.f32 %v5408_v11, %v3119_v56  ;;  %v2786_v14 = vpop.f32.mrf.mxu0 }
 0x2d2   : > { %v2695_v58 = vpop.f32.mrf.mxu3 }
 0x2d3   : > { %v3184_v3 = vadd.f32 %v4004_v51, %v3152_v10  ;;  %v2696_v12 = vadd.f32 %v2695_v58, %v2606_v62  ;;  %v2903_v27 = vadd.f32 %v5306_v40, %v2870_v28  ;;  %v4007_v10 = vld [vmem:[%s4134_s5 + $0x20] sm:$0xff]  ;;  %v2332_v51 = vadd.f32 %v5229_v13, %v5241_v63 }
 0x2d5   : > { %3216 = vst.msk [vmem:[%s5418_s8 + $0x8] sm:$0xff] %vm1065_vm3, %v3184_v3  ;;  %v2785_v47 = vadd.f32 %v2784_v37, %v2696_v12  ;;  %v2935_v21 = vmax.f32 %v2903_v27, 0.0 }
 0x2d6   : > { %v3042_v26 = vpop.f32.mrf.mxu1 }
 0x2d7   : > { %v3120_v49 = vmul.f32 %v5405_v57, %v3042_v26  ;;  %v2957_v29 = vpack.c.bf16 %v2935_v21, %v2934_v20  ;;  %v2834_v59 = vadd.f32 %v2785_v47, %v5217_v42  ;;  %v2608_v22 = vpop.f32.mrf.mxu2 }
 0x2d9   : > { %v3153_v35 = vadd.f32 %v5408_v11, %v3120_v49  ;;  %3081 = vmatmul.bf16.gmra.mxu1 %v2957_v29  ;;  %v2789_v30 = vpop.f32.mrf.mxu0  ;;  %v2871_v45 = vmul.f32 %v5303_v19, %v2834_v59  ;;  %v4008_v29 = vld [vmem:[%s4134_s5 + $0x28] sm:$0xff] }
 0x2da   : > { %v2697_v8 = vpop.f32.mrf.mxu3 }
 0x2db   : > { %v3185_v9 = vadd.f32 %v4005_v38, %v3153_v35  ;;  %v2698_v32 = vadd.f32 %v2697_v8, %v2608_v22  ;;  %v2904_v31 = vadd.f32 %v5306_v40, %v2871_v45 }
 0x2dd   : > { %3217 = vst.msk [vmem:[%s5418_s8 + $0x10] sm:$0xff] %vm1065_vm3, %v3185_v9  ;;  %v2787_v24 = vadd.f32 %v2786_v14, %v2698_v32  ;;  %v2936_v55 = vmax.f32 %v2904_v31, 0.0 }
 0x2de   : > { %v3044_v42 = vpop.f32.mrf.mxu1 }
 0x2df   : > { %v2835_v25 = vadd.f32 %v2787_v24, %v2327_v0  ;;  %v3121_v44 = vmul.f32 %v5405_v57, %v3044_v42  ;;  %v2611_v53 = vpop.f32.mrf.mxu2 }
 0x2e1   : > { %v2872_v6 = vmul.f32 %v5303_v19, %v2835_v25  ;;  %v3154_v61 = vadd.f32 %v5408_v11, %v3121_v44  ;;  %v2791_v39 = vpop.f32.mrf.mxu0  ;;  %v4009_v25 = vld [vmem:[%s4134_s5 + $0x30] sm:$0xff] }
 0x2e2   : > { %v2700_v48 = vpop.f32.mrf.mxu3 }
 0x2e3   : > { %v3186_v60 = vadd.f32 %v4006_v50, %v3154_v61  ;;  %v2701_v34 = vadd.f32 %v2700_v48, %v2611_v53  ;;  %v2905_v2 = vadd.f32 %v5306_v40, %v2872_v6  ;;  %v2337_v53 = vadd.f32 %v5246_v36, %v5255_v46 }
 0x2e5   : > { %3218 = vst.msk [vmem:[%s5418_s8 + $0x18] sm:$0xff] %vm1065_vm3, %v3186_v60  ;;  %v2790_v1 = vadd.f32 %v2789_v30, %v2701_v34  ;;  %v2937_v37 = vmax.f32 %v2905_v2, 0.0 }
 0x2e6   : > { %v3047_v15 = vpop.f32.mrf.mxu1 }
 0x2e7   : > { %v3122_v33 = vmul.f32 %v5405_v57, %v3047_v15  ;;  %v2958_v23 = vpack.c.bf16 %v2937_v37, %v2936_v55  ;;  %v2836_v43 = vadd.f32 %v2790_v1, %v5231_v4  ;;  %v2613_v56 = vpop.f32.mrf.mxu2  ;;  %v4010_v37 = vld [vmem:[%s4134_s5 + $0x38] sm:$0xff] }
 0x2e9   : > { %v3155_v18 = vadd.f32 %v5408_v11, %v3122_v33  ;;  %3086 = vmatmul.bf16.gmra.mxu1 %v2958_v23  ;;  %v2794_v58 = vpop.f32.mrf.mxu0  ;;  %v2873_v3 = vmul.f32 %v5303_v19, %v2836_v43 }
 0x2ea   : > { %v2702_v28 = vpop.f32.mrf.mxu3 }
 0x2eb   : > { %v3187_v62 = vadd.f32 %v4007_v10, %v3155_v18  ;;  %v2703_v17 = vadd.f32 %v2702_v28, %v2613_v56  ;;  %v2906_v26 = vadd.f32 %v5306_v40, %v2873_v3 }
 0x2ed   : > { %3219 = vst.msk [vmem:[%s5418_s8 + $0x20] sm:$0xff] %vm1065_vm3, %v3187_v62  ;;  %v2792_v12 = vadd.f32 %v2791_v39, %v2703_v17  ;;  %v2938_v8 = vmax.f32 %v2906_v26, 0.0  ;;  %v5803_v62 = vld [vmem:[#allocation22_spill] sm:$0xff] }
 0x2ee   : > { %v3049_v4 = vpop.f32.mrf.mxu1 }
 0x2ef   : > { %v2837_v14 = vadd.f32 %v2792_v12, %v2332_v51  ;;  %v3123_v27 = vmul.f32 %v5405_v57, %v3049_v4  ;;  %v2616_v21 = vpop.f32.mrf.mxu2  ;;  %v4011_v12 = vld [vmem:[%s4134_s5 + $0x40] sm:$0xff] }
 0x2f1   : > { %v2874_v47 = vmul.f32 %v5303_v19, %v2837_v14  ;;  %v3156_v20 = vadd.f32 %v5408_v11, %v3123_v27  ;;  %v2796_v59 = vpop.f32.mrf.mxu0  ;;  %v5804_v27 = vld [vmem:[#allocation18_spill] sm:$0xff] }
 0x2f2   : > { %v2705_v49 = vpop.f32.mrf.mxu3 }
 0x2f3   : > { %v3188_v13 = vadd.f32 %v4008_v29, %v3156_v20  ;;  %v2706_v63 = vadd.f32 %v2705_v49, %v2616_v21  ;;  %v2907_v35 = vadd.f32 %v5306_v40, %v2874_v47  ;;  %v2342_v47 = vadd.f32 %v5804_v27, %v5272_v41  ;;  %v4012_v41 = vld [vmem:[%s4134_s5 + $0x48] sm:$0xff] }
 0x2f5   : > { %3220 = vst.msk [vmem:[%s5418_s8 + $0x28] sm:$0xff] %vm1065_vm3, %v3188_v13  ;;  %v2795_v22 = vadd.f32 %v2794_v58, %v2706_v63  ;;  %v2939_v38 = vmax.f32 %v2907_v35, 0.0 }
 0x2f6   : > { %v3052_v9 = vpop.f32.mrf.mxu1 }
 0x2f7   : > { %v3124_v32 = vmul.f32 %v5405_v57, %v3052_v9  ;;  %v2959_v30 = vpack.c.bf16 %v2939_v38, %v2938_v8  ;;  %v2838_v0 = vadd.f32 %v2795_v22, %v5248_v5  ;;  %v2618_v24 = vpop.f32.mrf.mxu2 }
 0x2f9   : > { %v3157_v45 = vadd.f32 %v5408_v11, %v3124_v32  ;;  %3091 = vmatmul.bf16.gmra.mxu1 %v2959_v30  ;;  %v2799_v61 = vpop.f32.mrf.mxu0  ;;  %v2875_v31 = vmul.f32 %v5303_v19, %v2838_v0 }
 0x2fa   : > { %v2707_v42 = vpop.f32.mrf.mxu3 }
 0x2fb   : > { %v3189_v44 = vadd.f32 %v4009_v25, %v3157_v45  ;;  %v2708_v6 = vadd.f32 %v2707_v42, %v2618_v24  ;;  %v2908_v1 = vadd.f32 %v5306_v40, %v2875_v31 }
 0x2fd   : > { %3221 = vst.msk [vmem:[%s5418_s8 + $0x30] sm:$0xff] %vm1065_vm3, %v3189_v44  ;;  %v2797_v48 = vadd.f32 %v2796_v59, %v2708_v6  ;;  %v2940_v43 = vmax.f32 %v2908_v1, 0.0 }
 0x2fe   : > { %v3054_v5 = vpop.f32.mrf.mxu1 }
 0x2ff   : > { %v2839_v50 = vadd.f32 %v2797_v48, %v2337_v53  ;;  %v3125_v60 = vmul.f32 %v5405_v57, %v3054_v5  ;;  %v2621_v2 = vpop.f32.mrf.mxu2  ;;  %v4013_v48 = vld [vmem:[%s4134_s5 + $0x50] sm:$0xff] }
 0x301   : > { %v2876_v34 = vmul.f32 %v5303_v19, %v2839_v50  ;;  %v3158_v39 = vadd.f32 %v5408_v11, %v3125_v60  ;;  %v2801_v33 = vpop.f32.mrf.mxu0  ;;  %v2347_v60 = vadd.f32 %v5280_v52, %v5286_v7  ;;  %v4014_v52 = vld [vmem:[%s4134_s5 + $0x58] sm:$0xff] }
 0x302   : > { %v2710_v55 = vpop.f32.mrf.mxu3 }
 0x303   : > { %v3190_v36 = vadd.f32 %v4010_v37, %v3158_v39  ;;  %v2711_v46 = vadd.f32 %v2710_v55, %v2621_v2  ;;  %v2909_v15 = vadd.f32 %v5306_v40, %v2876_v34 }
 0x305   : > { %3222 = vst.msk [vmem:[%s5418_s8 + $0x38] sm:$0xff] %vm1065_vm3, %v3190_v36  ;;  %v2800_v23 = vadd.f32 %v2799_v61, %v2711_v46  ;;  %v2941_v18 = vmax.f32 %v2909_v15, 0.0 }
 0x306   : > { %v3057_v56 = vpop.f32.mrf.mxu1 }
 0x307   : > { %v3126_v28 = vmul.f32 %v5405_v57, %v3057_v56  ;;  %v2960_v10 = vpack.c.bf16 %v2941_v18, %v2940_v43  ;;  %v2840_v17 = vadd.f32 %v2800_v23, %v5803_v62  ;;  %v2623_v51 = vpop.f32.mrf.mxu2 }
 0x309   : > { %v3159_v58 = vadd.f32 %v5408_v11, %v3126_v28  ;;  %3096 = vmatmul.bf16.gmra.mxu1 %v2960_v10  ;;  %v2877_v20 = vmul.f32 %v5303_v19, %v2840_v17  ;;  %v2804_v26 = vpop.f32.mrf.mxu0 }
 0x30a   : > { %v2712_v3 = vpop.f32.mrf.mxu3 }
 0x30b   : > { %v3191_v4 = vadd.f32 %v4011_v12, %v3159_v58  ;;  %v2713_v14 = vadd.f32 %v2712_v3, %v2623_v51  ;;  %v2910_v22 = vadd.f32 %v5306_v40, %v2877_v20  ;;  %v5805_v58 = vld [vmem:[#allocation16_spill] sm:$0xff] }
 0x30d   : > { %3223 = vst.msk [vmem:[%s5418_s8 + $0x40] sm:$0xff] %vm1065_vm3, %v3191_v4  ;;  %v2802_v21 = vadd.f32 %v2801_v33, %v2713_v14  ;;  %v2942_v0 = vmax.f32 %v2910_v22, 0.0  ;;  %v4015_v14 = vld [vmem:[%s4134_s5 + $0x60] sm:$0xff] }
 0x30e   : > { %v3059_v49 = vpop.f32.mrf.mxu1 }
 0x30f   : > { %v2841_v29 = vadd.f32 %v2802_v21, %v2342_v47  ;;  %v3127_v13 = vmul.f32 %v5405_v57, %v3059_v49  ;;  %v2626_v35 = vpop.f32.mrf.mxu2  ;;  %v5806_v21 = vld [vmem:[#allocation15_spill] sm:$0xff] }
 0x311   : > { %v2878_v63 = vmul.f32 %v5303_v19, %v2841_v29  ;;  %v3160_v59 = vadd.f32 %v5408_v11, %v3127_v13  ;;  %v2806_v44 = vpop.f32.mrf.mxu0 }
 0x312   : > { %v2715_v8 = vpop.f32.mrf.mxu3 }
 0x313   : > { %v3192_v38 = vadd.f32 %v4012_v41, %v3160_v59  ;;  %v2716_v9 = vadd.f32 %v2715_v8, %v2626_v35  ;;  %v2911_v32 = vadd.f32 %v5306_v40, %v2878_v63  ;;  %v4016_v41 = vld [vmem:[%s4134_s5 + $0x68] sm:$0xff] }
 0x315   : > { %3224 = vst.msk [vmem:[%s5418_s8 + $0x48] sm:$0xff] %vm1065_vm3, %v3192_v38  ;;  %v2805_v30 = vadd.f32 %v2804_v26, %v2716_v9  ;;  %v2943_v45 = vmax.f32 %v2911_v32, 0.0  ;;  %v2352_v26 = vadd.f32 %v5401_v16, %v5806_v21 }
 0x316   : > { %v3062_v24 = vpop.f32.mrf.mxu1 }
 0x317   : > { %v3128_v42 = vmul.f32 %v5405_v57, %v3062_v24  ;;  %v2961_v25 = vpack.c.bf16 %v2943_v45, %v2942_v0  ;;  %v2842_v6 = vadd.f32 %v2805_v30, %v5277_v54  ;;  %v2628_v53 = vpop.f32.mrf.mxu2  ;;  %v4017_v24 = vld [vmem:[%s4134_s5 + $0x70] sm:$0xff] }
 0x319   : > { %v3161_v61 = vadd.f32 %v5408_v11, %v3128_v42  ;;  %3101 = vmatmul.bf16.gmra.mxu1 %v2961_v25  ;;  %v2879_v34 = vmul.f32 %v5303_v19, %v2842_v6  ;;  %v2809_v15 = vpop.f32.mrf.mxu0  ;;  %v4018_v6 = vld [vmem:[%s4134_s5 + $0x78] sm:$0xff] }
 0x31a   : > { %v2717_v31 = vpop.f32.mrf.mxu3 }
 0x31b   : > { %v3193_v5 = vadd.f32 %v4013_v48, %v3161_v61  ;;  %v2718_v50 = vadd.f32 %v2717_v31, %v2628_v53  ;;  %v2912_v46 = vadd.f32 %v5306_v40, %v2879_v34 }
 0x31d   : > { %3225 = vst.msk [vmem:[%s5418_s8 + $0x50] sm:$0xff] %vm1065_vm3, %v3193_v5  ;;  %v2807_v39 = vadd.f32 %v2806_v44, %v2718_v50  ;;  %v2944_v56 = vmax.f32 %v2912_v46, 0.0  ;;  %v4019_v5 = vld [vmem:[%s4134_s5 + $0x80] sm:$0xff] }
 0x31e   : > { %v3064_v2 = vpop.f32.mrf.mxu1 }
 0x31f   : > { %v2843_v54 = vadd.f32 %v2807_v39, %v2347_v60  ;;  %v3129_v1 = vmul.f32 %v5405_v57, %v3064_v2  ;;  %v2631_v36 = vpop.f32.mrf.mxu2  ;;  %v4020_v2 = vld [vmem:[%s4134_s5 + $0x88] sm:$0xff] }
 0x321   : > { %v2880_v55 = vmul.f32 %v5303_v19, %v2843_v54  ;;  %v3162_v37 = vadd.f32 %v5408_v11, %v3129_v1  ;;  %v2811_v20 = vpop.f32.mrf.mxu0 }
 0x322   : > { %v2720_v33 = vpop.f32.mrf.mxu3 }
 0x323   : > { %v3194_v7 = vadd.f32 %v4014_v52, %v3162_v37  ;;  %v2721_v23 = vadd.f32 %v2720_v33, %v2631_v36  ;;  %v2913_v43 = vadd.f32 %v5306_v40, %v2880_v55  ;;  %v4021_v36 = vld [vmem:[%s4134_s5 + $0x90] sm:$0xff] }
 0x325   : > { %3226 = vst.msk [vmem:[%s5418_s8 + $0x58] sm:$0xff] %vm1065_vm3, %v3194_v7  ;;  %v2810_v18 = vadd.f32 %v2809_v15, %v2721_v23  ;;  %v2945_v28 = vmax.f32 %v2913_v43, 0.0  ;;  %v4022_v7 = vld [vmem:[%s4134_s5 + $0x98] sm:$0xff] }
 0x326   : > { %v3067_v10 = vpop.f32.mrf.mxu1 }
 0x327   : > { %v3130_v62 = vmul.f32 %v5405_v57, %v3067_v10  ;;  %v2962_v17 = vpack.c.bf16 %v2945_v28, %v2944_v56  ;;  %v2844_v51 = vadd.f32 %v2810_v18, %v5805_v58  ;;  %v2633_v12 = vpop.f32.mrf.mxu2  ;;  %v4023_v28 = vld [vmem:[%s4134_s5 + $0xa0] sm:$0xff] }
 0x329   : > { %v3163_v3 = vadd.f32 %v5408_v11, %v3130_v62  ;;  %3106 = vmatmul.bf16.gmra.mxu1 %v2962_v17  ;;  %v2881_v49 = vmul.f32 %v5303_v19, %v2844_v51  ;;  %v4024_v51 = vld [vmem:[%s4134_s5 + $0xa8] sm:$0xff] }
 0x32a   : > { %v2722_v4 = vpop.f32.mrf.mxu3 }
 0x32b   : > { %v3195_v27 = vadd.f32 %v4015_v14, %v3163_v3  ;;  %v2723_v47 = vadd.f32 %v2722_v4, %v2633_v12  ;;  %v2914_v8 = vadd.f32 %v5306_v40, %v2881_v49  ;;  %v4026_v49 = vld [vmem:[%s4134_s5 + $0xb8] sm:$0xff] }
 0x32d   : > { %3227 = vst.msk [vmem:[%s5418_s8 + $0x60] sm:$0xff] %vm1065_vm3, %v3195_v27  ;;  %v2812_v29 = vadd.f32 %v2811_v20, %v2723_v47  ;;  %v2946_v9 = vmax.f32 %v2914_v8, 0.0  ;;  %v4025_v27 = vld [vmem:[%s4134_s5 + $0xb0] sm:$0xff] }
 0x32e   : > { %v3069_v13 = vpop.f32.mrf.mxu1 }
 0x32f   : > { %v2845_v63 = vadd.f32 %v2812_v29, %v2352_v26  ;;  %v3131_v59 = vmul.f32 %v5405_v57, %v3069_v13 }
 0x331   : > { %v2882_v35 = vmul.f32 %v5303_v19, %v2845_v63  ;;  %v3164_v22 = vadd.f32 %v5408_v11, %v3131_v59 }
 0x333   : > { %v3196_v38 = vadd.f32 %v4016_v41, %v3164_v22  ;;  %v2915_v16 = vadd.f32 %v5306_v40, %v2882_v35  ;;  %v4027_v35 = vld [vmem:[%s4134_s5 + $0xc0] sm:$0xff] }
 0x335   : > { %3228 = vst.msk [vmem:[%s5418_s8 + $0x68] sm:$0xff] %vm1065_vm3, %v3196_v38  ;;  %v2947_v32 = vmax.f32 %v2915_v16, 0.0  ;;  %v4028_v16 = vld [vmem:[%s4134_s5 + $0xc8] sm:$0xff] }
 0x336   : > { %v3072_v30 = vpop.f32.mrf.mxu1 }
 0x337   : > { %v3132_v0 = vmul.f32 %v5405_v57, %v3072_v30  ;;  %v2963_v19 = vpack.c.bf16 %v2947_v32, %v2946_v9 }
 0x339   : > { %v3165_v45 = vadd.f32 %v5408_v11, %v3132_v0  ;;  %3111 = vmatmul.bf16.gmra.mxu1 %v2963_v19  ;;  %v4029_v19 = vld [vmem:[%s4134_s5 + $0xd0] sm:$0xff] }
 0x33b   : > { %v3197_v42 = vadd.f32 %v4017_v24, %v3165_v45 }
 0x33d   : > { %3229 = vst.msk [vmem:[%s5418_s8 + $0x70] sm:$0xff] %vm1065_vm3, %v3197_v42 }
 0x33e   : > { %v3074_v40 = vpop.f32.mrf.mxu1 }
 0x33f   : > { %v3133_v25 = vmul.f32 %v5405_v57, %v3074_v40 }
 0x341   : > { %v3166_v44 = vadd.f32 %v5408_v11, %v3133_v25  ;;  %v4030_v25 = vld [vmem:[%s4134_s5 + $0xd8] sm:$0xff] }
 0x343   : > { %v3198_v61 = vadd.f32 %v4018_v6, %v3166_v44 }
 0x345   : > { %3230 = vst.msk [vmem:[%s5418_s8 + $0x78] sm:$0xff] %vm1065_vm3, %v3198_v61 }
 0x346   : > { %v3077_v53 = vpop.f32.mrf.mxu1 }
 0x347   : > { %v3134_v31 = vmul.f32 %v5405_v57, %v3077_v53 }
 0x349   : > { %v3167_v48 = vadd.f32 %v5408_v11, %v3134_v31  ;;  %v4031_v31 = vld [vmem:[%s4134_s5 + $0xe0] sm:$0xff] }
 0x34b   : > { %v3199_v50 = vadd.f32 %v4019_v5, %v3167_v48 }
 0x34d   : > { %3231 = vst.msk [vmem:[%s5418_s8 + $0x80] sm:$0xff] %vm1065_vm3, %v3199_v50 }
 0x34e   : > { %v3079_v60 = vpop.f32.mrf.mxu1 }
 0x34f   : > { %v3135_v34 = vmul.f32 %v5405_v57, %v3079_v60 }
 0x351   : > { %v3168_v39 = vadd.f32 %v5408_v11, %v3135_v34  ;;  %v4032_v34 = vld [vmem:[%s4134_s5 + $0xe8] sm:$0xff] }
 0x353   : > { %v3200_v54 = vadd.f32 %v4020_v2, %v3168_v39 }
 0x355   : > { %3232 = vst.msk [vmem:[%s5418_s8 + $0x88] sm:$0xff] %vm1065_vm3, %v3200_v54 }
 0x356   : > { %v3082_v1 = vpop.f32.mrf.mxu1 }
 0x357   : > { %v3136_v55 = vmul.f32 %v5405_v57, %v3082_v1 }
 0x359   : > { %v3169_v37 = vadd.f32 %v5408_v11, %v3136_v55  ;;  %v4033_v55 = vld [vmem:[%s4134_s5 + $0xf0] sm:$0xff] }
 0x35b   : > { %v3201_v46 = vadd.f32 %v4021_v36, %v3169_v37 }
 0x35d   : > { %3233 = vst.msk [vmem:[%s5418_s8 + $0x90] sm:$0xff] %vm1065_vm3, %v3201_v46 }
 0x35e   : > { %v3084_v15 = vpop.f32.mrf.mxu1 }
 0x35f   : > { %v3137_v33 = vmul.f32 %v5405_v57, %v3084_v15 }
 0x361   : > { %v3170_v52 = vadd.f32 %v5408_v11, %v3137_v33  ;;  %v4034_v33 = vld [vmem:[%s4134_s5 + $0xf8] sm:$0xff] }
 0x363   : > { %v3202_v23 = vadd.f32 %v4022_v7, %v3170_v52 }
 0x365   : > { %3234 = vst.msk [vmem:[%s5418_s8 + $0x98] sm:$0xff] %vm1065_vm3, %v3202_v23 }
 0x366   : > { %v3087_v43 = vpop.f32.mrf.mxu1 }
 0x367   : > { %v3138_v18 = vmul.f32 %v5405_v57, %v3087_v43 }
 0x369   : > { %v3171_v56 = vadd.f32 %v5408_v11, %v3138_v18 }
 0x36b   : > { %v3203_v10 = vadd.f32 %v4023_v28, %v3171_v56 }
 0x36d   : > { %3235 = vst.msk [vmem:[%s5418_s8 + $0xa0] sm:$0xff] %vm1065_vm3, %v3203_v10 }
 0x36e   : > { %v3089_v62 = vpop.f32.mrf.mxu1 }
 0x36f   : > { %v3139_v17 = vmul.f32 %v5405_v57, %v3089_v62 }
 0x371   : > { %v3172_v58 = vadd.f32 %v5408_v11, %v3139_v17 }
 0x373   : > { %v3204_v3 = vadd.f32 %v4024_v51, %v3172_v58 }
 0x375   : > { %3236 = vst.msk [vmem:[%s5418_s8 + $0xa8] sm:$0xff] %vm1065_vm3, %v3204_v3 }
 0x376   : > { %v3092_v12 = vpop.f32.mrf.mxu1 }
 0x377   : > { %v3140_v4 = vmul.f32 %v5405_v57, %v3092_v12 }
 0x379   : > { %v3173_v14 = vadd.f32 %v5408_v11, %v3140_v4 }
 0x37b   : > { %v3205_v47 = vadd.f32 %v4025_v27, %v3173_v14 }
 0x37d   : > { %3237 = vst.msk [vmem:[%s5418_s8 + $0xb0] sm:$0xff] %vm1065_vm3, %v3205_v47 }
 0x37e   : > { %v3094_v20 = vpop.f32.mrf.mxu1 }
 0x37f   : > { %v3141_v21 = vmul.f32 %v5405_v57, %v3094_v20 }
 0x381   : > { %v3174_v26 = vadd.f32 %v5408_v11, %v3141_v21 }
 0x383   : > { %v3206_v29 = vadd.f32 %v4026_v49, %v3174_v26 }
 0x385   : > { %3238 = vst.msk [vmem:[%s5418_s8 + $0xb8] sm:$0xff] %vm1065_vm3, %v3206_v29 }
 0x386   : > { %v3097_v13 = vpop.f32.mrf.mxu1 }
 0x387   : > { %v3142_v63 = vmul.f32 %v5405_v57, %v3097_v13 }
 0x389   : > { %v3175_v59 = vadd.f32 %v5408_v11, %v3142_v63 }
 0x38b   : > { %v3207_v22 = vadd.f32 %v4027_v35, %v3175_v59 }
 0x38d   : > { %3239 = vst.msk [vmem:[%s5418_s8 + $0xc0] sm:$0xff] %vm1065_vm3, %v3207_v22 }
 0x38e   : > { %v3099_v8 = vpop.f32.mrf.mxu1 }
 0x38f   : > { %v3143_v41 = vmul.f32 %v5405_v57, %v3099_v8 }
 0x391   : > { %v3176_v38 = vadd.f32 %v5408_v11, %v3143_v41 }
 0x393   : > { %v3208_v9 = vadd.f32 %v4028_v16, %v3176_v38 }
 0x395   : > { %3240 = vst.msk [vmem:[%s5418_s8 + $0xc8] sm:$0xff] %vm1065_vm3, %v3208_v9 }
 0x396   : > { %v3102_v32 = vpop.f32.mrf.mxu1 }
 0x397   : > { %v3144_v30 = vmul.f32 %v5405_v57, %v3102_v32 }
 0x399   : > { %v3177_v0 = vadd.f32 %v5408_v11, %v3144_v30 }
 0x39b   : > { %v3209_v45 = vadd.f32 %v4029_v19, %v3177_v0 }
 0x39d   : > { %3241 = vst.msk [vmem:[%s5418_s8 + $0xd0] sm:$0xff] %vm1065_vm3, %v3209_v45 }
 0x39e   : > { %v3104_v24 = vpop.f32.mrf.mxu1 }
 0x39f   : > { %v3145_v42 = vmul.f32 %v5405_v57, %v3104_v24 }
 0x3a1   : > { %v3178_v40 = vadd.f32 %v5408_v11, %v3145_v42 }
 0x3a3   : > { %v3210_v44 = vadd.f32 %v4030_v25, %v3178_v40 }
 0x3a5   : > { %3242 = vst.msk [vmem:[%s5418_s8 + $0xd8] sm:$0xff] %vm1065_vm3, %v3210_v44 }
 0x3a6   : > { %v3107_v6 = vpop.f32.mrf.mxu1 }
 0x3a7   : > { %v3146_v61 = vmul.f32 %v5405_v57, %v3107_v6 }
 0x3a9   : > { %v3179_v53 = vadd.f32 %v5408_v11, %v3146_v61 }
 0x3ab   : > { %v3211_v48 = vadd.f32 %v4031_v31, %v3179_v53 }
 0x3ad   : > { %3243 = vst.msk [vmem:[%s5418_s8 + $0xe0] sm:$0xff] %vm1065_vm3, %v3211_v48 }
 0x3ae   : > { %v3109_v5 = vpop.f32.mrf.mxu1 }
 0x3af   : > { %v3147_v50 = vmul.f32 %v5405_v57, %v3109_v5 }
 0x3b1   : > { %v3180_v60 = vadd.f32 %v5408_v11, %v3147_v50 }
 0x3b3   : > { %v3212_v39 = vadd.f32 %v4032_v34, %v3180_v60 }
 0x3b5   : > { %3244 = vst.msk [vmem:[%s5418_s8 + $0xe8] sm:$0xff] %vm1065_vm3, %v3212_v39 }
 0x3b6   : > { %v3112_v2 = vpop.f32.mrf.mxu1 }
 0x3b7   : > { %v3148_v54 = vmul.f32 %v5405_v57, %v3112_v2 }
 0x3b9   : > { %v3181_v1 = vadd.f32 %v5408_v11, %v3148_v54 }
 0x3bb   : > { %v3213_v37 = vadd.f32 %v4033_v55, %v3181_v1 }
 0x3bd   : > { %3245 = vst.msk [vmem:[%s5418_s8 + $0xf0] sm:$0xff] %vm1065_vm3, %v3213_v37 }
 0x3be   : > { %v3114_v36 = vpop.f32.mrf.mxu1 }
 0x3bf   : > { %v3149_v46 = vmul.f32 %v5405_v57, %v3114_v36 }
 0x3c1   : > { %v3182_v15 = vadd.f32 %v5408_v11, %v3149_v46 }
 0x3c3   : > { %v3214_v52 = vadd.f32 %v4034_v33, %v3182_v15 }
 0x3c5   : > { %3246 = vst.msk [vmem:[%s5418_s8 + $0xf8] sm:$0xff] %vm1065_vm3, %v3214_v52 }
 0x3c6 PF: > { %s15_s15 = sadd.s32 1, %s4075_s15  }
 0x3c7   : > { %p12_p7 = scmp.ge.s32.totalorder %s15_s15, 4  }
 0x3c9   :  { %14 = sbr.rel (!%p12_p7) target bundleno = 1 (0x1), region = 73 }
 0x3ce   :  { %3268 = vsyncpa [#allocation3], 1 }
 0x3cf   :  { %3270 = vsyncpa [#allocation3 + $0x1], 1 }

</bundles_post_ra>
